<compile_context>
chip_gen: v6e
topology: v6e:2x2x1
jax: 0.10.0
libtpu: 0.0.40
codegen_flags: <defaults>
</compile_context>

<pallas_src>
import functools

import numpy as np
import jax
import jax.numpy as jnp
from jax.experimental import pallas as pl
from jax.experimental.pallas import tpu as pltpu


def round_up(x, m):
    return ((x + m - 1) // m) * m


# ----------------------------------------------------------------------------
# Pallas kernel: one conv_iresnet_block step for a folded block of samples
# ----------------------------------------------------------------------------
def iresnet_block_kernel(x_ref, mask_ref, sc_ref, sh_ref,
                         w1_ref, b1_ref, w2_ref, b2_ref, w3_ref, b3_ref,
                         z_ref, pbuf, *, Wp, margin):
    step = pl.program_id(1)
    rows = z_ref.shape[1]          # Bt * Npad folded rows per grid block
    C = z_ref.shape[2]             # block channels
    M = w2_ref.shape[2]            # intermediate (int_dim) channels

    # Step 0 of every batch block: load the carried activation into the output
    # block; it stays VMEM-resident across the inner `steps` grid axis and is
    # only written back to HBM when the batch block index changes.
    @pl.when(step == 0)
    def _():
        z_ref[...] = x_ref[...]

    # Zero the halo margins of the shared conv scratch exactly ONCE (very
    # first grid iteration).  They are never written afterwards because the
    # kernel only stores to pbuf[margin:margin+rows, :], so they stay zero.
    @pl.when(jnp.logical_and(pl.program_id(0) == 0, step == 0))
    def _():
        zeros_m = jnp.zeros((margin, pbuf.shape[1]), pbuf.dtype)
        pbuf[0:margin, :] = zeros_m
        pbuf[margin + rows:margin + rows + margin, :] = zeros_m

    mask = mask_ref[...]           # (rows, 1): 1.0 interior, 0.0 padding rows
    x = z_ref[0]                   # (rows, C) current activation

    # --- ActNorm2D (scale = exp(log_scale) precomputed in the wrapper) -------
    xa = x * sc_ref[step] + sh_ref[step]
    # The mask multiplies on h0/h2/z are LOAD-BEARING for the halo/batch-fold
    # trick: they keep all non-interior rows of every sample at zero so the
    # +-(Wp+-1) taps never leak across image rows or across folded samples.
    h0 = jnp.maximum(xa, 0.0) * mask            # input ReLU; padding rows -> 0

    def conv3x3(h, w_flat, bias, cin):
        # im2col: write h (cast once to bf16) into the margin-padded scratch,
        # gather 9 shifted row-slices, concatenate on the lane axis and do ONE
        # bf16 MXU matmul with K = 9*cin, f32 accumulation; bias added after.
        pbuf[margin:margin + rows, :cin] = h.astype(pbuf.dtype)
        taps = []
        for dy in (-1, 0, 1):
            for dx in (-1, 0, 1):
                s = dy * Wp + dx
                taps.append(pbuf[margin + s:margin + s + rows, :cin])
        patches = jnp.concatenate(taps, axis=1)          # bf16 (rows, 9*cin)
        return jnp.dot(patches, w_flat,
                       preferred_element_type=jnp.float32) + bias

    # --- bottleneck: conv3x3 -> relu -> conv1x1 -> relu -> conv3x3 -----------
    h1 = jnp.maximum(conv3x3(h0, w1_ref[step], b1_ref[step], C), 0.0)
    h2 = jnp.dot(h1.astype(jnp.bfloat16), w2_ref[step],
                 preferred_element_type=jnp.float32) + b2_ref[step]
    h2 = jnp.maximum(h2, 0.0) * mask
    h3 = conv3x3(h2, w3_ref[step], b3_ref[step], M)

    # --- residual: y = F(x') + x'; keep padding rows zero for the next step --
    z_ref[0] = (h3 + xa) * mask


# ----------------------------------------------------------------------------
# Plain-JAX glue: Squeeze / Split / layout conversion / parameter setup
# ----------------------------------------------------------------------------
def squeeze2(x_nchw):
    """Squeeze(2): (B,C,H,W) -> (B,4C,H/2,W/2); channel order (dy, dx, c)."""
    B, C, H, W = x_nchw.shape
    x = x_nchw.reshape(B, C, H // 2, 2, W // 2, 2)
    x = jnp.transpose(x, (0, 3, 5, 1, 2, 4))
    return x.reshape(B, 4 * C, H // 2, W // 2)


def to_padded_flat(x_nchw, Wp):
    """(B,C,H,W) -> (B, (H+2)*Wp, C) padded-flat NHWC, zeros at padding."""
    B, C, H, W = x_nchw.shape
    x = jnp.transpose(x_nchw, (0, 2, 3, 1))                  # NHWC
    x = jnp.pad(x, ((0, 0), (1, 1), (1, Wp - W - 1), (0, 0)))
    return x.reshape(B, (H + 2) * Wp, C)


def from_padded_flat(zf, C, H, W, Wp):
    B = zf.shape[0]
    z = zf.reshape(B, H + 2, Wp, C)[:, 1:H + 1, 1:W + 1, :]
    return jnp.transpose(z, (0, 3, 1, 2))                    # NCHW


def make_interior_mask(H, W, Wp):
    m = np.zeros((H + 2, Wp, 1), np.float32)
    m[1:H + 1, 1:W + 1, :] = 1.0
    return jnp.asarray(m.reshape((H + 2) * Wp, 1))


def _pick_batch_tile(B, Npad, target_rows=1024):
    """Largest divisor of B whose folded row count stays <= target_rows.

    Folding amortizes per-grid-step overhead and grows the MXU M-dim.
    NOTE(v7x): with 2 TensorCores/chip you may prefer additionally keeping
    B // Bt >= 2 so the "parallel" batch axis can shard across both cores.
    """
    best = 1
    for bt in range(1, B + 1):
        if B % bt == 0 and bt * Npad <= target_rows:
            best = bt
    return best


def _l2_normalize(v, eps=1e-12):
    return v / (jnp.sqrt(jnp.sum(v * v)) + eps)


def spectral_norm_conv(w_hwio, in_hwc, coeff, n_iter, key):
    """Conv-operator spectral normalisation (like spectral_norm_conv)."""
    H, W, Cin = in_hwc

    def conv(u):
        return jax.lax.conv_general_dilated(
            u, w_hwio, window_strides=(1, 1), padding="SAME",
            dimension_numbers=("NHWC", "HWIO", "NHWC"))

    u = _l2_normalize(jax.random.normal(key, (1, H, W, Cin), jnp.float32))
    v = _l2_normalize(conv(u))
    for _ in range(n_iter):
        v = _l2_normalize(conv(u))
        _, vjp_fn = jax.vjp(conv, u)
        (u,) = vjp_fn(v)
        u = _l2_normalize(u)
    sigma = jnp.vdot(v, conv(u))
    factor = jnp.maximum(1.0, sigma / coeff)
    return w_hwio / factor


def spectral_norm_fc(w_oi, coeff, n_iter, key):
    """Matrix spectral normalisation for the 1x1 conv (like spectral_norm_fc)."""
    out_dim, _ = w_oi.shape
    u = _l2_normalize(jax.random.normal(key, (out_dim,), jnp.float32))
    v = _l2_normalize(w_oi.T @ u)
    for _ in range(n_iter):
        v = _l2_normalize(w_oi.T @ u)
        u = _l2_normalize(w_oi @ v)
    sigma = u @ (w_oi @ v)
    factor = jnp.maximum(1.0, sigma / coeff)
    return w_oi / factor


def init_scale_block_params(key, steps, conv_shape, int_dim,
                            coeff=0.9, n_power_iter=5):
    # TODO(synk): ActNorm2D's data-dependent init (first-batch stats) is a
    # training-time detail; parameters are initialised deterministically here.
    C, H, W = conv_shape
    M = int_dim
    params = []
    for _ in range(steps):
        key, *ks = jax.random.split(key, 11)
        w1 = jax.random.normal(ks[0], (3, 3, C, M), jnp.float32) / np.sqrt(9 * C)
        b1 = jax.random.normal(ks[1], (M,), jnp.float32) * 0.01
        w2_oi = jax.random.normal(ks[2], (M, M), jnp.float32) / np.sqrt(M)
        b2 = jax.random.normal(ks[3], (M,), jnp.float32) * 0.01
        w3 = jax.random.normal(ks[4], (3, 3, M, C), jnp.float32) / np.sqrt(9 * M)
        b3 = jax.random.normal(ks[5], (C,), jnp.float32) * 0.01
        log_scale = jax.random.normal(ks[6], (C,), jnp.float32) * 0.05
        shift = jax.random.normal(ks[7], (C,), jnp.float32) * 0.05

        # spectral normalisation (Lipschitz <= coeff), plain-JAX weight preproc
        w1 = spectral_norm_conv(w1, (H, W, C), coeff, n_power_iter, ks[8])
        w2_oi = spectral_norm_fc(w2_oi, coeff, n_power_iter, ks[9])
        key, k3 = jax.random.split(key)
        w3 = spectral_norm_conv(w3, (H, W, M), coeff, n_power_iter, k3)

        params.append(dict(
            w1=w1.reshape(9 * C, M),        # rows: tap-major (dy,dx), then cin
            b1=b1.reshape(1, M),
            w2=w2_oi.T,                     # (in, out) for right-multiply
            b2=b2.reshape(1, M),
            w3=w3.reshape(9 * M, C),
            b3=b3.reshape(1, C),
            log_scale=log_scale.reshape(1, C),
            shift=shift.reshape(1, C),
        ))
    return params


def scale_block_forward(x_nchw, params, conv_shape, squeeze=True, split=True):
    """Forward of scale_block; returns ([z1, z2], trace) like the PyTorch module."""
    if squeeze:
        x_nchw = squeeze2(x_nchw)
    B = x_nchw.shape[0]
    C, H, W = conv_shape
    M = params[0]["b1"].shape[1]
    S = len(params)
    Hp = H + 2
    Wp = round_up(W + 2, 8)                 # lane-friendly row pitch
    Npad = Hp * Wp                          # rows per sample (multiple of 8)
    # halo for the +-(Wp+1) row shifts, rounded to a bf16 sublane-pack multiple
    margin = round_up(Wp + 1, 16)
    assert margin >= Wp + 1

    Bt = _pick_batch_tile(B, Npad)          # samples folded per grid block
    rows = Bt * Npad

    x_flat = to_padded_flat(x_nchw, Wp).reshape(B // Bt, rows, C)
    mask = jnp.tile(make_interior_mask(H, W, Wp), (Bt, 1))   # (rows, 1)

    stack = lambda k: jnp.stack([p[k] for p in params], axis=0)
    scale = jnp.exp(stack("log_scale"))                     # (S, 1, C) f32
    shift = stack("shift")                                  # (S, 1, C) f32
    w1 = stack("w1").astype(jnp.bfloat16)                   # (S, 9C, M)
    b1 = stack("b1")                                        # (S, 1, M)
    w2 = stack("w2").astype(jnp.bfloat16)                   # (S, M, M)
    b2 = stack("b2")                                        # (S, 1, M)
    w3 = stack("w3").astype(jnp.bfloat16)                   # (S, 9M, C)
    b3 = stack("b3")                                        # (S, 1, C)

    kernel = functools.partial(iresnet_block_kernel, Wp=Wp, margin=margin)
    per_block = lambda b, s: (b, 0, 0)    # constant along steps -> resident
    resident3 = lambda b, s: (0, 0, 0)    # whole stack, DMA'd exactly once
    resident2 = lambda b, s: (0, 0)

    z_flat = pl.pallas_call(
        kernel,
        out_shape=jax.ShapeDtypeStruct((B // Bt, rows, C), jnp.float32),
        grid_spec=pltpu.PrefetchScalarGridSpec(
            num_scalar_prefetch=0,
            grid=(B // Bt, S),
            in_specs=[
                pl.BlockSpec((1, rows, C), per_block),       # x (step-0 load)
                pl.BlockSpec((rows, 1), resident2),          # interior mask
                pl.BlockSpec((S, 1, C), resident3),          # actnorm scale
                pl.BlockSpec((S, 1, C), resident3),          # actnorm shift
                pl.BlockSpec((S, 9 * C, M), resident3),      # w1 stack
                pl.BlockSpec((S, 1, M), resident3),          # b1 stack
                pl.BlockSpec((S, M, M), resident3),          # w2 stack
                pl.BlockSpec((S, 1, M), resident3),          # b2 stack
                pl.BlockSpec((S, 9 * M, C), resident3),      # w3 stack
                pl.BlockSpec((S, 1, C), resident3),          # b3 stack
            ],
            out_specs=pl.BlockSpec((1, rows, C), per_block),
            # one shared bf16 halo scratch for both 3x3 convs (peak = max)
            scratch_shapes=[pltpu.VMEM((rows + 2 * margin, max(C, M)),
                                       jnp.bfloat16)],
        ),
        compiler_params=pltpu.CompilerParams(
            dimension_semantics=("parallel", "arbitrary"),
            vmem_limit_bytes=32 * 1024 * 1024),   # fits v7x's 64 MiB VMEM too
    )(x_flat, mask, scale, shift, w1, b1, w2, b2, w3, b3)

    # ActNorm log-det depends only on the parameters -> computed in plain JAX.
    trace = sum(jnp.sum(p["log_scale"]) for p in params) * float(H * W)

    z_nchw = from_padded_flat(z_flat.reshape(B, Npad, C), C, H, W, Wp)
    if split:
        n = C // 2
        return [z_nchw[:, :n], z_nchw[:, n:]], trace
    return [z_nchw], trace
# TODO(synk): scale_block.inverse (fixed-point iteration) is not implemented;
# only the forward pass was requested.


# ----------------------------------------------------------------------------
# Plain-JAX reference (for a numerical sanity check of the Pallas kernel)
# ----------------------------------------------------------------------------
def _reference_forward(x_nchw, params, conv_shape):
    C, H, W = conv_shape
    x = squeeze2(x_nchw)
    x = jnp.transpose(x, (0, 2, 3, 1))                       # NHWC
    trace = jnp.zeros((), jnp.float32)
    for p in params:
        M = p["b1"].shape[1]
        ls = p["log_scale"].reshape(C)
        xa = x * jnp.exp(ls) + p["shift"].reshape(C)
        h = jax.nn.relu(xa)
        h = jax.lax.conv_general_dilated(
            h, p["w1"].reshape(3, 3, C, M), (1, 1), "SAME",
            dimension_numbers=("NHWC", "HWIO", "NHWC")) + p["b1"].reshape(M)
        h = jax.nn.relu(h)
        h = jnp.einsum("bhwc,cd->bhwd", h, p["w2"]) + p["b2"].reshape(M)
        h = jax.nn.relu(h)
        h = jax.lax.conv_general_dilated(
            h, p["w3"].reshape(3, 3, M, C), (1, 1), "SAME",
            dimension_numbers=("NHWC", "HWIO", "NHWC")) + p["b3"].reshape(C)
        x = h + xa
        trace = trace + jnp.sum(ls) * (H * W)
    z = jnp.transpose(x, (0, 3, 1, 2))
    n = C // 2
    return [z[:, :n], z[:, n:]], trace


# ----------------------------------------------------------------------------
if __name__ == "__main__":
    key = jax.random.PRNGKey(0)
    B = 2
    in_shape = (4, 16, 16)          # (C, H, W) per sample, as the module expects
    steps = 2
    int_dim = 32
    # downsample_shape after Squeeze(2)
    conv_shape = (in_shape[0] * 4, in_shape[1] // 2, in_shape[2] // 2)

    kx, kp = jax.random.split(key)
    x = jax.random.normal(kx, (B,) + in_shape, jnp.float32)
    params = init_scale_block_params(kp, steps, conv_shape, int_dim,
                                     coeff=0.9, n_power_iter=5)

    (z1, z2), trace = scale_block_forward(x, params, conv_shape,
                                          squeeze=True, split=True)
    jax.block_until_ready((z1, z2, trace))

    # sanity check against a plain-JAX f32 reference (kernel matmuls are bf16)
    (r1, r2), rtrace = _reference_forward(x, params, conv_shape)
    np.testing.assert_allclose(np.asarray(z1), np.asarray(r1), rtol=5e-2, atol=5e-2)
    np.testing.assert_allclose(np.asarray(z2), np.asarray(r2), rtol=5e-2, atol=5e-2)
    np.testing.assert_allclose(np.asarray(trace), np.asarray(rtrace),
                               rtol=1e-4, atol=1e-5)

    print("KERNEL_OK")
</pallas_src>

<mosaic_0001>
module attributes {stable_mosaic.version = 11 : i64} {
  func.func @iresnet_block_kernel(%arg0: i32, %arg1: i32, %arg2: memref<1x320x16xf32, #tpu.memory_space<vmem>>, %arg3: memref<320x1xf32, #tpu.memory_space<vmem>>, %arg4: memref<2x1x16xf32, #tpu.memory_space<vmem>>, %arg5: memref<2x1x16xf32, #tpu.memory_space<vmem>>, %arg6: memref<2x144x32xbf16, #tpu.memory_space<vmem>>, %arg7: memref<2x1x32xf32, #tpu.memory_space<vmem>>, %arg8: memref<2x32x32xbf16, #tpu.memory_space<vmem>>, %arg9: memref<2x1x32xf32, #tpu.memory_space<vmem>>, %arg10: memref<2x288x16xbf16, #tpu.memory_space<vmem>>, %arg11: memref<2x1x16xf32, #tpu.memory_space<vmem>>, %arg12: memref<1x320x16xf32, #tpu.memory_space<vmem>>, %arg13: memref<384x32xbf16, #tpu.memory_space<vmem>>) attributes {dimension_semantics = [#tpu.dimension_semantics<parallel>, #tpu.dimension_semantics<arbitrary>], iteration_bounds = array<i64: 1, 2>, scalar_prefetch = 0 : i64, scratch_operands = 1 : i64, tpu.core_type = #tpu.core_type<tc>, window_params = [{transform_indices = @transform_0, window_bounds = array<i64: 1, 320, 16>}, {pipeline_mode = #tpu.pipeline_mode<synchronous>, transform_indices = @transform_1, window_bounds = array<i64: 320, 1>}, {pipeline_mode = #tpu.pipeline_mode<synchronous>, transform_indices = @transform_2, window_bounds = array<i64: 2, 1, 16>}, {pipeline_mode = #tpu.pipeline_mode<synchronous>, transform_indices = @transform_3, window_bounds = array<i64: 2, 1, 16>}, {pipeline_mode = #tpu.pipeline_mode<synchronous>, transform_indices = @transform_4, window_bounds = array<i64: 2, 144, 32>}, {pipeline_mode = #tpu.pipeline_mode<synchronous>, transform_indices = @transform_5, window_bounds = array<i64: 2, 1, 32>}, {pipeline_mode = #tpu.pipeline_mode<synchronous>, transform_indices = @transform_6, window_bounds = array<i64: 2, 32, 32>}, {pipeline_mode = #tpu.pipeline_mode<synchronous>, transform_indices = @transform_7, window_bounds = array<i64: 2, 1, 32>}, {pipeline_mode = #tpu.pipeline_mode<synchronous>, transform_indices = @transform_8, window_bounds = array<i64: 2, 288, 16>}, {pipeline_mode = #tpu.pipeline_mode<synchronous>, transform_indices = @transform_9, window_bounds = array<i64: 2, 1, 16>}, {transform_indices = @transform_10, window_bounds = array<i64: 1, 320, 16>}]} {
    %c0_i32 = arith.constant 0 : i32
    %0 = arith.cmpi eq, %arg1, %c0_i32 : i32
    %1 = arith.extui %0 : i1 to i32
    %c0_i32_0 = arith.constant 0 : i32
    %2 = arith.cmpi ne, %1, %c0_i32_0 : i32
    scf.if %2 {
      %c0_63 = arith.constant 0 : index
      %c0_64 = arith.constant 0 : index
      %c0_65 = arith.constant 0 : index
      %89 = vector.load %arg2[%c0_63, %c0_64, %c0_65] : memref<1x320x16xf32, #tpu.memory_space<vmem>>, vector<1x320x16xf32>
      %c0_66 = arith.constant 0 : index
      %c0_67 = arith.constant 0 : index
      %c0_68 = arith.constant 0 : index
      %90 = vector.load %arg12[%c0_66, %c0_67, %c0_68] : memref<1x320x16xf32, #tpu.memory_space<vmem>>, vector<1x320x16xf32>
      tpu.vector_store %arg12[%c0_66, %c0_67, %c0_68], %89 {strides = array<i32>} : memref<1x320x16xf32, #tpu.memory_space<vmem>>, vector<1x320x16xf32>,
    } else {
    }
    %c0_i32_1 = arith.constant 0 : i32
    %3 = arith.cmpi eq, %arg0, %c0_i32_1 : i32
    %c0_i32_2 = arith.constant 0 : i32
    %4 = arith.cmpi eq, %arg1, %c0_i32_2 : i32
    %5 = arith.andi %3, %4 : i1
    %6 = arith.extui %5 : i1 to i32
    %c0_i32_3 = arith.constant 0 : i32
    %7 = arith.cmpi ne, %6, %c0_i32_3 : i32
    scf.if %7 {
      %cst_63 = arith.constant 0.000000e+00 : bf16
      %89 = vector.broadcast %cst_63 : bf16 to vector<32x32xbf16>
      %c0_64 = arith.constant 0 : index
      %c0_65 = arith.constant 0 : index
      %90 = vector.load %arg13[%c0_64, %c0_65] : memref<384x32xbf16, #tpu.memory_space<vmem>>, vector<32x32xbf16>
      tpu.vector_store %arg13[%c0_64, %c0_65], %89 {strides = array<i32>} : memref<384x32xbf16, #tpu.memory_space<vmem>>, vector<32x32xbf16>,
      %c352 = arith.constant 352 : index
      %c0_66 = arith.constant 0 : index
      %91 = vector.load %arg13[%c352, %c0_66] : memref<384x32xbf16, #tpu.memory_space<vmem>>, vector<32x32xbf16>
      tpu.vector_store %arg13[%c352, %c0_66], %89 {strides = array<i32>} : memref<384x32xbf16, #tpu.memory_space<vmem>>, vector<32x32xbf16>,
    } else {
    }
    %c0 = arith.constant 0 : index
    %c0_4 = arith.constant 0 : index
    %8 = vector.load %arg3[%c0, %c0_4] : memref<320x1xf32, #tpu.memory_space<vmem>>, vector<320x1xf32>
    %c0_5 = arith.constant 0 : index
    %c0_6 = arith.constant 0 : index
    %c0_7 = arith.constant 0 : index
    %9 = vector.load %arg12[%c0_5, %c0_6, %c0_7] : memref<1x320x16xf32, #tpu.memory_space<vmem>>, vector<1x320x16xf32>
    %10 = vector.shape_cast %9 : vector<1x320x16xf32> to vector<320x16xf32>
    %11 = arith.index_cast %arg1 : i32 to index
    %c0_8 = arith.constant 0 : index
    %c0_9 = arith.constant 0 : index
    %12 = vector.load %arg4[%11, %c0_8, %c0_9] : memref<2x1x16xf32, #tpu.memory_space<vmem>>, vector<1x1x16xf32>
    %13 = vector.shape_cast %12 : vector<1x1x16xf32> to vector<1x16xf32>
    %14 = vector.broadcast %13 : vector<1x16xf32> to vector<320x16xf32>
    %15 = arith.mulf %10, %14 : vector<320x16xf32>
    %16 = arith.index_cast %arg1 : i32 to index
    %c0_10 = arith.constant 0 : index
    %c0_11 = arith.constant 0 : index
    %17 = vector.load %arg5[%16, %c0_10, %c0_11] : memref<2x1x16xf32, #tpu.memory_space<vmem>>, vector<1x1x16xf32>
    %18 = vector.shape_cast %17 : vector<1x1x16xf32> to vector<1x16xf32>
    %19 = vector.broadcast %18 : vector<1x16xf32> to vector<320x16xf32>
    %20 = arith.addf %15, %19 : vector<320x16xf32>
    %cst = arith.constant 0.000000e+00 : f32
    %21 = vector.broadcast %cst : f32 to vector<320x16xf32>
    %22 = arith.maximumf %20, %21 : vector<320x16xf32>
    %23 = vector.broadcast %8 : vector<320x1xf32> to vector<320x16xf32>
    %24 = arith.mulf %22, %23 : vector<320x16xf32>
    %25 = arith.index_cast %arg1 : i32 to index
    %c0_12 = arith.constant 0 : index
    %c0_13 = arith.constant 0 : index
    %26 = vector.load %arg6[%25, %c0_12, %c0_13] : memref<2x144x32xbf16, #tpu.memory_space<vmem>>, vector<1x144x32xbf16>
    %27 = vector.shape_cast %26 : vector<1x144x32xbf16> to vector<144x32xbf16>
    %28 = arith.index_cast %arg1 : i32 to index
    %c0_14 = arith.constant 0 : index
    %c0_15 = arith.constant 0 : index
    %29 = vector.load %arg7[%28, %c0_14, %c0_15] : memref<2x1x32xf32, #tpu.memory_space<vmem>>, vector<1x1x32xf32>
    %30 = vector.shape_cast %29 : vector<1x1x32xf32> to vector<1x32xf32>
    %31 = arith.truncf %24 : vector<320x16xf32> to vector<320x16xbf16>
    %c32 = arith.constant 32 : index
    %c0_16 = arith.constant 0 : index
    %32 = vector.load %arg13[%c32, %c0_16] : memref<384x32xbf16, #tpu.memory_space<vmem>>, vector<320x16xbf16>
    tpu.vector_store %arg13[%c32, %c0_16], %31 {strides = array<i32>} : memref<384x32xbf16, #tpu.memory_space<vmem>>, vector<320x16xbf16>,
    %c15 = arith.constant 15 : index
    %c0_17 = arith.constant 0 : index
    %33 = vector.load %arg13[%c15, %c0_17] : memref<384x32xbf16, #tpu.memory_space<vmem>>, vector<320x16xbf16>
    %c16 = arith.constant 16 : index
    %c0_18 = arith.constant 0 : index
    %34 = vector.load %arg13[%c16, %c0_18] : memref<384x32xbf16, #tpu.memory_space<vmem>>, vector<320x16xbf16>
    %c17 = arith.constant 17 : index
    %c0_19 = arith.constant 0 : index
    %35 = vector.load %arg13[%c17, %c0_19] : memref<384x32xbf16, #tpu.memory_space<vmem>>, vector<320x16xbf16>
    %c31 = arith.constant 31 : index
    %c0_20 = arith.constant 0 : index
    %36 = vector.load %arg13[%c31, %c0_20] : memref<384x32xbf16, #tpu.memory_space<vmem>>, vector<320x16xbf16>
    %c32_21 = arith.constant 32 : index
    %c0_22 = arith.constant 0 : index
    %37 = vector.load %arg13[%c32_21, %c0_22] : memref<384x32xbf16, #tpu.memory_space<vmem>>, vector<320x16xbf16>
    %c33 = arith.constant 33 : index
    %c0_23 = arith.constant 0 : index
    %38 = vector.load %arg13[%c33, %c0_23] : memref<384x32xbf16, #tpu.memory_space<vmem>>, vector<320x16xbf16>
    %c47 = arith.constant 47 : index
    %c0_24 = arith.constant 0 : index
    %39 = vector.load %arg13[%c47, %c0_24] : memref<384x32xbf16, #tpu.memory_space<vmem>>, vector<320x16xbf16>
    %c48 = arith.constant 48 : index
    %c0_25 = arith.constant 0 : index
    %40 = vector.load %arg13[%c48, %c0_25] : memref<384x32xbf16, #tpu.memory_space<vmem>>, vector<320x16xbf16>
    %c49 = arith.constant 49 : index
    %c0_26 = arith.constant 0 : index
    %41 = vector.load %arg13[%c49, %c0_26] : memref<384x32xbf16, #tpu.memory_space<vmem>>, vector<320x16xbf16>
    %42 = tpu.concatenate %33, %34, %35, %36, %37, %38, %39, %40, %41 in 1 : vector<320x16xbf16>, vector<320x16xbf16>, vector<320x16xbf16>, vector<320x16xbf16>, vector<320x16xbf16>, vector<320x16xbf16>, vector<320x16xbf16>, vector<320x16xbf16>, vector<320x16xbf16> -> vector<320x144xbf16>
    %cst_27 = arith.constant dense<0.000000e+00> : vector<320x32xf32>
    %43 = tpu.matmul %42, %27, %cst_27 {dimension_numbers = #tpu.dot_dimension_numbers<[1], [0], [0], [1], [0, 0, 1, 1], [], []>} : vector<320x144xbf16>, vector<144x32xbf16>, vector<320x32xf32> -> vector<320x32xf32>
    %44 = vector.broadcast %30 : vector<1x32xf32> to vector<320x32xf32>
    %45 = arith.addf %43, %44 : vector<320x32xf32>
    %cst_28 = arith.constant 0.000000e+00 : f32
    %46 = vector.broadcast %cst_28 : f32 to vector<320x32xf32>
    %47 = arith.maximumf %45, %46 : vector<320x32xf32>
    %48 = arith.truncf %47 : vector<320x32xf32> to vector<320x32xbf16>
    %49 = arith.index_cast %arg1 : i32 to index
    %c0_29 = arith.constant 0 : index
    %c0_30 = arith.constant 0 : index
    %50 = vector.load %arg8[%49, %c0_29, %c0_30] : memref<2x32x32xbf16, #tpu.memory_space<vmem>>, vector<1x32x32xbf16>
    %51 = vector.shape_cast %50 : vector<1x32x32xbf16> to vector<32x32xbf16>
    %cst_31 = arith.constant dense<0.000000e+00> : vector<320x32xf32>
    %52 = tpu.matmul %48, %51, %cst_31 {dimension_numbers = #tpu.dot_dimension_numbers<[1], [0], [0], [1], [0, 0, 1, 1], [], []>} : vector<320x32xbf16>, vector<32x32xbf16>, vector<320x32xf32> -> vector<320x32xf32>
    %53 = arith.index_cast %arg1 : i32 to index
    %c0_32 = arith.constant 0 : index
    %c0_33 = arith.constant 0 : index
    %54 = vector.load %arg9[%53, %c0_32, %c0_33] : memref<2x1x32xf32, #tpu.memory_space<vmem>>, vector<1x1x32xf32>
    %55 = vector.shape_cast %54 : vector<1x1x32xf32> to vector<1x32xf32>
    %56 = vector.broadcast %55 : vector<1x32xf32> to vector<320x32xf32>
    %57 = arith.addf %52, %56 : vector<320x32xf32>
    %cst_34 = arith.constant 0.000000e+00 : f32
    %58 = vector.broadcast %cst_34 : f32 to vector<320x32xf32>
    %59 = arith.maximumf %57, %58 : vector<320x32xf32>
    %60 = vector.broadcast %8 : vector<320x1xf32> to vector<320x32xf32>
    %61 = arith.mulf %59, %60 : vector<320x32xf32>
    %62 = arith.index_cast %arg1 : i32 to index
    %c0_35 = arith.constant 0 : index
    %c0_36 = arith.constant 0 : index
    %63 = vector.load %arg10[%62, %c0_35, %c0_36] : memref<2x288x16xbf16, #tpu.memory_space<vmem>>, vector<1x288x16xbf16>
    %64 = vector.shape_cast %63 : vector<1x288x16xbf16> to vector<288x16xbf16>
    %65 = arith.index_cast %arg1 : i32 to index
    %c0_37 = arith.constant 0 : index
    %c0_38 = arith.constant 0 : index
    %66 = vector.load %arg11[%65, %c0_37, %c0_38] : memref<2x1x16xf32, #tpu.memory_space<vmem>>, vector<1x1x16xf32>
    %67 = vector.shape_cast %66 : vector<1x1x16xf32> to vector<1x16xf32>
    %68 = arith.truncf %61 : vector<320x32xf32> to vector<320x32xbf16>
    %c32_39 = arith.constant 32 : index
    %c0_40 = arith.constant 0 : index
    %69 = vector.load %arg13[%c32_39, %c0_40] : memref<384x32xbf16, #tpu.memory_space<vmem>>, vector<320x32xbf16>
    tpu.vector_store %arg13[%c32_39, %c0_40], %68 {strides = array<i32>} : memref<384x32xbf16, #tpu.memory_space<vmem>>, vector<320x32xbf16>,
    %c15_41 = arith.constant 15 : index
    %c0_42 = arith.constant 0 : index
    %70 = vector.load %arg13[%c15_41, %c0_42] : memref<384x32xbf16, #tpu.memory_space<vmem>>, vector<320x32xbf16>
    %c16_43 = arith.constant 16 : index
    %c0_44 = arith.constant 0 : index
    %71 = vector.load %arg13[%c16_43, %c0_44] : memref<384x32xbf16, #tpu.memory_space<vmem>>, vector<320x32xbf16>
    %c17_45 = arith.constant 17 : index
    %c0_46 = arith.constant 0 : index
    %72 = vector.load %arg13[%c17_45, %c0_46] : memref<384x32xbf16, #tpu.memory_space<vmem>>, vector<320x32xbf16>
    %c31_47 = arith.constant 31 : index
    %c0_48 = arith.constant 0 : index
    %73 = vector.load %arg13[%c31_47, %c0_48] : memref<384x32xbf16, #tpu.memory_space<vmem>>, vector<320x32xbf16>
    %c32_49 = arith.constant 32 : index
    %c0_50 = arith.constant 0 : index
    %74 = vector.load %arg13[%c32_49, %c0_50] : memref<384x32xbf16, #tpu.memory_space<vmem>>, vector<320x32xbf16>
    %c33_51 = arith.constant 33 : index
    %c0_52 = arith.constant 0 : index
    %75 = vector.load %arg13[%c33_51, %c0_52] : memref<384x32xbf16, #tpu.memory_space<vmem>>, vector<320x32xbf16>
    %c47_53 = arith.constant 47 : index
    %c0_54 = arith.constant 0 : index
    %76 = vector.load %arg13[%c47_53, %c0_54] : memref<384x32xbf16, #tpu.memory_space<vmem>>, vector<320x32xbf16>
    %c48_55 = arith.constant 48 : index
    %c0_56 = arith.constant 0 : index
    %77 = vector.load %arg13[%c48_55, %c0_56] : memref<384x32xbf16, #tpu.memory_space<vmem>>, vector<320x32xbf16>
    %c49_57 = arith.constant 49 : index
    %c0_58 = arith.constant 0 : index
    %78 = vector.load %arg13[%c49_57, %c0_58] : memref<384x32xbf16, #tpu.memory_space<vmem>>, vector<320x32xbf16>
    %79 = tpu.concatenate %70, %71, %72, %73, %74, %75, %76, %77, %78 in 1 : vector<320x32xbf16>, vector<320x32xbf16>, vector<320x32xbf16>, vector<320x32xbf16>, vector<320x32xbf16>, vector<320x32xbf16>, vector<320x32xbf16>, vector<320x32xbf16>, vector<320x32xbf16> -> vector<320x288xbf16>
    %cst_59 = arith.constant dense<0.000000e+00> : vector<320x16xf32>
    %80 = tpu.matmul %79, %64, %cst_59 {dimension_numbers = #tpu.dot_dimension_numbers<[1], [0], [0], [1], [0, 0, 1, 1], [], []>} : vector<320x288xbf16>, vector<288x16xbf16>, vector<320x16xf32> -> vector<320x16xf32>
    %81 = vector.broadcast %67 : vector<1x16xf32> to vector<320x16xf32>
    %82 = arith.addf %80, %81 : vector<320x16xf32>
    %83 = arith.addf %82, %20 : vector<320x16xf32>
    %84 = vector.broadcast %8 : vector<320x1xf32> to vector<320x16xf32>
    %85 = arith.mulf %83, %84 : vector<320x16xf32>
    %c0_60 = arith.constant 0 : index
    %c0_61 = arith.constant 0 : index
    %c0_62 = arith.constant 0 : index
    %86 = vector.load %arg12[%c0_60, %c0_61, %c0_62] : memref<1x320x16xf32, #tpu.memory_space<vmem>>, vector<1x320x16xf32>
    %87 = vector.shape_cast %86 : vector<1x320x16xf32> to vector<320x16xf32>
    %88 = vector.shape_cast %85 : vector<320x16xf32> to vector<1x320x16xf32>
    tpu.vector_store %arg12[%c0_60, %c0_61, %c0_62], %88 {strides = array<i32>} : memref<1x320x16xf32, #tpu.memory_space<vmem>>, vector<1x320x16xf32>,
    return
  }
  func.func @transform_0(%arg0: i32, %arg1: i32) -> (i32, i32, i32) {
    %c0_i32 = arith.constant 0 : i32
    %c0_i32_0 = arith.constant 0 : i32
    %c0_i32_1 = arith.constant 0 : i32
    return %arg0, %c0_i32, %c0_i32_0 : i32, i32, i32
  }
  func.func @transform_1(%arg0: i32, %arg1: i32) -> (i32, i32) {
    %c0_i32 = arith.constant 0 : i32
    %c0_i32_0 = arith.constant 0 : i32
    %c0_i32_1 = arith.constant 0 : i32
    return %c0_i32, %c0_i32_0 : i32, i32
  }
  func.func @transform_2(%arg0: i32, %arg1: i32) -> (i32, i32, i32) {
    %c0_i32 = arith.constant 0 : i32
    %c0_i32_0 = arith.constant 0 : i32
    %c0_i32_1 = arith.constant 0 : i32
    %c0_i32_2 = arith.constant 0 : i32
    return %c0_i32, %c0_i32_0, %c0_i32_1 : i32, i32, i32
  }
  func.func @transform_3(%arg0: i32, %arg1: i32) -> (i32, i32, i32) {
    %c0_i32 = arith.constant 0 : i32
    %c0_i32_0 = arith.constant 0 : i32
    %c0_i32_1 = arith.constant 0 : i32
    %c0_i32_2 = arith.constant 0 : i32
    return %c0_i32, %c0_i32_0, %c0_i32_1 : i32, i32, i32
  }
  func.func @transform_4(%arg0: i32, %arg1: i32) -> (i32, i32, i32) {
    %c0_i32 = arith.constant 0 : i32
    %c0_i32_0 = arith.constant 0 : i32
    %c0_i32_1 = arith.constant 0 : i32
    %c0_i32_2 = arith.constant 0 : i32
    return %c0_i32, %c0_i32_0, %c0_i32_1 : i32, i32, i32
  }
  func.func @transform_5(%arg0: i32, %arg1: i32) -> (i32, i32, i32) {
    %c0_i32 = arith.constant 0 : i32
    %c0_i32_0 = arith.constant 0 : i32
    %c0_i32_1 = arith.constant 0 : i32
    %c0_i32_2 = arith.constant 0 : i32
    return %c0_i32, %c0_i32_0, %c0_i32_1 : i32, i32, i32
  }
  func.func @transform_6(%arg0: i32, %arg1: i32) -> (i32, i32, i32) {
    %c0_i32 = arith.constant 0 : i32
    %c0_i32_0 = arith.constant 0 : i32
    %c0_i32_1 = arith.constant 0 : i32
    %c0_i32_2 = arith.constant 0 : i32
    return %c0_i32, %c0_i32_0, %c0_i32_1 : i32, i32, i32
  }
  func.func @transform_7(%arg0: i32, %arg1: i32) -> (i32, i32, i32) {
    %c0_i32 = arith.constant 0 : i32
    %c0_i32_0 = arith.constant 0 : i32
    %c0_i32_1 = arith.constant 0 : i32
    %c0_i32_2 = arith.constant 0 : i32
    return %c0_i32, %c0_i32_0, %c0_i32_1 : i32, i32, i32
  }
  func.func @transform_8(%arg0: i32, %arg1: i32) -> (i32, i32, i32) {
    %c0_i32 = arith.constant 0 : i32
    %c0_i32_0 = arith.constant 0 : i32
    %c0_i32_1 = arith.constant 0 : i32
    %c0_i32_2 = arith.constant 0 : i32
    return %c0_i32, %c0_i32_0, %c0_i32_1 : i32, i32, i32
  }
  func.func @transform_9(%arg0: i32, %arg1: i32) -> (i32, i32, i32) {
    %c0_i32 = arith.constant 0 : i32
    %c0_i32_0 = arith.constant 0 : i32
    %c0_i32_1 = arith.constant 0 : i32
    %c0_i32_2 = arith.constant 0 : i32
    return %c0_i32, %c0_i32_0, %c0_i32_1 : i32, i32, i32
  }
  func.func @transform_10(%arg0: i32, %arg1: i32) -> (i32, i32, i32) {
    %c0_i32 = arith.constant 0 : i32
    %c0_i32_0 = arith.constant 0 : i32
    %c0_i32_1 = arith.constant 0 : i32
    return %arg0, %c0_i32, %c0_i32_0 : i32, i32, i32
  }
}

</mosaic_0001>

<bundles_post_ra>
// kernel: tpu_custom_call.1
= control target key start
LH: loop header
LB: loop body
LE: loop exit
PB: predicated region body
PF: predicated region fallthrough
CT: control target
= control target key end

     0   :  { %s6632_s13 = smov 0   ;;  %s6634_s14 = smov 0   ;;  %s10233_s0 = inlined_call_operand.vmem [shape: f32[1,320,16], index: 0, kind: input, shape index: {}]   ;;  %s10234_s1 = inlined_call_operand.vmem [shape: f32[320,1], index: 1, kind: input, shape index: {}]   ;;  %s10235_s2 = inlined_call_operand.vmem [shape: f32[2,1,16], index: 2, kind: input, shape index: {}]   ;;  %s10236_s3 = inlined_call_operand.vmem [shape: f32[2,1,16], index: 3, kind: input, shape index: {}]   ;;  %s10237_s4 = inlined_call_operand.vmem [shape: bf16[2,144,32], index: 4, kind: input, shape index: {}]   ;;  %s10238_s5 = inlined_call_operand.vmem [shape: f32[2,1,32], index: 5, kind: input, shape index: {}]   ;;  %s10239_s6 = inlined_call_operand.vmem [shape: bf16[2,32,32], index: 6, kind: input, shape index: {}]   ;;  %s10240_s7 = inlined_call_operand.vmem [shape: f32[2,1,32], index: 7, kind: input, shape index: {}]   ;;  %s10241_s8 = inlined_call_operand.vmem [shape: bf16[2,288,16], index: 8, kind: input, shape index: {}]   ;;  %s10242_s9 = inlined_call_operand.vmem [shape: f32[2,1,16], index: 9, kind: input, shape index: {}]   ;;  %s10243_s10 = inlined_call_operand.vmem [shape: f32[1,320,16], index: 10, kind: output, shape index: {}]  }
   0x1   :  { %s6636_s15 = smov 0  }
   0x2 LB: > { %s29_s16 = sadd.s32 1, %s6562_s14  ;;  %p5883_p0 = scmp.ge.s32.totalorder %s6566_s15, 1  ;;  %s6566_s15 = sphi %s6636_s15, %s20_s15   ;;  %s6562_s14 = sphi %s6634_s14, %s10604_s14   ;;  %s6558_s13 = sphi %s6632_s13, %s10603_s13  }
   0x3   : > { %p30_p1 = scmp.ge.s32.totalorder %s29_s16, 2  ;;  %p324_p2 = scmp.lt.s32.totalorder %s6566_s15, 3 }
   0x5   : > { %s10606_s16 = smov (%p30_p1, %s29_s16), 0  ;;  %p325_p3 = pnand %p5883_p0, %p324_p2 }
   0x7   : > { %328 = sbr.rel (%p325_p3) target bundleno = 1418 (0x58a), region = 60 }
   0xc   : > { %p373_p4 = scmp.eq.s32.totalorder %s6558_s13, 0  ;;  %p5884_p5 = scmp.ne.s32.totalorder %s6558_s13, 0 }
   0xe   : > { %376 = sbr.rel (%p5884_p5) target bundleno = 40 (0x28), region = 64 }
  0x13   : > { %v377_v0 = vld [vmem:[%s10233_s0] sm:$0xff]  ;;  %vm417_vm0 = vcmask 130048   ;;  %v378_v1 = vld [vmem:[%s10233_s0 + $0x8] sm:$0xff]  ;;  %v379_v2 = vld [vmem:[%s10233_s0 + $0x10] sm:$0xff] }
  0x14   : > { %418 = vst.msk [vmem:[%s10243_s10] sm:$0xff] %vm417_vm0, %v377_v0  ;;  %419 = vst.msk [vmem:[%s10243_s10 + $0x8] sm:$0xff] %vm417_vm0, %v378_v1  ;;  %v380_v3 = vld [vmem:[%s10233_s0 + $0x18] sm:$0xff]  ;;  %v381_v4 = vld [vmem:[%s10233_s0 + $0x20] sm:$0xff] }
  0x15   : > { %420 = vst.msk [vmem:[%s10243_s10 + $0x10] sm:$0xff] %vm417_vm0, %v379_v2  ;;  %v382_v5 = vld [vmem:[%s10233_s0 + $0x28] sm:$0xff]  ;;  %421 = vst.msk [vmem:[%s10243_s10 + $0x18] sm:$0xff] %vm417_vm0, %v380_v3  ;;  %v383_v6 = vld [vmem:[%s10233_s0 + $0x30] sm:$0xff] }
  0x16   : > { %422 = vst.msk [vmem:[%s10243_s10 + $0x20] sm:$0xff] %vm417_vm0, %v381_v4  ;;  %423 = vst.msk [vmem:[%s10243_s10 + $0x28] sm:$0xff] %vm417_vm0, %v382_v5  ;;  %v384_v7 = vld [vmem:[%s10233_s0 + $0x38] sm:$0xff]  ;;  %v385_v8 = vld [vmem:[%s10233_s0 + $0x40] sm:$0xff] }
  0x17   : > { %424 = vst.msk [vmem:[%s10243_s10 + $0x30] sm:$0xff] %vm417_vm0, %v383_v6  ;;  %425 = vst.msk [vmem:[%s10243_s10 + $0x38] sm:$0xff] %vm417_vm0, %v384_v7  ;;  %v386_v9 = vld [vmem:[%s10233_s0 + $0x48] sm:$0xff]  ;;  %v387_v10 = vld [vmem:[%s10233_s0 + $0x50] sm:$0xff] }
  0x18   : > { %426 = vst.msk [vmem:[%s10243_s10 + $0x40] sm:$0xff] %vm417_vm0, %v385_v8  ;;  %v388_v11 = vld [vmem:[%s10233_s0 + $0x58] sm:$0xff]  ;;  %427 = vst.msk [vmem:[%s10243_s10 + $0x48] sm:$0xff] %vm417_vm0, %v386_v9  ;;  %v389_v12 = vld [vmem:[%s10233_s0 + $0x60] sm:$0xff] }
  0x19   : > { %428 = vst.msk [vmem:[%s10243_s10 + $0x50] sm:$0xff] %vm417_vm0, %v387_v10  ;;  %429 = vst.msk [vmem:[%s10243_s10 + $0x58] sm:$0xff] %vm417_vm0, %v388_v11  ;;  %v390_v13 = vld [vmem:[%s10233_s0 + $0x68] sm:$0xff]  ;;  %v391_v14 = vld [vmem:[%s10233_s0 + $0x70] sm:$0xff] }
  0x1a   : > { %430 = vst.msk [vmem:[%s10243_s10 + $0x60] sm:$0xff] %vm417_vm0, %v389_v12  ;;  %431 = vst.msk [vmem:[%s10243_s10 + $0x68] sm:$0xff] %vm417_vm0, %v390_v13  ;;  %v392_v15 = vld [vmem:[%s10233_s0 + $0x78] sm:$0xff]  ;;  %v393_v16 = vld [vmem:[%s10233_s0 + $0x80] sm:$0xff] }
  0x1b   : > { %432 = vst.msk [vmem:[%s10243_s10 + $0x70] sm:$0xff] %vm417_vm0, %v391_v14  ;;  %v394_v17 = vld [vmem:[%s10233_s0 + $0x88] sm:$0xff]  ;;  %433 = vst.msk [vmem:[%s10243_s10 + $0x78] sm:$0xff] %vm417_vm0, %v392_v15  ;;  %v395_v18 = vld [vmem:[%s10233_s0 + $0x90] sm:$0xff] }
  0x1c   : > { %434 = vst.msk [vmem:[%s10243_s10 + $0x80] sm:$0xff] %vm417_vm0, %v393_v16  ;;  %435 = vst.msk [vmem:[%s10243_s10 + $0x88] sm:$0xff] %vm417_vm0, %v394_v17  ;;  %v396_v19 = vld [vmem:[%s10233_s0 + $0x98] sm:$0xff]  ;;  %v397_v20 = vld [vmem:[%s10233_s0 + $0xa0] sm:$0xff] }
  0x1d   : > { %436 = vst.msk [vmem:[%s10243_s10 + $0x90] sm:$0xff] %vm417_vm0, %v395_v18  ;;  %437 = vst.msk [vmem:[%s10243_s10 + $0x98] sm:$0xff] %vm417_vm0, %v396_v19  ;;  %v398_v21 = vld [vmem:[%s10233_s0 + $0xa8] sm:$0xff]  ;;  %v399_v22 = vld [vmem:[%s10233_s0 + $0xb0] sm:$0xff] }
  0x1e   : > { %438 = vst.msk [vmem:[%s10243_s10 + $0xa0] sm:$0xff] %vm417_vm0, %v397_v20  ;;  %v400_v23 = vld [vmem:[%s10233_s0 + $0xb8] sm:$0xff]  ;;  %439 = vst.msk [vmem:[%s10243_s10 + $0xa8] sm:$0xff] %vm417_vm0, %v398_v21  ;;  %v401_v24 = vld [vmem:[%s10233_s0 + $0xc0] sm:$0xff] }
  0x1f   : > { %440 = vst.msk [vmem:[%s10243_s10 + $0xb0] sm:$0xff] %vm417_vm0, %v399_v22  ;;  %441 = vst.msk [vmem:[%s10243_s10 + $0xb8] sm:$0xff] %vm417_vm0, %v400_v23  ;;  %v402_v25 = vld [vmem:[%s10233_s0 + $0xc8] sm:$0xff]  ;;  %v403_v26 = vld [vmem:[%s10233_s0 + $0xd0] sm:$0xff] }
  0x20   : > { %442 = vst.msk [vmem:[%s10243_s10 + $0xc0] sm:$0xff] %vm417_vm0, %v401_v24  ;;  %443 = vst.msk [vmem:[%s10243_s10 + $0xc8] sm:$0xff] %vm417_vm0, %v402_v25  ;;  %v404_v27 = vld [vmem:[%s10233_s0 + $0xd8] sm:$0xff]  ;;  %v405_v28 = vld [vmem:[%s10233_s0 + $0xe0] sm:$0xff] }
  0x21   : > { %444 = vst.msk [vmem:[%s10243_s10 + $0xd0] sm:$0xff] %vm417_vm0, %v403_v26  ;;  %v406_v29 = vld [vmem:[%s10233_s0 + $0xe8] sm:$0xff]  ;;  %445 = vst.msk [vmem:[%s10243_s10 + $0xd8] sm:$0xff] %vm417_vm0, %v404_v27  ;;  %v407_v30 = vld [vmem:[%s10233_s0 + $0xf0] sm:$0xff] }
  0x22   : > { %446 = vst.msk [vmem:[%s10243_s10 + $0xe0] sm:$0xff] %vm417_vm0, %v405_v28  ;;  %447 = vst.msk [vmem:[%s10243_s10 + $0xe8] sm:$0xff] %vm417_vm0, %v406_v29  ;;  %v408_v31 = vld [vmem:[%s10233_s0 + $0xf8] sm:$0xff]  ;;  %v409_v32 = vld [vmem:[%s10233_s0 + $0x100] sm:$0xff] }
  0x23   : > { %448 = vst.msk [vmem:[%s10243_s10 + $0xf0] sm:$0xff] %vm417_vm0, %v407_v30  ;;  %449 = vst.msk [vmem:[%s10243_s10 + $0xf8] sm:$0xff] %vm417_vm0, %v408_v31  ;;  %v410_v33 = vld [vmem:[%s10233_s0 + $0x108] sm:$0xff]  ;;  %v411_v34 = vld [vmem:[%s10233_s0 + $0x110] sm:$0xff] }
  0x24   : > { %450 = vst.msk [vmem:[%s10243_s10 + $0x100] sm:$0xff] %vm417_vm0, %v409_v32  ;;  %v412_v35 = vld [vmem:[%s10233_s0 + $0x118] sm:$0xff]  ;;  %451 = vst.msk [vmem:[%s10243_s10 + $0x108] sm:$0xff] %vm417_vm0, %v410_v33  ;;  %v413_v36 = vld [vmem:[%s10233_s0 + $0x120] sm:$0xff] }
  0x25   : > { %452 = vst.msk [vmem:[%s10243_s10 + $0x110] sm:$0xff] %vm417_vm0, %v411_v34  ;;  %453 = vst.msk [vmem:[%s10243_s10 + $0x118] sm:$0xff] %vm417_vm0, %v412_v35  ;;  %v414_v37 = vld [vmem:[%s10233_s0 + $0x128] sm:$0xff]  ;;  %v415_v38 = vld [vmem:[%s10233_s0 + $0x130] sm:$0xff] }
  0x26   : > { %454 = vst.msk [vmem:[%s10243_s10 + $0x120] sm:$0xff] %vm417_vm0, %v413_v36  ;;  %455 = vst.msk [vmem:[%s10243_s10 + $0x128] sm:$0xff] %vm417_vm0, %v414_v37  ;;  %v416_v39 = vld [vmem:[%s10233_s0 + $0x138] sm:$0xff] }
  0x27   : > { %456 = vst.msk [vmem:[%s10243_s10 + $0x130] sm:$0xff] %vm417_vm0, %v415_v38  ;;  %457 = vst.msk [vmem:[%s10243_s10 + $0x138] sm:$0xff] %vm417_vm0, %v416_v39 }
  0x28 PF: > { %462 = sbr.rel (!%p373_p4) target bundleno = 45 (0x2d), region = 68  ;;  %vm463_vm1 = vcmask (%p373_p4), 257024   ;;  %v6568_v40 = vmov (%p373_p4), 0  }
  0x29   : > { %465 = vst.msk [vmem:[#allocation2 + $0x4] sm:$0xf] (%p373_p4), %vm463_vm1, %v6568_v40  ;;  %466 = vst.msk [vmem:[#allocation2 + $0x8] sm:$0xf] (%p373_p4), %vm463_vm1, %v6568_v40 }
  0x2a   : > { %467 = vst.msk [vmem:[#allocation2 + $0xc] sm:$0xf] (%p373_p4), %vm463_vm1, %v6568_v40  ;;  %468 = vst.msk [vmem:[#allocation2 + $0xb0] sm:$0xf] (%p373_p4), %vm463_vm1, %v6568_v40 }
  0x2b   : > { %469 = vst.msk [vmem:[#allocation2 + $0xb4] sm:$0xf] (%p373_p4), %vm463_vm1, %v6568_v40  ;;  %470 = vst.msk [vmem:[#allocation2 + $0xb8] sm:$0xf] (%p373_p4), %vm463_vm1, %v6568_v40 }
  0x2d PF: > { %v474_v41 = vld [vmem:[%s10234_s1 + $0x10] sm:$0xff]  ;;  %v472_v42 = vld [vmem:[%s10234_s1] sm:$0xff]  ;;  %v10245_v43 = vmov 0   ;;  %v475_v44 = vld [vmem:[%s10234_s1 + $0x18] sm:$0xff]  ;;  %s6570_s19 = smov 16   ;;  %s6571_s22 = smov 32  }
  0x2e   : > { %6425 = vset.pattern.permute.xlu1 %v10245_v43  ;;  %6424 = vset.pattern.permute.xlu0 %v10245_v43  ;;  %v473_v45 = vld [vmem:[%s10234_s1 + $0x8] sm:$0xff]  ;;  %v476_v47 = vld [vmem:[%s10234_s1 + $0x20] sm:$0xff]  ;;  %v479_v48 = vld [vmem:[%s10234_s1 + $0x38] sm:$0xff]  ;;  %s7057_s27 = scalar_lea.vmem %s10235_s2, %s6558_s13  ;;  %s7072_s18 = scalar_lea.vmem %s10236_s3, %s6558_s13  ;;  %vm1111_vm2 = vcmask 125952   ;;  %vm1550_vm3 = vcmask 1042432   ;;  %vm1896_vm5 = vcmask 130048  }
  0x2f   : > { %700 = vperm.xlu1 %6425, %v474_v41   ;;  %690 = vperm.xlu0 %6424, %v472_v42   ;;  %v477_v46 = vld [vmem:[%s10234_s1 + $0x28] sm:$0xff]  ;;  %v478_v49 = vld [vmem:[%s10234_s1 + $0x30] sm:$0xff]  ;;  %v480_v51 = vld [vmem:[%s10234_s1 + $0x40] sm:$0xff]  ;;  %s6572_s30 = smov 48   ;;  %s6573_s17 = smov 96   ;;  %vm1960_vm7 = vcmask 261120  }
  0x30   : > { %2714 = vmatprep.subr.bf16.mxu0 %v10245_v43  ;;  %v481_v50 = vld [vmem:[%s10234_s1 + $0x48] sm:$0xff]  ;;  %v483_v52 = vld [vmem:[%s10234_s1 + $0x58] sm:$0xff]  ;;  %v482_v53 = vld [vmem:[%s10234_s1 + $0x50] sm:$0xff]  ;;  %vm2224_vm4 = vsmask.f32 4352  ;;  %s6172_s23 = smul.u32 72, %s6558_s13 }
  0x31   : > { %v485_v54 = vld [vmem:[%s10234_s1 + $0x68] sm:$0xff]  ;;  %v484_v55 = vld [vmem:[%s10234_s1 + $0x60] sm:$0xff]  ;;  %v487_v56 = vld [vmem:[%s10234_s1 + $0x78] sm:$0xff]  ;;  %s6574_s11 = smov 80   ;;  %s6575_s12 = smov 64   ;;  %vm2003_vm8 = vcmask 392192  }
  0x32   : > { %v486_v57 = vld [vmem:[%s10234_s1 + $0x70] sm:$0xff]  ;;  %v489_v58 = vld [vmem:[%s10234_s1 + $0x88] sm:$0xff]  ;;  %v488_v59 = vld [vmem:[%s10234_s1 + $0x80] sm:$0xff]  ;;  %s7413_s26 = scalar_lea.vmem %s10237_s4, %s6172_s23  ;;  %s6576_s20 = smov 112   ;;  %vm1325_vm6 = vsmask.f32 3328 }
  0x33   : > { %705 = vperm.xlu1 %6425, %v475_v44   ;;  %695 = vperm.xlu0 %6424, %v473_v45   ;;  %v1153_v60 = vld [vmem:[#allocation2 + $0x8] sm:$0xf]  ;;  %v1154_v61 = vld [vmem:[#allocation2 + $0xc] sm:$0xf]  ;;  %v491_v63 = vld [vmem:[%s10234_s1 + $0x98] sm:$0xff]  ;;  %vm2046_vm9 = vcmask 523264  }
  0x34   : > { %v6993_v62 = vcombine.low %v1153_v60, %v1154_v61  ;;  %v490_v0 = vld [vmem:[%s10234_s1 + $0x90] sm:$0xff]  ;;  %v493_v3 = vld [vmem:[%s10234_s1 + $0xa8] sm:$0xff]  ;;  %v492_v4 = vld [vmem:[%s10234_s1 + $0xa0] sm:$0xff]  ;;  %vm2089_vm10 = vcmask 654336   ;;  %vm2132_vm11 = vcmask 785408   ;;  %vm2175_vm12 = vcmask 916480  }
  0x35   : > { %v495_v7 = vld [vmem:[%s10234_s1 + $0xb8] sm:$0xff]  ;;  %v494_v8 = vld [vmem:[%s10234_s1 + $0xb0] sm:$0xff]  ;;  %v497_v10 = vld [vmem:[%s10234_s1 + $0xc8] sm:$0xff]  ;;  %vm3528_vm13 = vcmask 257024  }
  0x36   : > { %v1327_v1 = vshrl.u32 %v6993_v62, 16  ;;  %v1330_v2 = vshll.u32 %v6993_v62, 16  ;;  %v10244_v11 = vrot.slane %v6993_v62, 5  ;;  %v499_v12 = vld [vmem:[%s10234_s1 + $0xd8] sm:$0xff]  ;;  %v500_v13 = vld [vmem:[%s10234_s1 + $0xe0] sm:$0xff]  ;;  %v498_v16 = vld [vmem:[%s10234_s1 + $0xd0] sm:$0xff] }
  0x37   : > { %715 = vperm.xlu1 %6425, %v477_v46   ;;  %710 = vperm.xlu0 %6424, %v476_v47   ;;  %v496_v14 = vld [vmem:[%s10234_s1 + $0xc0] sm:$0xff]  ;;  %v503_v15 = vld [vmem:[%s10234_s1 + $0xf8] sm:$0xff]  ;;  %v501_v18 = vld [vmem:[%s10234_s1 + $0xe8] sm:$0xff] }
  0x38   : > { %v1329_v5 = vrot.slane %v1327_v1, 4  ;;  %v1332_v6 = vrot.slane %v1330_v2, 5  ;;  %v504_v17 = vld [vmem:[%s10234_s1 + $0x100] sm:$0xff]  ;;  %v502_v19 = vld [vmem:[%s10234_s1 + $0xf0] sm:$0xff]  ;;  %v505_v20 = vld [vmem:[%s10234_s1 + $0x108] sm:$0xff] }
  0x39   : > { %v514_v21 = vld [vmem:[%s10243_s10 + $0x10] sm:$0xff]  ;;  %v7063_v22 = vld [vmem:[%s7057_s27] ss:$0 sm:$0xff]  ;;  %v515_v27 = vld [vmem:[%s10243_s10 + $0x18] sm:$0xff] }
  0x3a   : > { %v7015_v9 = vor.u32 %v1332_v6, %v1329_v5  ;;  %v512_v23 = vld [vmem:[%s10243_s10] sm:$0xff]  ;;  %v562_v24 = vmul.f32 %v7063_v22, %v514_v21  ;;  %v513_v28 = vld [vmem:[%s10243_s10 + $0x8] sm:$0xff]  ;;  %v563_v31 = vmul.f32 %v7063_v22, %v515_v27  ;;  %v519_v41 = vld [vmem:[%s10243_s10 + $0x38] sm:$0xff] }
  0x3b   : > { %725 = vperm.xlu1 %6425, %v479_v48   ;;  %720 = vperm.xlu0 %6424, %v478_v49   ;;  %v560_v25 = vmul.f32 %v7063_v22, %v512_v23  ;;  %v7077_v26 = vld [vmem:[%s7072_s18] ss:$0 sm:$0xff]  ;;  %v561_v32 = vmul.f32 %v7063_v22, %v513_v28  ;;  %v517_v33 = vld [vmem:[%s10243_s10 + $0x28] sm:$0xff]  ;;  %v518_v42 = vld [vmem:[%s10243_s10 + $0x30] sm:$0xff]  ;;  %v567_v48 = vmul.f32 %v7063_v22, %v519_v41 }
  0x3c   : > { %v7086_v29 = vadd.f32 %v7077_v26, %v562_v24  ;;  %v516_v34 = vld [vmem:[%s10243_s10 + $0x20] sm:$0xff]  ;;  %v565_v35 = vmul.f32 %v7063_v22, %v517_v33  ;;  %v7104_v39 = vadd.f32 %v7077_v26, %v563_v31  ;;  %v566_v49 = vmul.f32 %v7063_v22, %v518_v42  ;;  %v523_v1 = vld [vmem:[%s10243_s10 + $0x58] sm:$0xff]  ;;  %v522_v2 = vld [vmem:[%s10243_s10 + $0x50] sm:$0xff] }
  0x3d   : > { %v7089_v30 = vadd.f32 %v7077_v26, %v560_v25  ;;  %v564_v36 = vmul.f32 %v7063_v22, %v516_v34  ;;  %v7107_v40 = vadd.f32 %v7077_v26, %v561_v32  ;;  %v1194_v24 = vld [vmem:[#allocation2 + $0xc] sm:$0x8]  ;;  %v527_v34 = vld [vmem:[%s10243_s10 + $0x78] sm:$0xff] }
  0x3e   : > { %10377 = vst [vmem:[#allocation3_spill] sm:$0xff] %v7086_v29  ;;  %v650_v37 = vmax.f32 %v7086_v29, 0.0  ;;  %10379 = vst [vmem:[#allocation5_spill] sm:$0xff] %v7104_v39  ;;  %v7120_v46 = vadd.f32 %v7077_v26, %v565_v35  ;;  %v7158_v5 = vadd.f32 %v7077_v26, %v566_v49  ;;  %v526_v35 = vld [vmem:[%s10243_s10 + $0x70] sm:$0xff]  ;;  %v6447_v29 = vld [vmem:[%s7413_s26 + $0x20] sm:$0xff]  }
  0x3f   : > { %735 = vperm.xlu1 %6425, %v481_v50   ;;  %730 = vperm.xlu0 %6424, %v480_v51   ;;  %10378 = vst [vmem:[#allocation4_spill] sm:$0xff] %v7089_v30  ;;  %v648_v38 = vmax.f32 %v7089_v30, 0.0  ;;  %10380 = vst [vmem:[#allocation6_spill] sm:$0xff] %v7107_v40  ;;  %v7123_v47 = vadd.f32 %v7077_v26, %v564_v36 }
  0x40   : > { %10383 = vst [vmem:[#allocation9_spill] sm:$0xff] %v7120_v46  ;;  %v653_v60 = vmax.f32 %v7120_v46, 0.0  ;;  %10388 = vst [vmem:[#allocation14_spill] sm:$0xff] %v7158_v5  ;;  %v654_v21 = vmax.f32 %v7158_v5, 0.0 }
  0x41   : > { %10384 = vst [vmem:[#allocation10_spill] sm:$0xff] %v7123_v47  ;;  %v652_v61 = vmax.f32 %v7123_v47, 0.0 }
  0x43   : > { %745 = vperm.xlu1 %6425, %v483_v52   ;;  %740 = vperm.xlu0 %6424, %v482_v53   ;;  %v651_v52 = vmax.f32 %v7104_v39, 0.0  ;;  %v649_v53 = vmax.f32 %v7107_v40, 0.0 }
  0x47   : > { %755 = vperm.xlu1 %6425, %v485_v54   ;;  %750 = vperm.xlu0 %6424, %v484_v55   ;;  %v521_v54 = vld [vmem:[%s10243_s10 + $0x48] sm:$0xff]  ;;  %v520_v55 = vld [vmem:[%s10243_s10 + $0x40] sm:$0xff] }
  0x48   : > { %v568_v6 = vmul.f32 %v7063_v22, %v520_v55 }
  0x4a   : > { %v7183_v23 = vadd.f32 %v7077_v26, %v568_v6 }
  0x4b   : > { %765 = vperm.xlu1 %6425, %v487_v56   ;;  %760 = vperm.xlu0 %6424, %v486_v57  }
  0x4c   : > { %10392 = vst [vmem:[#allocation18_spill] sm:$0xff] %v7183_v23 }
  0x4f   : > { %775 = vperm.xlu1 %6425, %v489_v58   ;;  %770 = vperm.xlu0 %6424, %v488_v59  }
  0x53   : > { %785 = vperm.xlu1 %6425, %v491_v63   ;;  %780 = vperm.xlu0 %6424, %v490_v0   ;;  %v7144_v63 = vadd.f32 %v7077_v26, %v567_v48  ;;  %v569_v0 = vmul.f32 %v7063_v22, %v521_v54 }
  0x55   : > { %10387 = vst [vmem:[#allocation13_spill] sm:$0xff] %v7144_v63 }
  0x57   : > { %795 = vperm.xlu1 %6425, %v493_v3   ;;  %790 = vperm.xlu0 %6424, %v492_v4  }
  0x5b   : > { %805 = vperm.xlu1 %6425, %v495_v7   ;;  %800 = vperm.xlu0 %6424, %v494_v8  }
  0x5f   : > { %815 = vperm.xlu1 %6425, %v497_v10   ;;  %1505 = vrot.lane.b32.xlu0 %v7015_v9, %s6570_s19  ;;  %v571_v10 = vmul.f32 %v7063_v22, %v523_v1 }
  0x61   : > { %v7188_v32 = vadd.f32 %v7077_v26, %v571_v10 }
  0x63   : > { %825 = vperm.xlu1 %6425, %v499_v12   ;;  %1592 = vrot.lane.b32.xlu0 %v10244_v11, %s6571_s22  ;;  %v570_v12 = vmul.f32 %v7063_v22, %v522_v2  ;;  %10393 = vst [vmem:[#allocation19_spill] sm:$0xff] %v7188_v32 }
  0x65   : > { %v7191_v33 = vadd.f32 %v7077_v26, %v570_v12 }
  0x67   : > { %830 = vperm.xlu1 %6425, %v500_v13   ;;  %810 = vperm.xlu0 %6424, %v496_v14   ;;  %v525_v13 = vld [vmem:[%s10243_s10 + $0x68] sm:$0xff]  ;;  %v524_v14 = vld [vmem:[%s10243_s10 + $0x60] sm:$0xff]  ;;  %10394 = vst [vmem:[#allocation20_spill] sm:$0xff] %v7191_v33  ;;  %v658_v1 = vmax.f32 %v7191_v33, 0.0 }
  0x68   : > { %v573_v25 = vmul.f32 %v7063_v22, %v525_v13  ;;  %v572_v27 = vmul.f32 %v7063_v22, %v524_v14 }
  0x6a   : > { %v7219_v54 = vadd.f32 %v7077_v26, %v573_v25  ;;  %v7222_v55 = vadd.f32 %v7077_v26, %v572_v27 }
  0x6b   : > { %845 = vperm.xlu1 %6425, %v503_v15   ;;  %820 = vperm.xlu0 %6424, %v498_v16  }
  0x6c   : > { %10397 = vst [vmem:[#allocation23_spill] sm:$0xff] %v7219_v54  ;;  %10398 = vst [vmem:[#allocation24_spill] sm:$0xff] %v7222_v55 }
  0x6f   : > { %850 = vperm.xlu1 %6425, %v504_v17   ;;  %835 = vperm.xlu0 %6424, %v501_v18   ;;  %v655_v17 = vmax.f32 %v7144_v63, 0.0  ;;  %v7175_v18 = vadd.f32 %v7077_v26, %v569_v0  ;;  %v659_v0 = vmax.f32 %v7188_v32, 0.0  ;;  %v535_v32 = vld [vmem:[%s10243_s10 + $0xb8] sm:$0xff] }
  0x71   : > { %10391 = vst [vmem:[#allocation17_spill] sm:$0xff] %v7175_v18  ;;  %v657_v41 = vmax.f32 %v7175_v18, 0.0 }
  0x73   : > { %840 = vperm.xlu0 %6424, %v502_v19  }
  0x77   : > { %855 = vperm.xlu0 %6424, %v505_v20  }
  0xaa   : > { %v7115_v44 = vpop.permute.xlu1 %700  ;;  %v7117_v45 = vpop.permute.xlu0 %690 }
  0xab   : > { %10381 = vst [vmem:[#allocation7_spill] sm:$0xff] %v7115_v44  ;;  %10382 = vst [vmem:[#allocation8_spill] sm:$0xff] %v7117_v45  ;;  %v890_v50 = vmul.f32 %v7115_v44, %v650_v37  ;;  %v888_v51 = vmul.f32 %v7117_v45, %v648_v38 }
  0xad   : > { %v6175_v56 = vpack.c.bf16 %v890_v50, %v890_v50  ;;  %v6173_v57 = vpack.c.bf16 %v888_v51, %v888_v51  ;;  %v656_v50 = vmax.f32 %v7183_v23, 0.0  ;;  %v529_v51 = vld [vmem:[%s10243_s10 + $0x88] sm:$0xff]  ;;  %v583_v23 = vmul.f32 %v7063_v22, %v535_v32 }
  0xae   : > { %v7137_v58 = vpop.permute.xlu1 %705  ;;  %v7139_v59 = vpop.permute.xlu0 %695  ;;  %v537_v32 = vld [vmem:[%s10243_s10 + $0xc8] sm:$0xff] }
  0xaf   : > { %10385 = vst [vmem:[#allocation11_spill] sm:$0xff] %v7137_v58  ;;  %10386 = vst [vmem:[#allocation12_spill] sm:$0xff] %v7139_v59  ;;  %v891_v3 = vmul.f32 %v7137_v58, %v651_v52  ;;  %v889_v4 = vmul.f32 %v7139_v59, %v649_v53  ;;  %v528_v52 = vld [vmem:[%s10243_s10 + $0x80] sm:$0xff] }
  0xb0   : > { %1114 = vst.msk [vmem:[#allocation2 + $0x18] sm:$0xf] %vm1111_vm2, %v6175_v56  ;;  %1112 = vst.msk [vmem:[#allocation2 + $0x10] sm:$0xf] %vm1111_vm2, %v6173_v57  ;;  %v575_v56 = vmul.f32 %v7063_v22, %v527_v34  ;;  %v574_v57 = vmul.f32 %v7063_v22, %v526_v35  ;;  %v576_v10 = vmul.f32 %v7063_v22, %v528_v52  ;;  %v530_v34 = vld [vmem:[%s10243_s10 + $0x90] sm:$0xff] }
  0xb1   : > { %v6176_v7 = vpack.c.bf16 %v891_v3, %v891_v3  ;;  %v6174_v8 = vpack.c.bf16 %v889_v4, %v889_v4 }
  0xb2   : > { %v7169_v15 = vpop.permute.xlu1 %715  ;;  %v7171_v16 = vpop.permute.xlu0 %710 }
  0xb3   : > { %10389 = vst [vmem:[#allocation15_spill] sm:$0xff] %v7169_v15  ;;  %10390 = vst [vmem:[#allocation16_spill] sm:$0xff] %v7171_v16  ;;  %v893_v19 = vmul.f32 %v7169_v15, %v653_v60  ;;  %v892_v20 = vmul.f32 %v7171_v16, %v652_v61 }
  0xb4   : > { %1115 = vst.msk [vmem:[#allocation2 + $0x1c] sm:$0xf] %vm1111_vm2, %v6176_v7  ;;  %1113 = vst.msk [vmem:[#allocation2 + $0x14] sm:$0xf] %vm1111_vm2, %v6174_v8  ;;  %v577_v8 = vmul.f32 %v7063_v22, %v529_v51  ;;  %v7274_v51 = vadd.f32 %v7077_v26, %v576_v10 }
  0xb5   : > { %v6178_v28 = vpack.c.bf16 %v893_v19, %v893_v19  ;;  %v6177_v31 = vpack.c.bf16 %v892_v20, %v892_v20  ;;  %v531_v19 = vld [vmem:[%s10243_s10 + $0x98] sm:$0xff] }
  0xb6   : > { %v7199_v36 = vpop.permute.xlu1 %725  ;;  %v7201_v37 = vpop.permute.xlu0 %720  ;;  %10406 = vst [vmem:[#allocation32_spill] sm:$0xff] %v7274_v51  ;;  %v579_v52 = vmul.f32 %v7063_v22, %v531_v19 }
  0xb7   : > { %10395 = vst [vmem:[#allocation21_spill] sm:$0xff] %v7199_v36  ;;  %10396 = vst [vmem:[#allocation22_spill] sm:$0xff] %v7201_v37  ;;  %v7203_v38 = vld [vmem:[#allocation2 + $0x10] sm:$0xf]  ;;  %v895_v42 = vmul.f32 %v7199_v36, %v655_v17  ;;  %v894_v48 = vmul.f32 %v7201_v37, %v654_v21  ;;  %v1157_v53 = vld [vmem:[#allocation2 + $0x18] sm:$0xf]  ;;  %v7250_v21 = vadd.f32 %v7077_v26, %v575_v56 }
  0xb8   : > { %1117 = vst.msk [vmem:[#allocation2 + $0x24] sm:$0xf] %vm1111_vm2, %v6178_v28  ;;  %1116 = vst.msk [vmem:[#allocation2 + $0x20] sm:$0xf] %vm1111_vm2, %v6177_v31  ;;  %v5971_v49 = vcombine.low %v1194_v24, %v7203_v38  ;;  %v7253_v24 = vadd.f32 %v7077_v26, %v574_v57  ;;  %v661_v28 = vmax.f32 %v7219_v54, 0.0  ;;  %v660_v31 = vmax.f32 %v7222_v55, 0.0 }
  0xb9   : > { %v6180_v60 = vpack.c.bf16 %v895_v42, %v895_v42  ;;  %v6179_v61 = vpack.c.bf16 %v894_v48, %v894_v48  ;;  %10401 = vst [vmem:[#allocation27_spill] sm:$0xff] %v7250_v21  ;;  %v7317_v43 = vadd.f32 %v7077_v26, %v579_v52  ;;  %v6534_v36 = vld [vmem:[#allocation2 + $0x8] sm:$0xf] }
  0xba   : > { %1643 = vrot.lane.b32.xlu0 %v5971_v49, %s6572_s30  ;;  %v7229_v2 = vpop.permute.xlu1 %735  ;;  %v7231_v3 = vpop.permute.xlu0 %730  ;;  %10402 = vst [vmem:[#allocation28_spill] sm:$0xff] %v7253_v24 }
  0xbb   : > { %10399 = vst [vmem:[#allocation25_spill] sm:$0xff] %v7229_v2  ;;  %10400 = vst [vmem:[#allocation26_spill] sm:$0xff] %v7231_v3  ;;  %v1198_v4 = vld [vmem:[#allocation2 + $0x14] sm:$0x8]  ;;  %v1158_v7 = vld [vmem:[#allocation2 + $0x1c] sm:$0xf]  ;;  %v897_v12 = vmul.f32 %v7229_v2, %v657_v41  ;;  %v896_v13 = vmul.f32 %v7231_v3, %v656_v50  ;;  %v7271_v50 = vadd.f32 %v7077_v26, %v577_v8 }
  0xbc   : > { %v7233_v6 = vld [vmem:[#allocation2 + $0x14] sm:$0xf]  ;;  %1119 = vst.msk [vmem:[#allocation2 + $0x2c] sm:$0xf] %vm1111_vm2, %v6180_v60  ;;  %1118 = vst.msk [vmem:[#allocation2 + $0x28] sm:$0xf] %vm1111_vm2, %v6179_v61  ;;  %v5976_v14 = vcombine.low %v1198_v4, %v1157_v53  ;;  %v7247_v20 = vcombine.low %v1157_v53, %v1158_v7  ;;  %v578_v8 = vmul.f32 %v7063_v22, %v530_v34 }
  0xbd   : > { %v7242_v17 = vcombine.low %v7233_v6, %v1157_v53  ;;  %v6182_v25 = vpack.c.bf16 %v897_v12, %v897_v12  ;;  %v6181_v27 = vpack.c.bf16 %v896_v13, %v896_v13  ;;  %10405 = vst [vmem:[#allocation31_spill] sm:$0xff] %v7271_v50  ;;  %v663_v61 = vmax.f32 %v7250_v21, 0.0  ;;  %10409 = vst [vmem:[#allocation35_spill] sm:$0xff] %v7317_v43 }
  0xbe   : > { %1795 = vrot.lane.b32.xlu0 %v5976_v14, %s6573_s17  ;;  %v7263_v35 = vpop.permute.xlu1 %745  ;;  %v7265_v41 = vpop.permute.xlu0 %740  ;;  %v7268_v48 = vrot.slane %v7247_v20, 5  ;;  %v662_v4 = vmax.f32 %v7253_v24, 0.0 }
  0xbf   : > { %1645 = vrot.lane.b32.xlu1 %v7242_v17, %s6572_s30  ;;  %10403 = vst [vmem:[#allocation29_spill] sm:$0xff] %v7263_v35  ;;  %10404 = vst [vmem:[#allocation30_spill] sm:$0xff] %v7265_v41  ;;  %v1159_v42 = vld [vmem:[#allocation2 + $0x20] sm:$0xf]  ;;  %v1160_v49 = vld [vmem:[#allocation2 + $0x24] sm:$0xf]  ;;  %v899_v53 = vmul.f32 %v7263_v35, %v659_v0  ;;  %v898_v56 = vmul.f32 %v7265_v41, %v658_v1 }
  0xc0   : > { %1121 = vst.msk [vmem:[#allocation2 + $0x34] sm:$0xf] %vm1111_vm2, %v6182_v25  ;;  %1120 = vst.msk [vmem:[#allocation2 + $0x30] sm:$0xf] %vm1111_vm2, %v6181_v27  ;;  %v7281_v57 = vcombine.low %v1158_v7, %v1159_v42  ;;  %v7283_v60 = vcombine.low %v1159_v42, %v1160_v49  ;;  %v533_v1 = vld [vmem:[%s10243_s10 + $0xa8] sm:$0xff]  ;;  %v532_v7 = vld [vmem:[%s10243_s10 + $0xa0] sm:$0xff] }
  0xc1   : > { %v6184_v10 = vpack.c.bf16 %v899_v53, %v899_v53  ;;  %v6183_v12 = vpack.c.bf16 %v898_v56, %v898_v56  ;;  %v665_v25 = vmax.f32 %v7271_v50, 0.0  ;;  %v664_v27 = vmax.f32 %v7274_v51, 0.0 }
  0xc2   : > { %1647 = vrot.lane.b32.xlu0 %v7281_v57, %s6572_s30  ;;  %v10250_v0 = vrot.slane %v7283_v60, 5  ;;  %v7299_v13 = vpop.permute.xlu1 %755  ;;  %v7301_v14 = vpop.permute.xlu0 %750  ;;  %v2241_v34 = vshrl.u32 %v7268_v48, 16  ;;  %v2244_v42 = vshll.u32 %v7268_v48, 16 }
  0xc3   : > { %1797 = vrot.lane.b32.xlu1 %v7281_v57, %s6573_s17  ;;  %10407 = vst [vmem:[#allocation33_spill] sm:$0xff] %v7299_v13  ;;  %10408 = vst [vmem:[#allocation34_spill] sm:$0xff] %v7301_v14  ;;  %v7303_v19 = vld [vmem:[#allocation2 + $0x28] sm:$0xf]  ;;  %v901_v53 = vmul.f32 %v7299_v13, %v661_v28  ;;  %v900_v56 = vmul.f32 %v7301_v14, %v660_v31  ;;  %v580_v28 = vmul.f32 %v7063_v22, %v532_v7  ;;  %v7338_v24 = vld [vmem:[#allocation2 + $0x2c] sm:$0xf] }
  0xc4   : > { %1123 = vst.msk [vmem:[#allocation2 + $0x3c] sm:$0xf] %vm1111_vm2, %v6184_v10  ;;  %1122 = vst.msk [vmem:[#allocation2 + $0x38] sm:$0xf] %vm1111_vm2, %v6183_v12  ;;  %v7314_v11 = vcombine.low %v1160_v49, %v7303_v19  ;;  %v7323_v50 = vsel %vm1550_vm3, %v7268_v48, %v10250_v0  ;;  %v7326_v10 = vadd.f32 %v7077_v26, %v578_v8  ;;  %v2246_v54 = vrot.slane %v2244_v42, 4 }
  0xc5   : > { %v581_v12 = vmul.f32 %v7063_v22, %v533_v1  ;;  %v6186_v31 = vpack.c.bf16 %v901_v53, %v901_v53  ;;  %v6185_v51 = vpack.c.bf16 %v900_v56, %v900_v56  ;;  %v2249_v49 = vshrl.u32 %v7323_v50, 16 }
  0xc6   : > { %10410 = vst [vmem:[#allocation36_spill] sm:$0xff] %v7326_v10  ;;  %v2252_v52 = vshll.u32 %v7323_v50, 16  ;;  %v7334_v21 = vpop.permute.xlu1 %765  ;;  %v7336_v0 = vpop.permute.xlu0 %760  ;;  %v2243_v1 = vrot.slane %v2241_v34, 3  ;;  %v534_v34 = vld [vmem:[%s10243_s10 + $0xb0] sm:$0xff]  ;;  %v7366_v33 = vadd.f32 %v7077_v26, %v580_v28 }
  0xc7   : > { %1799 = vrot.lane.b32.xlu1 %v7314_v11, %s6573_s17  ;;  %10411 = vst [vmem:[#allocation37_spill] sm:$0xff] %v7334_v21  ;;  %10412 = vst [vmem:[#allocation38_spill] sm:$0xff] %v7336_v0  ;;  %v7340_v8 = vld [vmem:[#allocation2 + $0x30] sm:$0xf]  ;;  %v903_v7 = vmul.f32 %v7334_v21, %v663_v61  ;;  %v902_v53 = vmul.f32 %v7336_v0, %v662_v4  ;;  %v2251_v55 = vrot.slane %v2249_v49, 3  ;;  %v666_v49 = vmax.f32 %v7326_v10, 0.0 }
  0xc8   : > { %1125 = vst.msk [vmem:[#allocation2 + $0x44] sm:$0xf] %vm1111_vm2, %v6186_v31  ;;  %1124 = vst.msk [vmem:[#allocation2 + $0x40] sm:$0xf] %vm1111_vm2, %v6185_v51  ;;  %v7348_v56 = vcombine.low %v7338_v24, %v7340_v8  ;;  %v2254_v42 = vrot.slane %v2252_v52, 4  ;;  %v667_v51 = vmax.f32 %v7317_v43, 0.0  ;;  %v7358_v61 = vadd.f32 %v7077_v26, %v581_v12 }
  0xc9   : > { %v6188_v4 = vpack.c.bf16 %v903_v7, %v903_v7  ;;  %v6187_v31 = vpack.c.bf16 %v902_v53, %v902_v53  ;;  %10414 = vst [vmem:[#allocation40_spill] sm:$0xff] %v7366_v33  ;;  %v2247_v12 = vor.u32 %v2246_v54, %v2243_v1  ;;  %v1164_v7 = vld [vmem:[#allocation2 + $0x34] sm:$0xf]  ;;  %v582_v63 = vmul.f32 %v7063_v22, %v534_v34 }
  0xca   : > { %10413 = vst [vmem:[#allocation39_spill] sm:$0xff] %v7358_v61  ;;  %1801 = vrot.lane.b32.xlu0 %v7348_v56, %s6573_s17  ;;  %v7368_v18 = vpop.permute.xlu1 %775  ;;  %v7370_v52 = vpop.permute.xlu0 %770  ;;  %v7372_v43 = vor.u32 %v2254_v42, %v2251_v55  ;;  %v7387_v54 = vcombine.low %v7203_v38, %v7233_v6  ;;  %v7407_v42 = vadd.f32 %v7077_v26, %v583_v23 }
  0xcb   : > { %1649 = vrot.lane.b32.xlu1 %v7314_v11, %s6572_s30  ;;  %10415 = vst [vmem:[#allocation41_spill] sm:$0xff] %v7368_v18  ;;  %10416 = vst [vmem:[#allocation42_spill] sm:$0xff] %v7370_v52  ;;  %v7374_v53 = vld [vmem:[#allocation2 + $0x38] sm:$0xf]  ;;  %v905_v28 = vmul.f32 %v7368_v18, %v665_v25  ;;  %v904_v10 = vmul.f32 %v7370_v52, %v664_v27  ;;  %v669_v25 = vmax.f32 %v7358_v61, 0.0  ;;  %v668_v27 = vmax.f32 %v7366_v33, 0.0 }
  0xcc   : > { %1127 = vst.msk [vmem:[#allocation2 + $0x4c] sm:$0xf] %vm1111_vm2, %v6188_v4  ;;  %1126 = vst.msk [vmem:[#allocation2 + $0x48] sm:$0xf] %vm1111_vm2, %v6187_v31  ;;  %v7383_v5 = vcombine.low %v1164_v7, %v7374_v53  ;;  %v2256_v55 = vsel %vm2224_vm4, %v2247_v12, %v7372_v43  ;;  %v1552_v23 = vrot.slane %v7387_v54, 5  ;;  %v7421_v12 = vadd.f32 %v7077_v26, %v582_v63 }
  0xcd   : > { %v6190_v1 = vpack.c.bf16 %v905_v28, %v905_v28  ;;  %v6189_v34 = vpack.c.bf16 %v904_v10, %v904_v10  ;;  %5991 = vmatprep.mubr.msk.bf16.mxu0 %vm1896_vm5, %v2256_v55  ;;  %10419 = vst [vmem:[#allocation45_spill] sm:$0xff] %v7407_v42  ;;  %v585_v10 = vmul.f32 %v7063_v22, %v537_v32  ;;  %v539_v28 = vld [vmem:[%s10243_s10 + $0xd8] sm:$0xff]  ;;  %v671_v63 = vmax.f32 %v7407_v42, 0.0 }
  0xce   : > { %1651 = vrot.lane.b32.xlu0 %v7348_v56, %s6572_s30  ;;  %v7400_v38 = vpop.permute.xlu1 %785  ;;  %v7402_v6 = vpop.permute.xlu0 %780  ;;  %10420 = vst [vmem:[#allocation46_spill] sm:$0xff] %v7421_v12  ;;  %v6444_v32 = vld [vmem:[%s7413_s26 + $0x38] sm:$0xff]   ;;  %v670_v46 = vmax.f32 %v7421_v12, 0.0  ;;  %v587_v42 = vmul.f32 %v7063_v22, %v539_v28  ;;  %v7450_v47 = vcombine.low %v7340_v8, %v1164_v7  ;;  %v7466_v7 = vcombine.low %v7303_v19, %v7338_v24 }
  0xcf   : > { %1803 = vrot.lane.b32.xlu1 %v7383_v5, %s6573_s17  ;;  %10417 = vst [vmem:[#allocation43_spill] sm:$0xff] %v7400_v38  ;;  %10418 = vst [vmem:[#allocation44_spill] sm:$0xff] %v7402_v6  ;;  %v907_v4 = vmul.f32 %v7400_v38, %v667_v51  ;;  %v906_v31 = vmul.f32 %v7402_v6, %v666_v49  ;;  %2715 = vmatpush1.bf16.msra.mxu0 %v6444_v32  ;;  %v536_v32 = vld [vmem:[%s10243_s10 + $0xc0] sm:$0xff]  ;;  %v543_v8 = vld [vmem:[%s10243_s10 + $0xf8] sm:$0xff] }
  0xd0   : > { %1129 = vst.msk [vmem:[#allocation2 + $0x54] sm:$0xf] %vm1111_vm2, %v6190_v1  ;;  %1128 = vst.msk [vmem:[#allocation2 + $0x50] sm:$0xf] %vm1111_vm2, %v6189_v34  ;;  %v7436_v1 = vadd.f32 %v7077_v26, %v585_v10  ;;  %v540_v34 = vld [vmem:[%s10243_s10 + $0xe0] sm:$0xff]  ;;  %v10424_v10 = vmov 0  }
  0xd1   : > { %v6192_v55 = vpack.c.bf16 %v907_v4, %v907_v4  ;;  %v6191_v61 = vpack.c.bf16 %v906_v31, %v906_v31  ;;  %v6445_v4 = vld [vmem:[%s7413_s26 + $0x30] sm:$0xff]   ;;  %2716 = vmatprep.subr.bf16.mxu0 %v10424_v10 }
  0xd2   : > { %1744 = vrot.lane.b32.xlu0 %v1552_v23, %s6574_s11  ;;  %v7430_v51 = vpop.permute.xlu1 %795  ;;  %v7432_v49 = vpop.permute.xlu0 %790  ;;  %10423 = vst [vmem:[#allocation49_spill] sm:$0xff] %v7436_v1 }
  0xd3   : > { %1653 = vrot.lane.b32.xlu1 %v7383_v5, %s6572_s30  ;;  %10421 = vst [vmem:[#allocation47_spill] sm:$0xff] %v7430_v51  ;;  %10422 = vst [vmem:[#allocation48_spill] sm:$0xff] %v7432_v49  ;;  %v909_v31 = vmul.f32 %v7430_v51, %v669_v25  ;;  %v908_v33 = vmul.f32 %v7432_v49, %v668_v27  ;;  %v588_v27 = vmul.f32 %v7063_v22, %v540_v34  ;;  %v538_v34 = vld [vmem:[%s10243_s10 + $0xd0] sm:$0xff] }
  0xd4   : > { %1131 = vst.msk [vmem:[#allocation2 + $0x5c] sm:$0xf] %vm1111_vm2, %v6192_v55  ;;  %1130 = vst.msk [vmem:[#allocation2 + $0x58] sm:$0xf] %vm1111_vm2, %v6191_v61  ;;  %v10425_v61 = vrot.slane %v6993_v62, 5  ;;  %v673_v62 = vmax.f32 %v7436_v1, 0.0  ;;  %2717 = vmatpush1.bf16.msra.mxu0 %v6445_v4  ;;  %v591_v4 = vmul.f32 %v7063_v22, %v543_v8 }
  0xd5   : > { %v6194_v55 = vpack.c.bf16 %v909_v31, %v909_v31  ;;  %v6193_v39 = vpack.c.bf16 %v908_v33, %v908_v33  ;;  %v7482_v31 = vadd.f32 %v7077_v26, %v587_v42  ;;  %2718 = vmatprep.subr.bf16.mxu0 %v10424_v10  ;;  %v544_v42 = vld [vmem:[%s10243_s10 + $0x100] sm:$0xff]  ;;  %v1558_v8 = vrot.slane %v7466_v7, 5  ;;  %v6451_v49 = vld [vmem:[%s7413_s26 + $0x10] sm:$0xff]  }
  0xd6   : > { %1748 = vrot.lane.b32.xlu0 %v7323_v50, %s6574_s11  ;;  %v1553_v25 = vsel %vm1550_vm3, %v10425_v61, %v1552_v23  ;;  %v7469_v33 = vpop.permute.xlu1 %805  ;;  %v7471_v28 = vpop.permute.xlu0 %800  ;;  %v584_v61 = vmul.f32 %v7063_v22, %v536_v32  ;;  %v7525_v40 = vadd.f32 %v7077_v26, %v591_v4 }
  0xd7   : > { %1594 = vrot.lane.b32.xlu1 %v1553_v25, %s6571_s22  ;;  %10426 = vst [vmem:[#allocation50_spill] sm:$0xff] %v7469_v33  ;;  %10427 = vst [vmem:[#allocation51_spill] sm:$0xff] %v7471_v28  ;;  %v911_v24 = vmul.f32 %v7469_v33, %v671_v63  ;;  %v910_v19 = vmul.f32 %v7471_v28, %v670_v46  ;;  %v6446_v25 = vld [vmem:[%s7413_s26 + $0x28] sm:$0xff]   ;;  %v7494_v46 = vadd.f32 %v7077_v26, %v588_v27 }
  0xd8   : > { %1133 = vst.msk [vmem:[#allocation2 + $0x64] sm:$0xf] %vm1111_vm2, %v6194_v55  ;;  %1132 = vst.msk [vmem:[#allocation2 + $0x60] sm:$0xf] %vm1111_vm2, %v6193_v39  ;;  %v1555_v39 = vsel %vm1550_vm3, %v1552_v23, %v7268_v48  ;;  %v1338_v48 = vshll.u32 %v7387_v54, 16  ;;  %v586_v23 = vmul.f32 %v7063_v22, %v538_v34  ;;  %v541_v27 = vld [vmem:[%s10243_s10 + $0xe8] sm:$0xff]  ;;  %v7516_v1 = vadd.f32 %v7077_v26, %v584_v61 }
  0xd9   : > { %10428 = vst [vmem:[#allocation52_spill] sm:$0xff] %v7482_v31  ;;  %v6196_v12 = vpack.c.bf16 %v911_v24, %v911_v24  ;;  %v6195_v55 = vpack.c.bf16 %v910_v19, %v910_v19  ;;  %10429 = vst [vmem:[#allocation53_spill] sm:$0xff] %v7494_v46  ;;  %v675_v19 = vmax.f32 %v7482_v31, 0.0  ;;  %2719 = vmatpush1.bf16.msra.mxu0 %v6446_v25  ;;  %v7532_v25 = vld [vmem:[#allocation2 + $0x3c] sm:$0xf] }
  0xda   : > { %1598 = vrot.lane.b32.xlu0 %v7323_v50, %s6571_s22  ;;  %v7500_v63 = vpop.permute.xlu1 %815  ;;  %v7502_v32 = vpop.permute.xlu0 %1505  ;;  %v1335_v50 = vshrl.u32 %v7387_v54, 16  ;;  %10431 = vst [vmem:[#allocation55_spill] sm:$0xff] %v7516_v1  ;;  %v10432_v54 = vrot.slane %v7450_v47, 5  ;;  %10433 = vst [vmem:[#allocation56_spill] sm:$0xff] %v7525_v40  ;;  %2720 = vmatprep.subr.bf16.mxu0 %v10424_v10  ;;  %v592_v61 = vmul.f32 %v7063_v22, %v544_v42  ;;  %v1340_v31 = vrot.slane %v1338_v48, 5 }
  0xdb   : > { %1746 = vrot.lane.b32.xlu1 %v1555_v39, %s6574_s11  ;;  %10430 = vst [vmem:[#allocation54_spill] sm:$0xff] %v7500_v63  ;;  %1135 = vst.msk [vmem:[#allocation2 + $0x6c] sm:$0xf] %vm1111_vm2, %v6196_v12  ;;  %v913_v24 = vmul.f32 %v7500_v63, %v673_v62  ;;  %v676_v62 = vmax.f32 %v7494_v46, 0.0  ;;  %v7540_v30 = vadd.f32 %v7077_v26, %v586_v23  ;;  %v672_v46 = vmax.f32 %v7516_v1, 0.0 }
  0xdc   : > { %1134 = vst.msk [vmem:[#allocation2 + $0x68] sm:$0xf] %vm1111_vm2, %v6195_v55  ;;  %v7522_v34 = vsel %vm1550_vm3, %v1558_v8, %v10432_v54  ;;  %v1337_v4 = vrot.slane %v1335_v50, 4  ;;  %v1347_v63 = vshll.u32 %v7247_v20, 16  ;;  %v542_v50 = vld [vmem:[%s10243_s10 + $0xf0] sm:$0xff]  ;;  %v679_v48 = vmax.f32 %v7525_v40, 0.0 }
  0xdd   : > { %v6198_v12 = vpack.c.bf16 %v913_v24, %v913_v24  ;;  %10435 = vst [vmem:[#allocation58_spill] sm:$0xff] %v7540_v30  ;;  %v589_v24 = vmul.f32 %v7063_v22, %v541_v27  ;;  %2721 = vmatpush1.bf16.msra.mxu0 %v6447_v29  ;;  %v7555_v23 = vcombine.low %v7374_v53, %v7532_v25  ;;  %v674_v1 = vmax.f32 %v7540_v30, 0.0 }
  0xde   : > { %1752 = vrot.lane.b32.xlu0 %v7522_v34, %s6574_s11  ;;  %v7535_v55 = vpop.permute.xlu1 %825  ;;  %v7537_v54 = vpop.permute.xlu0 %1592  ;;  %2722 = vmatprep.subr.bf16.mxu0 %v10424_v10  ;;  %v7565_v29 = vadd.f32 %v7077_v26, %v592_v61  ;;  %v1349_v33 = vrot.slane %v1347_v63, 5 }
  0xdf   : > { %1596 = vrot.lane.b32.xlu1 %v1555_v39, %s6571_s22  ;;  %10434 = vst [vmem:[#allocation57_spill] sm:$0xff] %v7535_v55  ;;  %1137 = vst.msk [vmem:[#allocation2 + $0x74] sm:$0xf] %vm1111_vm2, %v6198_v12  ;;  %v915_v42 = vmul.f32 %v7535_v55, %v675_v19  ;;  %v1344_v39 = vshrl.u32 %v7247_v20, 16  ;;  %v10436_v19 = vrot.slane %v7283_v60, 5  ;;  %v6449_v12 = vld [vmem:[%s7413_s26 + $0x18] sm:$0xff]   ;;  %v7578_v55 = vadd.f32 %v7077_v26, %v589_v24 }
  0xe0   : > { %10437 = vst [vmem:[#allocation59_spill] sm:$0xff] %v7565_v29  ;;  %v545_v24 = vld [vmem:[%s10243_s10 + $0x108] sm:$0xff]  ;;  %v680_v63 = vmax.f32 %v7565_v29, 0.0 }
  0xe1   : > { %v6200_v27 = vpack.c.bf16 %v915_v42, %v915_v42  ;;  %v7562_v20 = vsel %vm1550_vm3, %v10436_v19, %v1558_v8  ;;  %v7574_v42 = vor.u32 %v1340_v31, %v1337_v4  ;;  %10440 = vst [vmem:[#allocation62_spill] sm:$0xff] %v7578_v55  ;;  %v590_v8 = vmul.f32 %v7063_v22, %v542_v50 }
  0xe2   : > { %1602 = vrot.lane.b32.xlu0 %v7522_v34, %s6571_s22  ;;  %v7570_v40 = vpop.permute.xlu1 %830  ;;  %v7572_v53 = vpop.permute.xlu0 %810  ;;  %v1346_v51 = vrot.slane %v1344_v39, 4  ;;  %2723 = vmatpush1.bf16.msra.mxu0 %v6449_v12  ;;  %v1362_v31 = vshrl.u32 %v7466_v7, 16  ;;  %v1365_v4 = vshll.u32 %v7466_v7, 16  ;;  %v677_v39 = vmax.f32 %v7578_v55, 0.0  ;;  %v6452_v55 = vld [vmem:[%s7413_s26 + $0x8] sm:$0xff]  }
  0xe3   : > { %1750 = vrot.lane.b32.xlu1 %v7562_v20, %s6574_s11  ;;  %10438 = vst [vmem:[#allocation60_spill] sm:$0xff] %v7570_v40  ;;  %10439 = vst [vmem:[#allocation61_spill] sm:$0xff] %v7572_v53  ;;  %v916_v61 = vmul.f32 %v7570_v40, %v676_v62  ;;  %v912_v19 = vmul.f32 %v7572_v53, %v672_v46  ;;  %2724 = vmatprep.subr.bf16.mxu0 %v10424_v10 }
  0xe4   : > { %1139 = vst.msk [vmem:[#allocation2 + $0x7c] sm:$0xf] %vm1111_vm2, %v6200_v27  ;;  %v7603_v12 = vadd.f32 %v7077_v26, %v590_v8  ;;  %v7611_v30 = vor.u32 %v1349_v33, %v1346_v51  ;;  %v593_v40 = vmul.f32 %v7063_v22, %v545_v24  ;;  %v1364_v8 = vrot.slane %v1362_v31, 4 }
  0xe5   : > { %v6201_v50 = vpack.c.bf16 %v916_v61, %v916_v61  ;;  %v6197_v27 = vpack.c.bf16 %v912_v19, %v912_v19  ;;  %v1353_v61 = vshrl.u32 %v7283_v60, 16  ;;  %v1356_v19 = vshll.u32 %v7283_v60, 16 }
  0xe6   : > { %1695 = vrot.lane.b32.xlu0 %v7574_v42, %s6575_s12  ;;  %v7597_v7 = vpop.permute.xlu1 %845  ;;  %v7599_v62 = vpop.permute.xlu0 %820  ;;  %10443 = vst [vmem:[#allocation65_spill] sm:$0xff] %v7603_v12  ;;  %2725 = vmatpush1.bf16.msra.mxu0 %v6451_v49  ;;  %v1367_v53 = vrot.slane %v1365_v4, 5  ;;  %v678_v33 = vmax.f32 %v7603_v12, 0.0  ;;  %v2266_v4 = vshrl.u32 %v7562_v20, 16 }
  0xe7   : > { %1600 = vrot.lane.b32.xlu1 %v7562_v20, %s6571_s22  ;;  %10441 = vst [vmem:[#allocation63_spill] sm:$0xff] %v7597_v7  ;;  %10442 = vst [vmem:[#allocation64_spill] sm:$0xff] %v7599_v62  ;;  %v919_v46 = vmul.f32 %v7597_v7, %v679_v48  ;;  %v914_v29 = vmul.f32 %v7599_v62, %v674_v1  ;;  %2726 = vmatprep.subr.bf16.mxu0 %v10424_v10  ;;  %v10444_v48 = vrot.slane %v7555_v23, 5 }
  0xe8   : > { %1140 = vst.msk [vmem:[#allocation2 + $0x80] sm:$0xf] %vm1111_vm2, %v6201_v50  ;;  %1136 = vst.msk [vmem:[#allocation2 + $0x70] sm:$0xf] %vm1111_vm2, %v6197_v27  ;;  %v10445_v1 = vrot.slane %v7450_v47, 5  ;;  %v1358_v31 = vrot.slane %v1356_v19, 5  ;;  %v7638_v27 = vadd.f32 %v7077_v26, %v593_v40  ;;  %v1368_v19 = vor.u32 %v1367_v53, %v1364_v8 }
  0xe9   : > { %v6204_v28 = vpack.c.bf16 %v919_v46, %v919_v46  ;;  %v6199_v60 = vpack.c.bf16 %v914_v29, %v914_v29  ;;  %v1355_v29 = vrot.slane %v1353_v61, 4  ;;  %v2269_v46 = vshll.u32 %v7562_v20, 16  ;;  %v6455_v20 = vld [vmem:[%s7413_s26] sm:$0xff]  }
  0xea   : > { %1847 = vrot.lane.b32.xlu0 %v7611_v30, %s6576_s20  ;;  %v7623_v51 = vsel %vm1550_vm3, %v10445_v1, %v10444_v48  ;;  %v7627_v22 = vpop.permute.xlu1 %850  ;;  %v7629_v49 = vpop.permute.xlu0 %835  ;;  %10448 = vst [vmem:[#allocation68_spill] sm:$0xff] %v7638_v27  ;;  %2727 = vmatpush1.bf16.msra.mxu0 %v6452_v55  ;;  %v1351_v61 = vsel %vm1325_vm6, %v7574_v42, %v7611_v30  ;;  %v6456_v1 = vld [vmem:[%s7413_s26 + $0x40] sm:$0xff]  }
  0xeb   : > { %1754 = vrot.lane.b32.xlu1 %v7623_v51, %s6574_s11  ;;  %10446 = vst [vmem:[#allocation66_spill] sm:$0xff] %v7627_v22  ;;  %10447 = vst [vmem:[#allocation67_spill] sm:$0xff] %v7629_v49  ;;  %v920_v24 = vmul.f32 %v7627_v22, %v680_v63  ;;  %v917_v50 = vmul.f32 %v7629_v49, %v677_v39  ;;  %2728 = vmatprep.subr.bf16.mxu0 %v10424_v10  ;;  %v2268_v63 = vrot.slane %v2266_v4, 3  ;;  %v1175_v22 = vld [vmem:[#allocation2 + $0x60] sm:$0xf] }
  0xec   : > { %1143 = vst.msk [vmem:[#allocation2 + $0x8c] sm:$0xf] %vm1111_vm2, %v6204_v28  ;;  %1138 = vst.msk [vmem:[#allocation2 + $0x78] sm:$0xf] %vm1111_vm2, %v6199_v60  ;;  %v1342_v26 = vsel %vm1325_vm6, %v7015_v9, %v7574_v42  ;;  %v1359_v55 = vor.u32 %v1358_v31, %v1355_v29  ;;  %v681_v39 = vmax.f32 %v7638_v27, 0.0  ;;  %v2271_v8 = vrot.slane %v2269_v46, 4 }
  0xed   : > { %v6205_v28 = vpack.c.bf16 %v920_v24, %v920_v24  ;;  %v6202_v60 = vpack.c.bf16 %v917_v50, %v917_v50  ;;  %v1380_v9 = vshrl.u32 %v7555_v23, 16  ;;  %v1383_v42 = vshll.u32 %v7555_v23, 16  ;;  %v7806_v49 = vld [vmem:[#allocation2 + $0x64] sm:$0xf] }
  0xee   : > { %1509 = vrot.lane.b32.xlu0 %v1351_v61, %s6570_s19  ;;  %v7650_v40 = vpop.permute.xlu0 %840  ;;  %v1369_v48 = vsel %vm1325_vm6, %v1359_v55, %v1368_v19  ;;  %2729 = vmatpush1.bf16.msra.mxu0 %v6455_v20  ;;  %v2283_v29 = vshrl.u32 %v7522_v34, 16  ;;  %v1371_v24 = vshrl.u32 %v7450_v47, 16  ;;  %v1374_v50 = vshll.u32 %v7450_v47, 16 }
  0xef   : > { %1507 = vrot.lane.b32.xlu1 %v1342_v26, %s6570_s19  ;;  %10449 = vst [vmem:[#allocation69_spill] sm:$0xff] %v7650_v40  ;;  %1144 = vst.msk [vmem:[#allocation2 + $0x90] sm:$0xf] %vm1111_vm2, %v6205_v28  ;;  %v918_v53 = vmul.f32 %v7650_v40, %v678_v33  ;;  %2744 = vmatprep.subr.bf16.mxu0 %v10424_v10  ;;  %v2286_v33 = vshll.u32 %v7522_v34, 16  ;;  %v1382_v28 = vrot.slane %v1380_v9, 4 }
  0xf0   : > { %1141 = vst.msk [vmem:[#allocation2 + $0x84] sm:$0xf] %vm1111_vm2, %v6202_v60  ;;  %v1385_v60 = vrot.slane %v1383_v42, 5  ;;  %v2272_v26 = vor.u32 %v2271_v8, %v2268_v63  ;;  %v2285_v20 = vrot.slane %v2283_v29, 3  ;;  %v1360_v34 = vsel %vm1325_vm6, %v7611_v30, %v1359_v55  ;;  %v1167_v8 = vld [vmem:[#allocation2 + $0x40] sm:$0xf] }
  0xf1   : > { %v6203_v31 = vpack.c.bf16 %v918_v53, %v918_v53  ;;  %v1373_v27 = vrot.slane %v1371_v24, 4  ;;  %v1376_v47 = vrot.slane %v1374_v50, 5  ;;  %v1168_v9 = vld [vmem:[#allocation2 + $0x44] sm:$0xf]  ;;  %v7700_v29 = vcombine.low %v7532_v25, %v1167_v8  ;;  %v1169_v50 = vld [vmem:[#allocation2 + $0x48] sm:$0xf] }
  0xf2   : > { %1851 = vrot.lane.b32.xlu0 %v1369_v48, %s6576_s20  ;;  %v7666_v4 = vpop.permute.xlu0 %855  ;;  %2745 = vmatpush2.bf16.msra.mxu0 %v6456_v1  ;;  %v506_v25 = vld [vmem:[%s10234_s1 + $0x110] sm:$0xff] }
  0xf3   : > { %1697 = vrot.lane.b32.xlu1 %v1351_v61, %s6575_s12  ;;  %10450 = vst [vmem:[#allocation70_spill] sm:$0xff] %v7666_v4  ;;  %1142 = vst.msk [vmem:[#allocation2 + $0x88] sm:$0xf] %vm1111_vm2, %v6203_v31  ;;  %v921_v46 = vmul.f32 %v7666_v4, %v681_v39  ;;  %v2288_v61 = vrot.slane %v2286_v33, 4  ;;  %v7678_v31 = vsel %vm2224_vm4, %v7372_v43, %v2272_v26 }
  0xf4   : > { %v1386_v39 = vor.u32 %v1385_v60, %v1382_v28  ;;  %v1377_v63 = vor.u32 %v1376_v47, %v1373_v27  ;;  %v7691_v43 = vcombine.low %v1167_v8, %v1168_v9  ;;  %v507_v47 = vld [vmem:[%s10234_s1 + $0x118] sm:$0xff] }
  0xf5   : > { %v6206_v53 = vpack.c.bf16 %v921_v46, %v921_v46  ;;  %v7683_v30 = vor.u32 %v2288_v61, %v2285_v20  ;;  %v1170_v46 = vld [vmem:[#allocation2 + $0x4c] sm:$0xf] }
  0xf6   : > { %1701 = vrot.lane.b32.xlu0 %v1369_v48, %s6575_s12  ;;  %v1387_v55 = vsel %vm1325_vm6, %v1377_v63, %v1386_v39  ;;  %v1378_v27 = vsel %vm1325_vm6, %v1368_v19, %v1377_v63  ;;  %v1392_v1 = vshll.u32 %v7691_v43, 16  ;;  %v7705_v28 = vcombine.low %v1169_v50, %v1170_v46 }
  0xf7   : > { %1849 = vrot.lane.b32.xlu1 %v1360_v34, %s6576_s20  ;;  %1145 = vst.msk [vmem:[#allocation2 + $0x94] sm:$0xf] %vm1111_vm2, %v6206_v53  ;;  %v7688_v42 = vsel %vm2224_vm4, %v2272_v26, %v7683_v30  ;;  %v1564_v53 = vrot.slane %v7691_v43, 5  ;;  %v10451_v63 = vrot.slane %v7555_v23, 5  ;;  %v509_v23 = vld [vmem:[%s10234_s1 + $0x128] sm:$0xff] }
  0xf8   : > { %v1394_v24 = vrot.slane %v1392_v1, 5  ;;  %v1398_v60 = vshrl.u32 %v7705_v28, 16  ;;  %v1401_v26 = vshll.u32 %v7705_v28, 16 }
  0xfa   : > { %1513 = vrot.lane.b32.xlu0 %v1369_v48, %s6570_s19  ;;  %v1389_v48 = vshrl.u32 %v7691_v43, 16  ;;  %v1403_v61 = vrot.slane %v1401_v26, 5  ;;  %v7734_v43 = vcombine.low %v1168_v9, %v1169_v50  ;;  %v508_v9 = vld [vmem:[%s10234_s1 + $0x120] sm:$0xff] }
  0xfb   : > { %1699 = vrot.lane.b32.xlu1 %v1360_v34, %s6575_s12 }
  0xfc   : > { %v1391_v33 = vrot.slane %v1389_v48, 4  ;;  %v1172_v48 = vld [vmem:[#allocation2 + $0x54] sm:$0xf] }
  0xfe   : > { %1855 = vrot.lane.b32.xlu0 %v1387_v55, %s6576_s20  ;;  %v1395_v19 = vor.u32 %v1394_v24, %v1391_v33 }
  0xff   : > { %1511 = vrot.lane.b32.xlu1 %v1360_v34, %s6570_s19  ;;  %v1400_v34 = vrot.slane %v1398_v60, 4 }
 0x100   : > { %v1396_v20 = vsel %vm1325_vm6, %v1386_v39, %v1395_v19  ;;  %v7727_v39 = vsel %vm1550_vm3, %v10451_v63, %v1564_v53 }
 0x101   : > { %v1404_v8 = vor.u32 %v1403_v61, %v1400_v34 }
 0x102   : > { %1705 = vrot.lane.b32.xlu0 %v1387_v55, %s6575_s12 }
 0x103   : > { %1853 = vrot.lane.b32.xlu1 %v1378_v27, %s6576_s20 }
 0x106   : > { %1805 = vrot.lane.b32.xlu0 %v7700_v29, %s6573_s17 }
 0x107   : > { %1703 = vrot.lane.b32.xlu1 %v1378_v27, %s6575_s12 }
 0x10a   : > { %1517 = vrot.lane.b32.xlu0 %v1387_v55, %s6570_s19  ;;  %v1405_v55 = vsel %vm1325_vm6, %v1395_v19, %v1404_v8  ;;  %v1173_v19 = vld [vmem:[#allocation2 + $0x58] sm:$0xf] }
 0x10b   : > { %1515 = vrot.lane.b32.xlu1 %v1378_v27, %s6570_s19  ;;  %v1171_v27 = vld [vmem:[#allocation2 + $0x50] sm:$0xf] }
 0x10c   : > { %v7743_v1 = vcombine.low %v1171_v27, %v1172_v48  ;;  %v7752_v50 = vcombine.low %v1170_v46, %v1171_v27 }
 0x10e   : > { %860 = vperm.xlu0 %6424, %v506_v25   ;;  %v1407_v33 = vshrl.u32 %v7743_v1, 16  ;;  %v1410_v24 = vshll.u32 %v7743_v1, 16  ;;  %v1566_v25 = vrot.slane %v7705_v28, 5  ;;  %v510_v28 = vld [vmem:[%s10234_s1 + $0x130] sm:$0xff] }
 0x10f   : > { %1857 = vrot.lane.b32.xlu1 %v1396_v20, %s6576_s20 }
 0x110   : > { %v1409_v60 = vrot.slane %v1407_v33, 4  ;;  %v1412_v26 = vrot.slane %v1410_v24, 5  ;;  %v1568_v33 = vrot.slane %v7743_v1, 5 }
 0x112   : > { %1655 = vrot.lane.b32.xlu0 %v7700_v29, %s6572_s30  ;;  %v1413_v46 = vor.u32 %v1412_v26, %v1409_v60 }
 0x113   : > { %1604 = vrot.lane.b32.xlu1 %v7623_v51, %s6571_s22 }
 0x116   : > { %1756 = vrot.lane.b32.xlu0 %v7727_v39, %s6574_s11 }
 0x117   : > { %865 = vperm.xlu1 %6425, %v507_v47   ;;  %v7764_v47 = vsel %vm1550_vm3, %v1564_v53, %v1566_v25  ;;  %v1414_v53 = vsel %vm1325_vm6, %v1404_v8, %v1413_v46  ;;  %v511_v8 = vld [vmem:[%s10234_s1 + $0x138] sm:$0xff] }
 0x11a   : > { %1859 = vrot.lane.b32.xlu0 %v1405_v55, %s6576_s20 }
 0x11b   : > { %1707 = vrot.lane.b32.xlu1 %v1396_v20, %s6575_s12 }
 0x11e   : > { %1606 = vrot.lane.b32.xlu0 %v7727_v39, %s6571_s22 }
 0x11f   : > { %1807 = vrot.lane.b32.xlu1 %v7734_v43, %s6573_s17 }
 0x122   : > { %875 = vperm.xlu0 %6424, %v509_v23  }
 0x123   : > { %1519 = vrot.lane.b32.xlu1 %v1396_v20, %s6570_s19  ;;  %v1174_v20 = vld [vmem:[#allocation2 + $0x5c] sm:$0xf] }
 0x124   : > { %v7761_v61 = vcombine.low %v1173_v19, %v1174_v20  ;;  %v7831_v38 = vcombine.low %v1174_v20, %v1175_v22 }
 0x126   : > { %1709 = vrot.lane.b32.xlu0 %v1405_v55, %s6575_s12  ;;  %v1416_v23 = vshrl.u32 %v7761_v61, 16  ;;  %v1419_v27 = vshll.u32 %v7761_v61, 16  ;;  %10453 = vst [vmem:[#allocation72_spill] sm:$0xff] %v7831_v38  ;;  %v1570_v13 = vrot.slane %v7761_v61, 5  ;;  %v1152_v61 = vld [vmem:[#allocation2 + $0x4] sm:$0x8] }
 0x127   : > { %870 = vperm.xlu1 %6425, %v508_v9   ;;  %v5929_v16 = vcombine.low %v1152_v61, %v6534_v36 }
 0x128   : > { %v1418_v24 = vrot.slane %v1416_v23, 4  ;;  %v1421_v60 = vrot.slane %v1419_v27, 5  ;;  %v7850_v2 = vsel %vm1550_vm3, %v1568_v33, %v1570_v13 }
 0x129   : > { %v1899_v36 = vsel %vm1896_vm5, %v5929_v16, %v7502_v32  ;;  %v1179_v32 = vld [vmem:[#allocation2 + $0x70] sm:$0xf] }
 0x12a   : > { %1809 = vrot.lane.b32.xlu0 %v7752_v50, %s6573_s17  ;;  %v1422_v1 = vor.u32 %v1421_v60, %v1418_v24  ;;  %v7812_v60 = vcombine.low %v1172_v48, %v1173_v19  ;;  %v1177_v48 = vld [vmem:[#allocation2 + $0x68] sm:$0xf]  ;;  %v7826_v19 = vld [vmem:[#allocation2 + $0x6c] sm:$0xf] }
 0x12b   : > { %1657 = vrot.lane.b32.xlu1 %v7734_v43, %s6572_s30  ;;  %v7836_v6 = vcombine.low %v1177_v48, %v7826_v19 }
 0x12c   : > { %v7759_v34 = vpop.permute.xlu0 %1643  ;;  %v1423_v4 = vsel %vm1325_vm6, %v1413_v46, %v1422_v1  ;;  %10452 = vst [vmem:[#allocation71_spill] sm:$0xff] %v7812_v60 }
 0x12d   : > { %v1437_v20 = vshll.u32 %v7836_v6, 16 }
 0x12e   : > { %1521 = vrot.lane.b32.xlu0 %v1405_v55, %s6570_s19 }
 0x12f   : > { %1758 = vrot.lane.b32.xlu1 %v7764_v47, %s6574_s11  ;;  %v1439_v15 = vrot.slane %v1437_v20, 5  ;;  %v1962_v20 = vsel %vm1960_vm7, %v1899_v36, %v7537_v54  ;;  %v7895_v54 = vcombine.low %v7806_v49, %v1177_v48  ;;  %v7897_v36 = vld [vmem:[#allocation2 + $0x74] sm:$0xf] }
 0x130   : > { %v7776_v9 = vpop.permute.xlu0 %1795  ;;  %v2005_v16 = vsel %vm2003_vm8, %v1962_v20, %v7759_v34  ;;  %v7903_v34 = vcombine.low %v1179_v32, %v7897_v36  ;;  %v6536_v20 = vld [vmem:[#allocation2 + $0x10] sm:$0xf] }
 0x131   : > { %v7772_v63 = vpop.permute.xlu1 %1645  ;;  %10454 = vst [vmem:[#allocation73_spill] sm:$0xff] %v7895_v54 }
 0x132   : > { %880 = vperm.xlu0 %6424, %v510_v28   ;;  %v7795_v28 = vsel %vm1550_vm3, %v1566_v25, %v1568_v33  ;;  %v1443_v59 = vshrl.u32 %v7903_v34, 16  ;;  %v1446_v58 = vshll.u32 %v7903_v34, 16 }
 0x133   : > { %1861 = vrot.lane.b32.xlu1 %v1414_v53, %s6576_s20 }
 0x134   : > { %v7787_v26 = vpop.permute.xlu0 %1647 }
 0x135   : > { %v7780_v55 = vpop.permute.xlu1 %1797 }
 0x136   : > { %1659 = vrot.lane.b32.xlu0 %v7752_v50, %s6572_s30 }
 0x137   : > { %1608 = vrot.lane.b32.xlu1 %v7764_v47, %s6571_s22 }
 0x139   : > { %v7789_v12 = vpop.permute.xlu1 %1799 }
 0x13a   : > { %1760 = vrot.lane.b32.xlu0 %v7795_v28, %s6574_s11 }
 0x13b   : > { %885 = vperm.xlu1 %6425, %v511_v8   ;;  %v7817_v8 = vcombine.low %v1175_v22, %v7806_v49  ;;  %v1434_v22 = vshrl.u32 %v7836_v6, 16 }
 0x13c   : > { %v7801_v27 = vpop.permute.xlu0 %1801 }
 0x13d   : > { %v7799_v23 = vpop.permute.xlu1 %1649  ;;  %v1425_v40 = vshrl.u32 %v7817_v8, 16  ;;  %v1428_v62 = vshll.u32 %v7817_v8, 16  ;;  %v10340_v3 = vrot.slane %v7817_v8, 5  ;;  %v1436_v41 = vrot.slane %v1434_v22, 4 }
 0x13e   : > { %1863 = vrot.lane.b32.xlu0 %v1423_v4, %s6576_s20 }
 0x13f   : > { %1711 = vrot.lane.b32.xlu1 %v1414_v53, %s6575_s12  ;;  %v1427_v21 = vrot.slane %v1425_v40, 4  ;;  %v1430_v14 = vrot.slane %v1428_v62, 5  ;;  %v7873_v22 = vor.u32 %v1439_v15, %v1436_v41 }
 0x140   : > { %v7808_v25 = vpop.permute.xlu0 %1651 }
 0x141   : > { %v7810_v24 = vpop.permute.xlu1 %1803  ;;  %v1431_v35 = vor.u32 %v1430_v14, %v1427_v21 }
 0x142   : > { %1610 = vrot.lane.b32.xlu0 %v7795_v28, %s6571_s22 }
 0x143   : > { %1811 = vrot.lane.b32.xlu1 %v7812_v60, %s6573_s17  ;;  %v1432_v33 = vsel %vm1325_vm6, %v1422_v1, %v1431_v35  ;;  %v1441_v15 = vsel %vm1325_vm6, %v1431_v35, %v7873_v22 }
 0x144   : > { %v1745_v46 = vpop.permute.xlu0 %1744 }
 0x145   : > { %v7821_v7 = vpop.permute.xlu1 %1653 }
 0x146   : > { %1713 = vrot.lane.b32.xlu0 %v1423_v4, %s6575_s12 }
 0x147   : > { %1523 = vrot.lane.b32.xlu1 %v1414_v53, %s6570_s19 }
 0x148   : > { %v7829_v18 = vpop.permute.xlu0 %1748 }
 0x149   : > { %v7833_v52 = vpop.permute.xlu1 %1594 }
 0x14a   : > { %1813 = vrot.lane.b32.xlu0 %v7831_v38, %s6573_s17 }
 0x14b   : > { %1661 = vrot.lane.b32.xlu1 %v7812_v60, %s6572_s30 }
 0x14c   : > { %v7843_v53 = vpop.permute.xlu0 %1598 }
 0x14d   : > { %v7845_v0 = vpop.permute.xlu1 %1746 }
 0x14e   : > { %1525 = vrot.lane.b32.xlu0 %v1423_v4, %s6570_s19  ;;  %v7871_v4 = vsel %vm1550_vm3, %v1570_v13, %v10340_v3 }
 0x14f   : > { %1762 = vrot.lane.b32.xlu1 %v7850_v2, %s6574_s11 }
 0x150   : > { %v7855_v62 = vpop.permute.xlu0 %1752 }
 0x151   : > { %v7857_v40 = vpop.permute.xlu1 %1596 }
 0x152   : > { %1663 = vrot.lane.b32.xlu0 %v7831_v38, %s6572_s30  ;;  %v1576_v38 = vrot.slane %v7903_v34, 5 }
 0x153   : > { %1865 = vrot.lane.b32.xlu1 %v1432_v33, %s6576_s20 }
 0x154   : > { %v7864_v21 = vpop.permute.xlu0 %1602 }
 0x155   : > { %v7866_v14 = vpop.permute.xlu1 %1750 }
 0x156   : > { %1764 = vrot.lane.b32.xlu0 %v7871_v4, %s6574_s11 }
 0x157   : > { %1612 = vrot.lane.b32.xlu1 %v7850_v2, %s6571_s22 }
 0x158   : > { %v1696_v1 = vpop.permute.xlu0 %1695 }
 0x159   : > { %v7883_v13 = vpop.permute.xlu1 %1600  ;;  %v2048_v41 = vsel %vm2046_vm9, %v2005_v16, %v1696_v1  ;;  %v6535_v1 = vld [vmem:[#allocation2 + $0xc] sm:$0xf] }
 0x15a   : > { %1867 = vrot.lane.b32.xlu0 %v1441_v15, %s6576_s20  ;;  %v2091_v35 = vsel %vm2089_vm10, %v2048_v41, %v1745_v46  ;;  %v5930_v16 = vcombine.low %v6535_v1, %v6536_v20  ;;  %v7909_v46 = vld [vmem:[#allocation2 + $0x78] sm:$0xf]  ;;  %v7918_v1 = vld [vmem:[#allocation2 + $0x7c] sm:$0xf] }
 0x15b   : > { %1715 = vrot.lane.b32.xlu1 %v1432_v33, %s6575_s12  ;;  %v2134_v49 = vsel %vm2132_vm11, %v2091_v35, %v7776_v9 }
 0x15c   : > { %v1848_v61 = vpop.permute.xlu0 %1847 }
 0x15d   : > { %v7892_v3 = vpop.permute.xlu1 %1754  ;;  %v2177_v9 = vsel %vm2175_vm12, %v2134_v49, %v1848_v61  ;;  %v1445_v61 = vrot.slane %v1443_v59, 4  ;;  %v1448_v49 = vrot.slane %v1446_v58, 5 }
 0x15e   : > { %1614 = vrot.lane.b32.xlu0 %v7871_v4, %s6571_s22 }
 0x15f   : > { %1815 = vrot.lane.b32.xlu1 %v7895_v54, %s6573_s17 }
 0x160   : > { %v1510_v37 = vpop.permute.xlu0 %1509 }
 0x161   : > { %v1508_v48 = vpop.permute.xlu1 %1507 }
 0x162   : > { %v1902_v41 = vsel %vm1896_vm5, %v5930_v16, %v1508_v48  ;;  %1717 = vrot.lane.b32.xlu0 %v1441_v15, %s6575_s12  ;;  %v7924_v16 = vcombine.low %v7826_v19, %v1179_v32  ;;  %v7928_v48 = vcombine.low %v7909_v46, %v7918_v1 }
 0x163   : > { %v1964_v45 = vsel %vm1960_vm7, %v1902_v41, %v7833_v52  ;;  %1527 = vrot.lane.b32.xlu1 %v1432_v33, %s6570_s19  ;;  %v1574_v33 = vrot.slane %v7836_v6, 5  ;;  %v2225_v41 = vshrl.u32 %v2177_v9, 16 }
 0x164   : > { %v2007_v35 = vsel %vm2003_vm8, %v1964_v45, %v7772_v63  ;;  %v1852_v20 = vpop.permute.xlu0 %1851  ;;  %v2228_v45 = vshll.u32 %v2177_v9, 16  ;;  %v1905_v63 = vsel %vm1896_vm5, %v7242_v17, %v1510_v37  ;;  %v1455_v58 = vshll.u32 %v7928_v48, 16 }
 0x165   : > { %v1698_v44 = vpop.permute.xlu1 %1697  ;;  %v1966_v59 = vsel %vm1960_vm7, %v1905_v63, %v7857_v40  ;;  %v10455_v17 = vrot.slane %v7817_v8, 5  ;;  %v1449_v9 = vor.u32 %v1448_v49, %v1445_v61 }
 0x166   : > { %v2050_v52 = vsel %vm2046_vm9, %v2007_v35, %v1698_v44  ;;  %1817 = vrot.lane.b32.xlu0 %v7924_v16, %s6573_s17  ;;  %v1452_v35 = vshrl.u32 %v7928_v48, 16  ;;  %v2009_v8 = vsel %vm2003_vm8, %v1966_v59, %v7787_v26  ;;  %v1457_v60 = vrot.slane %v1455_v58, 5 }
 0x167   : > { %v2093_v19 = vsel %vm2089_vm10, %v2050_v52, %v7845_v0  ;;  %1665 = vrot.lane.b32.xlu1 %v7895_v54, %s6572_s30  ;;  %v7950_v0 = vsel %vm1550_vm3, %v10455_v17, %v1574_v33  ;;  %v2230_v52 = vrot.slane %v2228_v45, 4  ;;  %v7961_v61 = vsel %vm1325_vm6, %v7873_v22, %v1449_v9 }
 0x168   : > { %v2136_v44 = vsel %vm2132_vm11, %v2093_v19, %v7780_v55  ;;  %v1702_v32 = vpop.permute.xlu0 %1701  ;;  %v2227_v55 = vrot.slane %v2225_v41, 3  ;;  %v1454_v40 = vrot.slane %v1452_v35, 4  ;;  %v7976_v58 = vsel %vm1550_vm3, %v1574_v33, %v1576_v38 }
 0x169   : > { %v1850_v6 = vpop.permute.xlu1 %1849 }
 0x16a   : > { %v2179_v37 = vsel %vm2175_vm12, %v2136_v44, %v1850_v6  ;;  %1529 = vrot.lane.b32.xlu0 %v1441_v15, %s6570_s19  ;;  %v2231_v49 = vor.u32 %v2230_v52, %v2227_v55  ;;  %v7978_v59 = vor.u32 %v1457_v60, %v1454_v40 }
 0x16b   : > { %v2232_v19 = vshrl.u32 %v2179_v37, 16  ;;  %v2235_v54 = vshll.u32 %v2179_v37, 16  ;;  %1766 = vrot.lane.b32.xlu1 %v7950_v0, %s6574_s11 }
 0x16c   : > { %v1514_v17 = vpop.permute.xlu0 %1513 }
 0x16d   : > { %v2234_v63 = vrot.slane %v2232_v19, 3  ;;  %v2237_v44 = vrot.slane %v2235_v54, 4  ;;  %v1700_v6 = vpop.permute.xlu1 %1699  ;;  %v1911_v55 = vsel %vm1896_vm5, %v7314_v11, %v1514_v17  ;;  %v1183_v17 = vld [vmem:[#allocation2 + $0x80] sm:$0xf] }
 0x16e   : > { %v2052_v15 = vsel %vm2046_vm9, %v2009_v8, %v1700_v6  ;;  %1667 = vrot.lane.b32.xlu0 %v7924_v16, %s6572_s30 }
 0x16f   : > { %v2238_v41 = vor.u32 %v2237_v44, %v2234_v63  ;;  %v2095_v54 = vsel %vm2089_vm10, %v2052_v15, %v7829_v18  ;;  %1869 = vrot.lane.b32.xlu1 %v7961_v61, %s6576_s20  ;;  %v1970_v44 = vsel %vm1960_vm7, %v1911_v55, %v7883_v13 }
 0x170   : > { %v2138_v26 = vsel %vm2132_vm11, %v2095_v54, %v7789_v12  ;;  %v1856_v52 = vpop.permute.xlu0 %1855 }
 0x171   : > { %v2181_v45 = vsel %vm2175_vm12, %v2138_v26, %v1852_v20  ;;  %v1512_v35 = vpop.permute.xlu1 %1511  ;;  %v2239_v22 = vsel %vm2224_vm4, %v2231_v49, %v2238_v41  ;;  %v2300_v20 = vshrl.u32 %v7623_v51, 16 }
 0x172   : > { %v1908_v18 = vsel %vm1896_vm5, %v7281_v57, %v1512_v35  ;;  %2747 = vmatmul.mubr.bf16.vlgmr.msra.gmra.mxu0 %v2239_v22  ;;  %1768 = vrot.lane.b32.xlu0 %v7976_v58, %s6574_s11  ;;  %v2257_v12 = vshrl.u32 %v2181_v45, 16  ;;  %v2260_v37 = vshll.u32 %v2181_v45, 16  ;;  %v2303_v57 = vshll.u32 %v7623_v51, 16 }
 0x173   : > { %v1968_v33 = vsel %vm1960_vm7, %v1908_v18, %v7843_v53  ;;  %1616 = vrot.lane.b32.xlu1 %v7950_v0, %s6571_s22  ;;  %5992 = vmatprep.mubr.msk.bf16.mxu0 %vm1896_vm5, %v7678_v31  ;;  %v7999_v53 = vsel %vm1325_vm6, %v1449_v9, %v7978_v59  ;;  %v2302_v6 = vrot.slane %v2300_v20, 3  ;;  %v2317_v35 = vshrl.u32 %v7727_v39, 16 }
 0x174   : > { %v2011_v60 = vsel %vm2003_vm8, %v1968_v33, %v7799_v23  ;;  %v2259_v19 = vrot.slane %v2257_v12, 3  ;;  %v2262_v40 = vrot.slane %v2260_v37, 4  ;;  %v8007_v23 = vld [vmem:[#allocation2 + $0x84] sm:$0xf]  ;;  %v2305_v9 = vrot.slane %v2303_v57, 4  ;;  %v1706_v54 = vpop.permute.xlu0 %1705 }
 0x175   : > { %v1854_v63 = vpop.permute.xlu1 %1853  ;;  %v2054_v11 = vsel %vm2046_vm9, %v2011_v60, %v1702_v32  ;;  %v8022_v45 = vcombine.low %v1183_v17, %v8007_v23  ;;  %v8045_v57 = vld [vmem:[#allocation2 + $0x88] sm:$0xf] }
 0x176   : > { %v2097_v31 = vsel %vm2089_vm10, %v2054_v11, %v7866_v14  ;;  %1871 = vrot.lane.b32.xlu0 %v7999_v53, %s6576_s20  ;;  %v2263_v51 = vor.u32 %v2262_v40, %v2259_v19  ;;  %v8017_v14 = vcombine.low %v7897_v36, %v7909_v46  ;;  %v2320_v36 = vshll.u32 %v7727_v39, 16  ;;  %v8052_v19 = vld [vmem:[%s7057_s27] ss:$0 sm:$0xff] }
 0x177   : > { %v2140_v32 = vsel %vm2132_vm11, %v2097_v31, %v7801_v27  ;;  %1719 = vrot.lane.b32.xlu1 %v7961_v61, %s6575_s12  ;;  %v2013_v27 = vsel %vm2003_vm8, %v1970_v44, %v7808_v25  ;;  %v546_v25 = vld [vmem:[%s10243_s10 + $0x110] sm:$0xff]  ;;  %v8040_v39 = vor.u32 %v2305_v9, %v2302_v6  ;;  %v1461_v55 = vshrl.u32 %v8022_v45, 16  ;;  %v8062_v31 = vld [vmem:[#allocation2 + $0x8c] sm:$0xf] }
 0x178   : > { %v2183_v8 = vsel %vm2175_vm12, %v2140_v32, %v1854_v63  ;;  %v2264_v13 = vsel %vm2224_vm4, %v2238_v41, %v2263_v51  ;;  %v1464_v33 = vshll.u32 %v8022_v45, 16  ;;  %v594_v40 = vmul.f32 %v8052_v19, %v546_v25  ;;  %v1806_v11 = vpop.permute.xlu0 %1805 }
 0x179   : > { %v2274_v15 = vshrl.u32 %v2183_v8, 16  ;;  %v2277_v49 = vshll.u32 %v2183_v8, 16  ;;  %v1704_v26 = vpop.permute.xlu1 %1703  ;;  %v2322_v63 = vrot.slane %v2320_v36, 4  ;;  %v2307_v32 = vsel %vm2224_vm4, %v7683_v30, %v8040_v39 }
 0x17a   : > { %v2056_v22 = vsel %vm2046_vm9, %v2013_v27, %v1704_v26  ;;  %2755 = vmatmul.mubr.bf16.gmra.mxu0 %v2264_v13  ;;  %1618 = vrot.lane.b32.xlu0 %v7976_v58, %s6571_s22  ;;  %v1578_v9 = vrot.slane %v7928_v48, 5  ;;  %v1463_v48 = vrot.slane %v1461_v55, 4  ;;  %v547_v27 = vld [vmem:[%s10243_s10 + $0x118] sm:$0xff] }
 0x17b   : > { %v2276_v46 = vrot.slane %v2274_v15, 3  ;;  %v2279_v41 = vrot.slane %v2277_v49, 4  ;;  %v2099_v18 = vsel %vm2089_vm10, %v2056_v22, %v7855_v62  ;;  %1819 = vrot.lane.b32.xlu1 %v8017_v14, %s6573_s17  ;;  %5993 = vmatprep.mubr.msk.bf16.mxu0 %vm1896_vm5, %v7688_v42  ;;  %v1466_v15 = vrot.slane %v1464_v33, 5 }
 0x17c   : > { %v2142_v12 = vsel %vm2132_vm11, %v2099_v18, %v7810_v24  ;;  %v1518_v22 = vpop.permute.xlu0 %1517  ;;  %v8101_v25 = vsel %vm1550_vm3, %v1576_v38, %v1578_v9  ;;  %v1580_v33 = vrot.slane %v8022_v45, 5 }
 0x17d   : > { %v2280_v37 = vor.u32 %v2279_v41, %v2276_v46  ;;  %v2185_v20 = vsel %vm2175_vm12, %v2142_v12, %v1856_v52  ;;  %v1516_v62 = vpop.permute.xlu1 %1515  ;;  %v2319_v52 = vrot.slane %v2317_v35, 3  ;;  %v1467_v12 = vor.u32 %v1466_v15, %v1463_v48 }
 0x17e   : > { %v1914_v42 = vsel %vm1896_vm5, %v7348_v56, %v1516_v62  ;;  %1721 = vrot.lane.b32.xlu0 %v7999_v53, %s6575_s12  ;;  %v2291_v60 = vshrl.u32 %v2185_v20, 16  ;;  %v2294_v24 = vshll.u32 %v2185_v20, 16  ;;  %v8060_v56 = vcombine.low %v7918_v1, %v1183_v17 }
 0x17f   : > { %v1972_v44 = vsel %vm1960_vm7, %v1914_v42, %v7864_v21  ;;  %1531 = vrot.lane.b32.xlu1 %v7961_v61, %s6570_s19  ;;  %v8072_v21 = vcombine.low %v8045_v57, %v8062_v31  ;;  %v2281_v1 = vsel %vm2224_vm4, %v2263_v51, %v2280_v37  ;;  %v2337_v51 = vshll.u32 %v7764_v47, 16 }
 0x180   : > { %v2015_v6 = vsel %vm2003_vm8, %v1972_v44, %v7821_v7  ;;  %v2293_v8 = vrot.slane %v2291_v60, 3  ;;  %v2296_v13 = vrot.slane %v2294_v24, 4  ;;  %v8081_v7 = vld [vmem:[%s7072_s18] ss:$0 sm:$0xff]  ;;  %v2323_v20 = vor.u32 %v2322_v63, %v2319_v52  ;;  %s6213_s18 = sshll.u32 %s6558_s13, 4 }
 0x181   : > { %v2058_v61 = vsel %vm2046_vm9, %v2015_v6, %v1706_v54  ;;  %v8084_v30 = vadd.f32 %v8081_v7, %v594_v40  ;;  %v1858_v49 = vpop.permute.xlu1 %1857  ;;  %v1470_v35 = vshrl.u32 %v8072_v21, 16  ;;  %v1473_v18 = vshll.u32 %v8072_v21, 16  ;;  %s2969_s23 = scalar_lea.vmem %s10239_s6, %s6213_s18  ;;  %s8713_s18 = scalar_lea.vmem %s10240_s7, %s6558_s13 }
 0x182   : > { %v2101_v17 = vsel %vm2089_vm10, %v2058_v61, %v7892_v3  ;;  %2763 = vmatmul.mubr.bf16.gmra.mxu0 %v2281_v1  ;;  %1821 = vrot.lane.b32.xlu0 %v8060_v56, %s6573_s17  ;;  %v2334_v3 = vshrl.u32 %v7764_v47, 16  ;;  %v2297_v41 = vor.u32 %v2296_v13, %v2293_v8  ;;  %v595_v62 = vmul.f32 %v8052_v19, %v547_v27  ;;  %v548_v27 = vld [vmem:[%s10243_s10 + $0x120] sm:$0xff] }
 0x183   : > { %10456 = vst [vmem:[#allocation74_spill] sm:$0xff] %v8084_v30  ;;  %v2144_v54 = vsel %vm2132_vm11, %v2101_v17, %v1806_v11  ;;  %1669 = vrot.lane.b32.xlu1 %v8017_v14, %s6572_s30  ;;  %5994 = vmatprep.mubr.msk.bf16.mxu0 %vm1896_vm5, %v2307_v32  ;;  %v682_v47 = vmax.f32 %v8084_v30, 0.0  ;;  %v1472_v42 = vrot.slane %v1470_v35, 4  ;;  %v2339_v40 = vrot.slane %v2337_v51, 4  ;;  %v8161_v51 = vld [vmem:[#allocation2 + $0x94] sm:$0xf] }
 0x184   : > { %v2187_v26 = vsel %vm2175_vm12, %v2144_v54, %v1858_v49  ;;  %v2336_v55 = vrot.slane %v2334_v3, 3  ;;  %v2298_v38 = vsel %vm2224_vm4, %v2280_v37, %v2297_v41  ;;  %v1468_v63 = vsel %vm1325_vm6, %v7978_v59, %v1467_v12  ;;  %v10487_v30 = vld [vmem:[#allocation44_spill] sm:$0xff] }
 0x185   : > { %v2308_v36 = vshrl.u32 %v2187_v26, 16  ;;  %v2311_v46 = vshll.u32 %v2187_v26, 16  ;;  %v2324_v11 = vsel %vm2224_vm4, %v8040_v39, %v2323_v20  ;;  %v8123_v37 = vadd.f32 %v8081_v7, %v595_v62  ;;  %v1605_v1 = vpop.permute.xlu1 %1604 }
 0x186   : > { %1533 = vrot.lane.b32.xlu0 %v7999_v53, %s6570_s19  ;;  %v1475_v53 = vrot.slane %v1473_v18, 5  ;;  %v8130_v59 = vsel %vm1550_vm3, %v1578_v9, %v1580_v33  ;;  %v8137_v39 = vor.u32 %v2339_v40, %v2336_v55  ;;  %v549_v9 = vld [vmem:[%s10243_s10 + $0x128] sm:$0xff]  ;;  %v1917_v26 = vsel %vm1896_vm5, %v7383_v5, %v1518_v22  ;;  %v1187_v18 = vld [vmem:[#allocation2 + $0x90] sm:$0xf] }
 0x187   : > { %1770 = vrot.lane.b32.xlu1 %v8101_v25, %s6574_s11  ;;  %v2310_v34 = vrot.slane %v2308_v36, 3  ;;  %v2313_v60 = vrot.slane %v2311_v46, 4  ;;  %10458 = vst [vmem:[#allocation76_spill] sm:$0xff] %v8123_v37  ;;  %v683_v8 = vmax.f32 %v8123_v37, 0.0  ;;  %v597_v54 = vmul.f32 %v8052_v19, %v549_v9 }
 0x188   : > { %v8132_v61 = vor.u32 %v1475_v53, %v1472_v42  ;;  %v2341_v49 = vsel %vm2224_vm4, %v2323_v20, %v8137_v39  ;;  %v1974_v35 = vsel %vm1960_vm7, %v1917_v26, %v1605_v1  ;;  %v8180_v22 = vcombine.low %v1187_v18, %v8161_v51 }
 0x189   : > { %v8111_v24 = vpop.permute.xlu0 %860  ;;  %v8125_v6 = vor.u32 %v2313_v60, %v2310_v34  ;;  %v8177_v5 = vadd.f32 %v8081_v7, %v597_v54  ;;  %v2354_v62 = vshll.u32 %v7795_v28, 16 }
 0x18a   : > { %10457 = vst [vmem:[#allocation75_spill] sm:$0xff] %v8111_v24  ;;  %2771 = vmatmul.mubr.bf16.gmra.mxu0 %v2298_v38  ;;  %v922_v52 = vmul.f32 %v8111_v24, %v682_v47  ;;  %1671 = vrot.lane.b32.xlu0 %v8060_v56, %s6572_s30  ;;  %v8149_v48 = vsel %vm1325_vm6, %v1467_v12, %v8132_v61  ;;  %v1479_v38 = vshrl.u32 %v8180_v22, 16  ;;  %v1482_v53 = vshll.u32 %v8180_v22, 16 }
 0x18b   : > { %1873 = vrot.lane.b32.xlu1 %v1468_v63, %s6576_s20  ;;  %5995 = vmatprep.mubr.msk.bf16.mxu0 %vm1896_vm5, %v2324_v11  ;;  %v2315_v13 = vsel %vm2224_vm4, %v2297_v41, %v8125_v6  ;;  %v8171_v41 = vcombine.low %v8007_v23, %v8045_v57  ;;  %10460 = vst [vmem:[#allocation78_spill] sm:$0xff] %v8177_v5  ;;  %v2351_v57 = vshrl.u32 %v7795_v28, 16  ;;  %v685_v60 = vmax.f32 %v8177_v5, 0.0 }
 0x18c   : > { %v6207_v44 = vpack.c.bf16 %v922_v52, %v922_v52  ;;  %v596_v23 = vmul.f32 %v8052_v19, %v548_v27  ;;  %v2356_v11 = vrot.slane %v2354_v62, 4  ;;  %v1484_v54 = vrot.slane %v1482_v53, 5 }
 0x18d   : > { %v1656_v32 = vpop.permute.xlu0 %1655  ;;  %v2353_v28 = vrot.slane %v2351_v57, 3 }
 0x18e   : > { %1146 = vst.msk [vmem:[#allocation2 + $0x98] sm:$0xf] %vm1111_vm2, %v6207_v44  ;;  %1772 = vrot.lane.b32.xlu0 %v8130_v59, %s6574_s11  ;;  %v2017_v47 = vsel %vm2003_vm8, %v1974_v35, %v1656_v32  ;;  %v8198_v52 = vadd.f32 %v8081_v7, %v596_v23  ;;  %v8202_v32 = vcombine.low %v8062_v31, %v1187_v18 }
 0x18f   : > { %1620 = vrot.lane.b32.xlu1 %v8101_v25, %s6571_s22  ;;  %v8224_v18 = vor.u32 %v2356_v11, %v2353_v28 }
 0x190   : > { %10461 = vst [vmem:[#allocation79_spill] sm:$0xff] %v8198_v52  ;;  %v684_v35 = vmax.f32 %v8198_v52, 0.0 }
 0x191   : > { %v1757_v17 = vpop.permute.xlu0 %1756 }
 0x192   : > { %v8151_v15 = vpop.permute.xlu1 %865  ;;  %2779 = vmatmul.mubr.bf16.gmra.mxu0 %v2315_v13  ;;  %1875 = vrot.lane.b32.xlu0 %v8149_v48, %s6576_s20  ;;  %v1582_v13 = vrot.slane %v8072_v21, 5  ;;  %v550_v21 = vld [vmem:[%s10243_s10 + $0x130] sm:$0xff] }
 0x193   : > { %10459 = vst [vmem:[#allocation77_spill] sm:$0xff] %v8151_v15  ;;  %v923_v3 = vmul.f32 %v8151_v15, %v683_v8  ;;  %1723 = vrot.lane.b32.xlu1 %v1468_v63, %s6575_s12  ;;  %5996 = vmatprep.mubr.msk.bf16.mxu0 %vm1896_vm5, %v2341_v49 }
 0x194   : > { %v8236_v62 = vsel %vm1550_vm3, %v1580_v33, %v1582_v13  ;;  %v2358_v33 = vsel %vm2224_vm4, %v8137_v39, %v8224_v18 }
 0x195   : > { %v6208_v36 = vpack.c.bf16 %v923_v3, %v923_v3  ;;  %v1860_v46 = vpop.permute.xlu0 %1859  ;;  %v8210_v3 = vld [vmem:[#allocation2 + $0x98] sm:$0xf] }
 0x196   : > { %v1708_v12 = vpop.permute.xlu1 %1707  ;;  %1622 = vrot.lane.b32.xlu0 %v8130_v59, %s6571_s22 }
 0x197   : > { %1147 = vst.msk [vmem:[#allocation2 + $0x9c] sm:$0xf] %vm1111_vm2, %v6208_v36  ;;  %v2060_v20 = vsel %vm2046_vm9, %v2017_v47, %v1708_v12  ;;  %1823 = vrot.lane.b32.xlu1 %v8171_v41, %s6573_s17 }
 0x198   : > { %v2103_v34 = vsel %vm2089_vm10, %v2060_v20, %v1757_v17 }
 0x199   : > { %v1607_v55 = vpop.permute.xlu0 %1606 }
 0x19a   : > { %v1808_v42 = vpop.permute.xlu1 %1807  ;;  %1725 = vrot.lane.b32.xlu0 %v8149_v48, %s6575_s12 }
 0x19b   : > { %v2146_v40 = vsel %vm2132_vm11, %v2103_v34, %v1808_v42  ;;  %1535 = vrot.lane.b32.xlu1 %v1468_v63, %s6570_s19  ;;  %v1481_v63 = vrot.slane %v1479_v38, 4  ;;  %v598_v34 = vmul.f32 %v8052_v19, %v550_v21 }
 0x19c   : > { %v2189_v44 = vsel %vm2175_vm12, %v2146_v40, %v1860_v46 }
 0x19d   : > { %v2325_v1 = vshrl.u32 %v2189_v44, 16  ;;  %v2328_v8 = vshll.u32 %v2189_v44, 16  ;;  %v8204_v9 = vpop.permute.xlu0 %875  ;;  %v1485_v42 = vor.u32 %v1484_v54, %v1481_v63  ;;  %v2371_v63 = vshll.u32 %v7850_v2, 16 }
 0x19e   : > { %10462 = vst [vmem:[#allocation80_spill] sm:$0xff] %v8204_v9  ;;  %v1520_v17 = vpop.permute.xlu1 %1519  ;;  %v925_v49 = vmul.f32 %v8204_v9, %v685_v60  ;;  %1825 = vrot.lane.b32.xlu0 %v8202_v32, %s6573_s17  ;;  %v8212_v26 = vld [vmem:[#allocation2 + $0x9c] sm:$0xf] }
 0x19f   : > { %v2327_v31 = vrot.slane %v2325_v1, 3  ;;  %v2330_v27 = vrot.slane %v2328_v8, 4  ;;  %1673 = vrot.lane.b32.xlu1 %v8171_v41, %s6572_s30  ;;  %v8222_v36 = vcombine.low %v8210_v3, %v8212_v26  ;;  %v1920_v60 = vsel %vm1896_vm5, %v7700_v29, %v1520_v17 }
 0x1a0   : > { %v6210_v46 = vpack.c.bf16 %v925_v49, %v925_v49  ;;  %v1584_v29 = vrot.slane %v8180_v22, 5  ;;  %v1976_v44 = vsel %vm1960_vm7, %v1920_v60, %v1607_v55  ;;  %v8257_v1 = vsel %vm1325_vm6, %v8132_v61, %v1485_v42  ;;  %v551_v22 = vld [vmem:[%s10243_s10 + $0x138] sm:$0xff] }
 0x1a1   : > { %v1710_v47 = vpop.permute.xlu0 %1709  ;;  %v8226_v12 = vor.u32 %v2330_v27, %v2327_v31  ;;  %v1488_v20 = vshrl.u32 %v8222_v36, 16  ;;  %v1491_v23 = vshll.u32 %v8222_v36, 16  ;;  %v1586_v61 = vrot.slane %v8222_v36, 5 }
 0x1a2   : > { %1149 = vst.msk [vmem:[#allocation2 + $0xa4] sm:$0xf] %vm1111_vm2, %v6210_v46  ;;  %v8231_v57 = vpop.permute.xlu1 %870  ;;  %1537 = vrot.lane.b32.xlu0 %v8149_v48, %s6570_s19  ;;  %v8273_v8 = vsel %vm1550_vm3, %v1582_v13, %v1584_v29  ;;  %v2368_v49 = vshrl.u32 %v7850_v2, 16  ;;  %v599_v13 = vmul.f32 %v8052_v19, %v551_v22 }
 0x1a3   : > { %10463 = vst [vmem:[#allocation81_spill] sm:$0xff] %v8231_v57  ;;  %v924_v38 = vmul.f32 %v8231_v57, %v684_v35  ;;  %1774 = vrot.lane.b32.xlu1 %v8236_v62, %s6574_s11  ;;  %v2332_v45 = vsel %vm2224_vm4, %v8125_v6, %v8226_v12  ;;  %v1490_v40 = vrot.slane %v1488_v20, 4  ;;  %v1493_v28 = vrot.slane %v1491_v23, 5 }
 0x1a4   : > { %2787 = vmatmul.mubr.bf16.gmra.mxu0 %v2332_v45  ;;  %v8262_v6 = vadd.f32 %v8081_v7, %v598_v34  ;;  %v8288_v21 = vsel %vm1550_vm3, %v1584_v29, %v1586_v61  ;;  %v2370_v46 = vrot.slane %v2368_v49, 3 }
 0x1a5   : > { %v6209_v48 = vpack.c.bf16 %v924_v38, %v924_v38  ;;  %5997 = vmatprep.mubr.msk.bf16.mxu0 %vm1896_vm5, %v2358_v33  ;;  %v1810_v53 = vpop.permute.xlu0 %1809  ;;  %v8275_v17 = vor.u32 %v1493_v28, %v1490_v40  ;;  %v2504_v33 = vshrl.u32 %v8288_v21, 16  ;;  %v2507_v40 = vshll.u32 %v8288_v21, 16 }
 0x1a6   : > { %v1658_v11 = vpop.permute.xlu1 %1657  ;;  %1675 = vrot.lane.b32.xlu0 %v8202_v32, %s6572_s30  ;;  %10464 = vst [vmem:[#allocation82_spill] sm:$0xff] %v8262_v6  ;;  %v686_v27 = vmax.f32 %v8262_v6, 0.0 }
 0x1a7   : > { %1148 = vst.msk [vmem:[#allocation2 + $0xa0] sm:$0xf] %vm1111_vm2, %v6209_v48  ;;  %v2019_v39 = vsel %vm2003_vm8, %v1976_v44, %v1658_v11  ;;  %1877 = vrot.lane.b32.xlu1 %v8257_v1, %s6576_s20  ;;  %v8294_v2 = vsel %vm1325_vm6, %v1485_v42, %v8275_v17  ;;  %v8306_v42 = vadd.f32 %v8081_v7, %v599_v13 }
 0x1a8   : > { %v2062_v31 = vsel %vm2046_vm9, %v2019_v39, %v1710_v47  ;;  %v2373_v47 = vrot.slane %v2371_v63, 4  ;;  %v8313_v11 = vcombine.low %v8161_v51, %v8210_v3 }
 0x1a9   : > { %v1522_v55 = vpop.permute.xlu0 %1521  ;;  %v8300_v60 = vld [vmem:[#allocation2 + $0xa4] sm:$0xf]  ;;  %10466 = vst [vmem:[#allocation84_spill] sm:$0xff] %v8306_v42  ;;  %v687_v49 = vmax.f32 %v8306_v42, 0.0 }
 0x1aa   : > { %v1759_v54 = vpop.permute.xlu1 %1758  ;;  %1776 = vrot.lane.b32.xlu0 %v8273_v8, %s6574_s11  ;;  %v8323_v63 = vor.u32 %v2373_v47, %v2370_v46  ;;  %v1923_v13 = vsel %vm1896_vm5, %v7734_v43, %v1522_v55 }
 0x1ab   : > { %v2105_v35 = vsel %vm2089_vm10, %v2062_v31, %v1759_v54  ;;  %1624 = vrot.lane.b32.xlu1 %v8236_v62, %s6571_s22  ;;  %v2506_v54 = vrot.slane %v2504_v33, 3  ;;  %v2509_v31 = vrot.slane %v2507_v40, 4 }
 0x1ac   : > { %v2148_v23 = vsel %vm2132_vm11, %v2105_v35, %v1810_v53 }
 0x1ad   : > { %v8290_v36 = vpop.permute.xlu0 %880 }
 0x1ae   : > { %10465 = vst [vmem:[#allocation83_spill] sm:$0xff] %v8290_v36  ;;  %v1862_v20 = vpop.permute.xlu1 %1861  ;;  %v926_v34 = vmul.f32 %v8290_v36, %v686_v27  ;;  %1879 = vrot.lane.b32.xlu0 %v8294_v2, %s6576_s20  ;;  %v1191_v19 = vld [vmem:[#allocation2 + $0xa0] sm:$0xf] }
 0x1af   : > { %v2191_v38 = vsel %vm2175_vm12, %v2148_v23, %v1862_v20  ;;  %1727 = vrot.lane.b32.xlu1 %v8257_v1, %s6575_s12  ;;  %v5969_v45 = vcombine.low %v1191_v19, %v8300_v60 }
 0x1b0   : > { %v2342_v48 = vshrl.u32 %v2191_v38, 16  ;;  %v2345_v53 = vshll.u32 %v2191_v38, 16  ;;  %v6211_v29 = vpack.c.bf16 %v926_v34, %v926_v34  ;;  %v8335_v34 = vld [vmem:[#allocation2 + $0xb0] sm:$0xf] }
 0x1b1   : > { %v1660_v28 = vpop.permute.xlu0 %1659  ;;  %v8315_v44 = vrot.slane %v5969_v45, 5  ;;  %v1497_v23 = vshrl.u32 %v5969_v45, 16  ;;  %v1500_v47 = vshll.u32 %v5969_v45, 16  ;;  %v8358_v45 = vor.u32 %v2509_v31, %v2506_v54 }
 0x1b2   : > { %v2344_v39 = vrot.slane %v2342_v48, 3  ;;  %v2347_v22 = vrot.slane %v2345_v53, 4  ;;  %1150 = vst.msk [vmem:[#allocation2 + $0xa8] sm:$0xf] %vm1111_vm2, %v6211_v29  ;;  %v1609_v7 = vpop.permute.xlu1 %1608  ;;  %1626 = vrot.lane.b32.xlu0 %v8273_v8, %s6571_s22  ;;  %v8344_v48 = vld [vmem:[#allocation2 + $0xb4] sm:$0xf]  ;;  %v2375_v53 = vsel %vm2224_vm4, %v8224_v18, %v8323_v63 }
 0x1b3   : > { %1827 = vrot.lane.b32.xlu1 %v8313_v11, %s6573_s17  ;;  %v8327_v51 = vsel %vm1550_vm3, %v1586_v61, %v8315_v44  ;;  %v1978_v43 = vsel %vm1960_vm7, %v1923_v13, %v1609_v7  ;;  %v2385_v29 = vshrl.u32 %v7871_v4, 16  ;;  %v8365_v7 = vcombine.low %v8335_v34, %v8344_v48  ;;  %v6476_v18 = vld [vmem:[#allocation2 + $0xb8] ss:$0 sps:$4 sm:$0x11]  }
 0x1b4   : > { %v8329_v3 = vor.u32 %v2347_v22, %v2344_v39  ;;  %v2521_v27 = vshrl.u32 %v8327_v51, 16  ;;  %v2524_v35 = vshll.u32 %v8327_v51, 16  ;;  %v2388_v39 = vshll.u32 %v7871_v4, 16 }
 0x1b5   : > { %v1761_v20 = vpop.permute.xlu0 %1760  ;;  %v2387_v13 = vrot.slane %v2385_v29, 3 }
 0x1b6   : > { %v8337_v46 = vpop.permute.xlu1 %885  ;;  %1729 = vrot.lane.b32.xlu0 %v8294_v2, %s6575_s12  ;;  %v2349_v61 = vsel %vm2224_vm4, %v8226_v12, %v8329_v3  ;;  %v2523_v38 = vrot.slane %v2521_v27, 3  ;;  %v2526_v33 = vrot.slane %v2524_v35, 4  ;;  %v8356_v12 = vcombine.low %v8212_v26, %v1191_v19 }
 0x1b7   : > { %10467 = vst [vmem:[#allocation85_spill] sm:$0xff] %v8337_v46  ;;  %v927_v55 = vmul.f32 %v8337_v46, %v687_v49  ;;  %1539 = vrot.lane.b32.xlu1 %v8257_v1, %s6570_s19  ;;  %2795 = vmatmul.mubr.bf16.gmra.mxu0 %v2349_v61  ;;  %v2021_v49 = vsel %vm2003_vm8, %v1978_v43, %v1660_v28  ;;  %v1499_v26 = vrot.slane %v1497_v23, 4  ;;  %v1502_v19 = vrot.slane %v1500_v47, 5  ;;  %v6473_v43 = vld [vmem:[%s2969_s23 + $0x8] sm:$0xff]  }
 0x1b8   : > { %5998 = vmatprep.mubr.msk.bf16.mxu0 %vm1896_vm5, %v2375_v53  ;;  %v8360_v40 = vor.u32 %v2526_v33, %v2523_v38  ;;  %v1892_v28 = vrot.slane %v8365_v7, 5  ;;  %v1894_v35 = vrot.slane %v6476_v18, 5  ;;  %v2390_v23 = vrot.slane %v2388_v39, 4  ;;  %6299 = vmatprep.subr.bf16.mxu1 %v6473_v43 }
 0x1b9   : > { %v6212_v1 = vpack.c.bf16 %v927_v55, %v927_v55  ;;  %v1864_v22 = vpop.permute.xlu0 %1863  ;;  %v8384_v38 = vor.u32 %v1502_v19, %v1499_v26  ;;  %6300 = vmatpush3.bf16.msra.mxu1 %v6473_v43 }
 0x1ba   : > { %v1712_v27 = vpop.permute.xlu1 %1711  ;;  %1829 = vrot.lane.b32.xlu0 %v8356_v12, %s6573_s17  ;;  %v8373_v4 = vsel %vm2224_vm4, %v8358_v45, %v8360_v40  ;;  %v8401_v18 = vor.u32 %v2390_v23, %v2387_v13 }
 0x1bb   : > { %1151 = vst.msk [vmem:[#allocation2 + $0xac] sm:$0xf] %vm1111_vm2, %v6212_v1  ;;  %v2064_v54 = vsel %vm2046_vm9, %v2021_v49, %v1712_v27  ;;  %1677 = vrot.lane.b32.xlu1 %v8313_v11, %s6572_s30  ;;  %v8399_v1 = vsel %vm1325_vm6, %v8275_v17, %v8384_v38  ;;  %v1195_v49 = vld [vmem:[#allocation2 + $0xa8] sm:$0xf] }
 0x1bc   : > { %v2107_v47 = vsel %vm2089_vm10, %v2064_v54, %v1761_v20 }
 0x1bd   : > { %v1611_v31 = vpop.permute.xlu0 %1610 }
 0x1be   : > { %v1812_v61 = vpop.permute.xlu1 %1811  ;;  %1541 = vrot.lane.b32.xlu0 %v8294_v2, %s6570_s19  ;;  %v1895_v2 = vsel %vm1550_vm3, %v1892_v28, %v1894_v35  ;;  %v6474_v35 = vld [vmem:[%s2969_s23] sm:$0xff]  }
 0x1bf   : > { %v2150_v33 = vsel %vm2132_vm11, %v2107_v47, %v1812_v61  ;;  %1778 = vrot.lane.b32.xlu1 %v8288_v21, %s6574_s11  ;;  %v2572_v61 = vshrl.u32 %v1895_v2, 16  ;;  %v2575_v17 = vshll.u32 %v1895_v2, 16  ;;  %6301 = vmatprep.subr.bf16.mxu1 %v6474_v35 }
 0x1c0   : > { %v2193_v55 = vsel %vm2175_vm12, %v2150_v33, %v1864_v22  ;;  %6302 = vmatpush3.bf16.msra.mxu1 %v6474_v35 }
 0x1c1   : > { %v2359_v53 = vshrl.u32 %v2193_v55, 16  ;;  %v2362_v29 = vshll.u32 %v2193_v55, 16  ;;  %v1714_v20 = vpop.permute.xlu0 %1713  ;;  %5299 = vmatprep.subr.bf16.mxu1 %v10424_v10 }
 0x1c2   : > { %v1524_v39 = vpop.permute.xlu1 %1523  ;;  %1679 = vrot.lane.b32.xlu0 %v8356_v12, %s6572_s30  ;;  %v8403_v27 = vld [vmem:[#allocation2 + $0xac] sm:$0xf] }
 0x1c3   : > { %v2361_v22 = vrot.slane %v2359_v53, 3  ;;  %v2364_v26 = vrot.slane %v2362_v29, 4  ;;  %v1926_v19 = vsel %vm1896_vm5, %v7752_v50, %v1524_v39  ;;  %1881 = vrot.lane.b32.xlu1 %v8399_v1, %s6576_s20  ;;  %v5974_v54 = vcombine.low %v1195_v49, %v8403_v27 }
 0x1c4   : > { %v1980_v53 = vsel %vm1960_vm7, %v1926_v19, %v1611_v31  ;;  %v2392_v50 = vsel %vm2224_vm4, %v8323_v63, %v8401_v18  ;;  %v2577_v19 = vrot.slane %v2575_v17, 4 }
 0x1c5   : > { %v1814_v47 = vpop.permute.xlu0 %1813  ;;  %v8410_v13 = vor.u32 %v2364_v26, %v2361_v22  ;;  %v1687_v23 = vshrl.u32 %v5974_v54, 16  ;;  %v1690_v33 = vshll.u32 %v5974_v54, 16  ;;  %v8412_v55 = vrot.slane %v5974_v54, 5 }
 0x1c6   : > { %v1662_v43 = vpop.permute.xlu1 %1661  ;;  %1780 = vrot.lane.b32.xlu0 %v8327_v51, %s6574_s11  ;;  %v2574_v26 = vrot.slane %v2572_v61, 3 }
 0x1c7   : > { %v2023_v29 = vsel %vm2003_vm8, %v1980_v53, %v1662_v43  ;;  %1628 = vrot.lane.b32.xlu1 %v8288_v21, %s6571_s22  ;;  %v2366_v2 = vsel %vm2224_vm4, %v8329_v3, %v8410_v13  ;;  %v1689_v39 = vrot.slane %v1687_v23, 4  ;;  %v1692_v22 = vrot.slane %v1690_v33, 5 }
 0x1c8   : > { %2803 = vmatmul.mubr.bf16.gmra.mxu0 %v2366_v2  ;;  %v8429_v31 = vsel %vm1550_vm3, %v8315_v44, %v8412_v55  ;;  %v1893_v63 = vsel %vm1550_vm3, %v8412_v55, %v1892_v28  ;;  %v2402_v33 = vshrl.u32 %v7950_v0, 16  ;;  %v2405_v43 = vshll.u32 %v7950_v0, 16 }
 0x1c9   : > { %5999 = vmatprep.mubr.msk.bf16.mxu0 %vm1896_vm5, %v2392_v50  ;;  %v1526_v21 = vpop.permute.xlu0 %1525  ;;  %v8434_v54 = vor.u32 %v1692_v22, %v1689_v39  ;;  %v2538_v3 = vshrl.u32 %v8429_v31, 16  ;;  %v2541_v35 = vshll.u32 %v8429_v31, 16  ;;  %v2555_v23 = vshrl.u32 %v1893_v63, 16 }
 0x1ca   : > { %v1763_v53 = vpop.permute.xlu1 %1762  ;;  %v2066_v28 = vsel %vm2046_vm9, %v2023_v29, %v1714_v20  ;;  %v2558_v61 = vshll.u32 %v1893_v63, 16  ;;  %v2578_v0 = vor.u32 %v2577_v19, %v2574_v26  ;;  %v5972_v20 = vcombine.low %v8300_v60, %v1195_v49 }
 0x1cb   : > { %v2109_v17 = vsel %vm2089_vm10, %v2066_v28, %v1763_v53  ;;  %1731 = vrot.lane.b32.xlu1 %v8399_v1, %s6575_s12  ;;  %v1694_v50 = vsel %vm1325_vm6, %v8384_v38, %v8434_v54  ;;  %v2540_v2 = vrot.slane %v2538_v3, 3  ;;  %v2543_v39 = vrot.slane %v2541_v35, 4 }
 0x1cc   : > { %1883 = vrot.lane.b32.xlu0 %v1694_v50, %s6576_s20  ;;  %v2557_v22 = vrot.slane %v2555_v23, 3  ;;  %v2560_v5 = vrot.slane %v2558_v61, 4  ;;  %v2152_v53 = vsel %vm2132_vm11, %v2109_v17, %v1814_v47  ;;  %v2404_v52 = vrot.slane %v2402_v33, 3  ;;  %v10468_v23 = vld [vmem:[#allocation71_spill] sm:$0xff] }
 0x1cd   : > { %v1664_v42 = vpop.permute.xlu0 %1663  ;;  %v2544_v29 = vor.u32 %v2543_v39, %v2540_v2  ;;  %v2407_v6 = vrot.slane %v2405_v43, 4  ;;  %v1839_v19 = vshrl.u32 %v8365_v7, 16  ;;  %v1929_v33 = vsel %vm1896_vm5, %v10468_v23, %v1526_v21 }
 0x1ce   : > { %v1866_v63 = vpop.permute.xlu1 %1865  ;;  %v2561_v28 = vor.u32 %v2560_v5, %v2557_v22 }
 0x1cf   : > { %v2195_v37 = vsel %vm2175_vm12, %v2152_v53, %v1866_v63  ;;  %1831 = vrot.lane.b32.xlu1 %v5972_v20, %s6573_s17  ;;  %v8455_v3 = vsel %vm2224_vm4, %v8360_v40, %v2544_v29  ;;  %v1841_v22 = vrot.slane %v1839_v19, 4 }
 0x1d0   : > { %v2376_v35 = vshrl.u32 %v2195_v37, 16  ;;  %v2379_v26 = vshll.u32 %v2195_v37, 16  ;;  %1630 = vrot.lane.b32.xlu0 %v8327_v51, %s6571_s22  ;;  %v8460_v49 = vsel %vm2224_vm4, %v2544_v29, %v2561_v28  ;;  %v8463_v5 = vsel %vm2224_vm4, %v2561_v28, %v2578_v0  ;;  %v6470_v28 = vld [vmem:[#allocation2 + $0xa8] ss:$0 sps:$4 sm:$0x11]  }
 0x1d1   : > { %v1765_v47 = vpop.permute.xlu0 %1764  ;;  %v1842_v37 = vshll.u32 %v8365_v7, 16  ;;  %v2408_v51 = vor.u32 %v2407_v6, %v2404_v52  ;;  %v5977_v7 = vcombine.low %v8403_v27, %v8335_v34  ;;  %v2419_v6 = vshrl.u32 %v7976_v58, 16 }
 0x1d2   : > { %v2378_v43 = vrot.slane %v2376_v35, 3  ;;  %v2381_v40 = vrot.slane %v2379_v26, 4  ;;  %v1613_v61 = vpop.permute.xlu1 %1612 }
 0x1d3   : > { %v1982_v17 = vsel %vm1960_vm7, %v1929_v33, %v1613_v61  ;;  %1543 = vrot.lane.b32.xlu1 %v8399_v1, %s6570_s19  ;;  %v1844_v63 = vrot.slane %v1842_v37, 5  ;;  %v2409_v52 = vsel %vm2224_vm4, %v8401_v18, %v2408_v51  ;;  %v2422_v1 = vshll.u32 %v7976_v58, 16  ;;  %v6471_v18 = vld [vmem:[#allocation2 + $0xb0] ss:$0 sps:$4 sm:$0x11]  }
 0x1d4   : > { %v2382_v2 = vor.u32 %v2381_v40, %v2378_v43  ;;  %1733 = vrot.lane.b32.xlu0 %v1694_v50, %s6575_s12  ;;  %v2025_v29 = vsel %vm2003_vm8, %v1982_v17, %v1664_v42  ;;  %v2421_v35 = vrot.slane %v2419_v6, 3  ;;  %v5973_v40 = vcombine.low %v8403_v27, %v8403_v27  ;;  %v10469_v17 = vld [vmem:[#allocation72_spill] sm:$0xff] }
 0x1d5   : > { %v1868_v39 = vpop.permute.xlu0 %1867  ;;  %v1845_v50 = vor.u32 %v1844_v63, %v1841_v22  ;;  %v2424_v26 = vrot.slane %v2422_v1, 4  ;;  %v1590_v61 = vrot.slane %v6470_v28, 5 }
 0x1d6   : > { %v1716_v0 = vpop.permute.xlu1 %1715  ;;  %v2383_v21 = vsel %vm2224_vm4, %v8410_v13, %v2382_v2 }
 0x1d7   : > { %v2068_v53 = vsel %vm2046_vm9, %v2025_v29, %v1716_v0  ;;  %1681 = vrot.lane.b32.xlu1 %v5972_v20, %s6572_s30  ;;  %2811 = vmatmul.mubr.bf16.gmra.mxu0 %v2383_v21  ;;  %v1591_v27 = vsel %vm1550_vm3, %v8315_v44, %v1590_v61 }
 0x1d8   : > { %1833 = vrot.lane.b32.xlu0 %v5977_v7, %s6573_s17  ;;  %6000 = vmatprep.mubr.msk.bf16.mxu0 %vm1896_vm5, %v2409_v52  ;;  %v2111_v34 = vsel %vm2089_vm10, %v2068_v53, %v1765_v47  ;;  %v1846_v47 = vsel %vm1325_vm6, %v8434_v54, %v1845_v50 }
 0x1d9   : > { %v1615_v42 = vpop.permute.xlu0 %1614 }
 0x1da   : > { %v1816_v13 = vpop.permute.xlu1 %1815 }
 0x1db   : > { %v2154_v20 = vsel %vm2132_vm11, %v2111_v34, %v1816_v13  ;;  %1782 = vrot.lane.b32.xlu1 %v8429_v31, %s6574_s11  ;;  %v2436_v13 = vshrl.u32 %v8101_v25, 16  ;;  %v2439_v34 = vshll.u32 %v8101_v25, 16 }
 0x1dc   : > { %v2197_v58 = vsel %vm2175_vm12, %v2154_v20, %v1868_v39  ;;  %1545 = vrot.lane.b32.xlu0 %v8384_v38, %s6570_s19  ;;  %v1742_v39 = vrot.slane %v6471_v18, 5  ;;  %v2425_v38 = vor.u32 %v2424_v26, %v2421_v35 }
 0x1dd   : > { %v2393_v19 = vshrl.u32 %v2197_v58, 16  ;;  %v2396_v23 = vshll.u32 %v2197_v58, 16  ;;  %v1718_v33 = vpop.permute.xlu0 %1717  ;;  %v2438_v18 = vrot.slane %v2436_v13, 3  ;;  %v2441_v35 = vrot.slane %v2439_v34, 4 }
 0x1de   : > { %v1528_v43 = vpop.permute.xlu1 %1527  ;;  %v1743_v53 = vsel %vm1550_vm3, %v8412_v55, %v1742_v39  ;;  %v2426_v6 = vsel %vm2224_vm4, %v2408_v51, %v2425_v38  ;;  %v5978_v55 = vcombine.low %v8344_v48, %v8344_v48 }
 0x1df   : > { %v2395_v31 = vrot.slane %v2393_v19, 3  ;;  %v2398_v37 = vrot.slane %v2396_v23, 4  ;;  %v1932_v22 = vsel %vm1896_vm5, %v10469_v17, %v1528_v43  ;;  %1885 = vrot.lane.b32.xlu1 %v1846_v47, %s6576_s20  ;;  %v10470_v23 = vld [vmem:[#allocation73_spill] sm:$0xff]  ;;  %v2442_v47 = vor.u32 %v2441_v35, %v2438_v18 }
 0x1e0   : > { %1683 = vrot.lane.b32.xlu0 %v5973_v40, %s6572_s30  ;;  %v1984_v7 = vsel %vm1960_vm7, %v1932_v22, %v1615_v42 }
 0x1e1   : > { %v1818_v0 = vpop.permute.xlu0 %1817  ;;  %v2399_v29 = vor.u32 %v2398_v37, %v2395_v31  ;;  %v2443_v39 = vsel %vm2224_vm4, %v2425_v38, %v2442_v47 }
 0x1e2   : > { %v1666_v21 = vpop.permute.xlu1 %1665 }
 0x1e3   : > { %v2027_v63 = vsel %vm2003_vm8, %v1984_v7, %v1666_v21  ;;  %1632 = vrot.lane.b32.xlu1 %v1591_v27, %s6571_s22  ;;  %v2400_v52 = vsel %vm2224_vm4, %v2382_v2, %v2399_v29  ;;  %v2456_v21 = vshll.u32 %v8130_v59, 16 }
 0x1e4   : > { %1784 = vrot.lane.b32.xlu0 %v1743_v53, %s6574_s11  ;;  %2819 = vmatmul.mubr.bf16.gmra.mxu0 %v2400_v52  ;;  %v2070_v44 = vsel %vm2046_vm9, %v2027_v63, %v1718_v33  ;;  %s949_s11 = scalar_lea.vmem %s10238_s5, %s6558_s13 }
 0x1e5   : > { %6001 = vmatprep.mubr.msk.bf16.mxu0 %vm1896_vm5, %v2426_v6  ;;  %v1530_v1 = vpop.permute.xlu0 %1529  ;;  %v2458_v6 = vrot.slane %v2456_v21, 4 }
 0x1e6   : > { %v1767_v42 = vpop.permute.xlu1 %1766 }
 0x1e7   : > { %v2113_v28 = vsel %vm2089_vm10, %v2070_v44, %v1767_v42  ;;  %1735 = vrot.lane.b32.xlu1 %v8434_v54, %s6575_s12  ;;  %v1935_v54 = vsel %vm1896_vm5, %v10470_v23, %v1530_v1  ;;  %v2473_v23 = vshll.u32 %v8236_v62, 16 }
 0x1e8   : > { %1887 = vrot.lane.b32.xlu0 %v1845_v50, %s6576_s20  ;;  %v2156_v20 = vsel %vm2132_vm11, %v2113_v28, %v1818_v0  ;;  %v2453_v0 = vshrl.u32 %v8130_v59, 16  ;;  %s6214_s20 = smul.u32 144, %s6558_s13 }
 0x1e9   : > { %v1668_v51 = vpop.permute.xlu0 %1667 }
 0x1ea   : > { %v1870_v2 = vpop.permute.xlu1 %1869  ;;  %v2455_v52 = vrot.slane %v2453_v0, 3  ;;  %s8686_s28 = scalar_lea.vmem %s10241_s8, %s6214_s20 }
 0x1eb   : > { %v2199_v26 = vsel %vm2175_vm12, %v2156_v20, %v1870_v2  ;;  %1835 = vrot.lane.b32.xlu1 %v5978_v55, %s6573_s17 }
 0x1ec   : > { %v2410_v25 = vshrl.u32 %v2199_v26, 16  ;;  %v2413_v58 = vshll.u32 %v2199_v26, 16  ;;  %v2459_v28 = vor.u32 %v2458_v6, %v2455_v52 }
 0x1ed   : > { %v1769_v19 = vpop.permute.xlu0 %1768 }
 0x1ee   : > { %v2412_v33 = vrot.slane %v2410_v25, 3  ;;  %v2415_v48 = vrot.slane %v2413_v58, 4  ;;  %v1617_v43 = vpop.permute.xlu1 %1616  ;;  %v2460_v26 = vsel %vm2224_vm4, %v2442_v47, %v2459_v28 }
 0x1ef   : > { %v1986_v50 = vsel %vm1960_vm7, %v1935_v54, %v1617_v43 }
 0x1f0   : > { %v2416_v40 = vor.u32 %v2415_v48, %v2412_v33  ;;  %v2029_v37 = vsel %vm2003_vm8, %v1986_v50, %v1668_v51 }
 0x1f1   : > { %v1872_v61 = vpop.permute.xlu0 %1871 }
 0x1f2   : > { %v1720_v31 = vpop.permute.xlu1 %1719  ;;  %v2417_v17 = vsel %vm2224_vm4, %v2399_v29, %v2416_v40 }
 0x1f3   : > { %v2072_v22 = vsel %vm2046_vm9, %v2029_v37, %v1720_v31  ;;  %2827 = vmatmul.mubr.bf16.gmra.mxu0 %v2417_v17 }
 0x1f4   : > { %6002 = vmatprep.mubr.msk.bf16.mxu0 %vm1896_vm5, %v2443_v39  ;;  %v2115_v63 = vsel %vm2089_vm10, %v2072_v22, %v1769_v19 }
 0x1f5   : > { %v1619_v7 = vpop.permute.xlu0 %1618 }
 0x1f6   : > { %v1820_v27 = vpop.permute.xlu1 %1819 }
 0x1f7   : > { %v2158_v53 = vsel %vm2132_vm11, %v2115_v63, %v1820_v27 }
 0x1f8   : > { %v2201_v29 = vsel %vm2175_vm12, %v2158_v53, %v1872_v61 }
 0x1f9   : > { %v2427_v1 = vshrl.u32 %v2201_v29, 16  ;;  %v2430_v42 = vshll.u32 %v2201_v29, 16  ;;  %v1722_v44 = vpop.permute.xlu0 %1721 }
 0x1fa   : > { %v1532_v38 = vpop.permute.xlu1 %1531 }
 0x1fb   : > { %v2429_v13 = vrot.slane %v2427_v1, 3  ;;  %v2432_v34 = vrot.slane %v2430_v42, 4  ;;  %v1938_v59 = vsel %vm1896_vm5, %v7924_v16, %v1532_v38  ;;  %v2470_v16 = vshrl.u32 %v8236_v62, 16 }
 0x1fc   : > { %v1988_v20 = vsel %vm1960_vm7, %v1938_v59, %v1619_v7  ;;  %v2490_v1 = vshll.u32 %v8273_v8, 16 }
 0x1fd   : > { %v1822_v55 = vpop.permute.xlu0 %1821  ;;  %v2433_v51 = vor.u32 %v2432_v34, %v2429_v13  ;;  %v2472_v50 = vrot.slane %v2470_v16, 3 }
 0x1fe   : > { %v1670_v2 = vpop.permute.xlu1 %1669  ;;  %v2492_v59 = vrot.slane %v2490_v1, 4 }
 0x1ff   : > { %v2031_v18 = vsel %vm2003_vm8, %v1988_v20, %v1670_v2  ;;  %v2434_v35 = vsel %vm2224_vm4, %v2416_v40, %v2433_v51  ;;  %v2475_v40 = vrot.slane %v2473_v23, 4 }
 0x200   : > { %2835 = vmatmul.mubr.bf16.gmra.mxu0 %v2434_v35  ;;  %v2074_v19 = vsel %vm2046_vm9, %v2031_v18, %v1722_v44 }
 0x201   : > { %6003 = vmatprep.mubr.msk.bf16.mxu0 %vm1896_vm5, %v2460_v26  ;;  %v1534_v25 = vpop.permute.xlu0 %1533  ;;  %v2476_v21 = vor.u32 %v2475_v40, %v2472_v50 }
 0x202   : > { %v1771_v58 = vpop.permute.xlu1 %1770  ;;  %v1941_v17 = vsel %vm1896_vm5, %v8017_v14, %v1534_v25  ;;  %v2487_v14 = vshrl.u32 %v8273_v8, 16 }
 0x203   : > { %v2117_v54 = vsel %vm2089_vm10, %v2074_v19, %v1771_v58  ;;  %v2477_v29 = vsel %vm2224_vm4, %v2459_v28, %v2476_v21 }
 0x204   : > { %v2160_v43 = vsel %vm2132_vm11, %v2117_v54, %v1822_v55  ;;  %v2489_v34 = vrot.slane %v2487_v14, 3 }
 0x205   : > { %v1672_v33 = vpop.permute.xlu0 %1671 }
 0x206   : > { %v1874_v48 = vpop.permute.xlu1 %1873  ;;  %v2493_v26 = vor.u32 %v2492_v59, %v2489_v34 }
 0x207   : > { %v2203_v47 = vsel %vm2175_vm12, %v2160_v43, %v1874_v48 }
 0x208   : > { %v2444_v61 = vshrl.u32 %v2203_v47, 16  ;;  %v2447_v31 = vshll.u32 %v2203_v47, 16  ;;  %v2511_v14 = vsel %vm2224_vm4, %v2493_v26, %v8358_v45 }
 0x209   : > { %v1773_v37 = vpop.permute.xlu0 %1772 }
 0x20a   : > { %v2446_v22 = vrot.slane %v2444_v61, 3  ;;  %v2449_v39 = vrot.slane %v2447_v31, 4  ;;  %v1621_v0 = vpop.permute.xlu1 %1620 }
 0x20b   : > { %v1990_v62 = vsel %vm1960_vm7, %v1941_v17, %v1621_v0 }
 0x20c   : > { %v2450_v7 = vor.u32 %v2449_v39, %v2446_v22  ;;  %v2033_v53 = vsel %vm2003_vm8, %v1990_v62, %v1672_v33  ;;  %v2494_v33 = vsel %vm2224_vm4, %v2476_v21, %v2493_v26 }
 0x20d   : > { %v1876_v27 = vpop.permute.xlu0 %1875 }
 0x20e   : > { %v1724_v63 = vpop.permute.xlu1 %1723  ;;  %v2451_v52 = vsel %vm2224_vm4, %v2433_v51, %v2450_v7 }
 0x20f   : > { %v2076_v6 = vsel %vm2046_vm9, %v2033_v53, %v1724_v63  ;;  %2843 = vmatmul.mubr.bf16.gmra.mxu0 %v2451_v52 }
 0x210   : > { %6004 = vmatprep.mubr.msk.bf16.mxu0 %vm1896_vm5, %v2477_v29  ;;  %v2119_v38 = vsel %vm2089_vm10, %v2076_v6, %v1773_v37 }
 0x211   : > { %v1623_v42 = vpop.permute.xlu0 %1622 }
 0x212   : > { %v1824_v44 = vpop.permute.xlu1 %1823 }
 0x213   : > { %v2162_v13 = vsel %vm2132_vm11, %v2119_v38, %v1824_v44 }
 0x214   : > { %v2205_v55 = vsel %vm2175_vm12, %v2162_v13, %v1876_v27 }
 0x215   : > { %v2461_v51 = vshrl.u32 %v2205_v55, 16  ;;  %v2464_v2 = vshll.u32 %v2205_v55, 16  ;;  %v1726_v20 = vpop.permute.xlu0 %1725  ;;  %v8590_v55 = vld [vmem:[%s949_s11] ss:$0 sm:$0xff] }
 0x216   : > { %v1536_v28 = vpop.permute.xlu1 %1535 }
 0x217   : > { %v2463_v18 = vrot.slane %v2461_v51, 3  ;;  %v2466_v35 = vrot.slane %v2464_v2, 4  ;;  %v1944_v8 = vsel %vm1896_vm5, %v8060_v56, %v1536_v28 }
 0x218   : > { %v1992_v16 = vsel %vm1960_vm7, %v1944_v8, %v1623_v42 }
 0x219   : > { %v1826_v25 = vpop.permute.xlu0 %1825  ;;  %v2467_v58 = vor.u32 %v2466_v35, %v2463_v18 }
 0x21a   : > { %v1674_v19 = vpop.permute.xlu1 %1673 }
 0x21b   : > { %v2035_v23 = vsel %vm2003_vm8, %v1992_v16, %v1674_v19  ;;  %v2468_v54 = vsel %vm2224_vm4, %v2450_v7, %v2467_v58 }
 0x21c   : > { %2851 = vmatmul.mubr.bf16.gmra.mxu0 %v2468_v54  ;;  %v2078_v50 = vsel %vm2046_vm9, %v2035_v23, %v1726_v20 }
 0x21d   : > { %6005 = vmatprep.mubr.msk.bf16.mxu0 %vm1896_vm5, %v2494_v33  ;;  %v1538_v48 = vpop.permute.xlu0 %1537 }
 0x21e   : > { %v1775_v43 = vpop.permute.xlu1 %1774  ;;  %v1947_v39 = vsel %vm1896_vm5, %v8171_v41, %v1538_v48 }
 0x21f   : > { %v2121_v56 = vsel %vm2089_vm10, %v2078_v50, %v1775_v43 }
 0x220   : > { %v2164_v61 = vsel %vm2132_vm11, %v2121_v56, %v1826_v25 }
 0x221   : > { %v1676_v40 = vpop.permute.xlu0 %1675 }
 0x222   : > { %v1878_v47 = vpop.permute.xlu1 %1877 }
 0x223   : > { %v2207_v31 = vsel %vm2175_vm12, %v2164_v61, %v1878_v47 }
 0x224   : > { %v2478_v37 = vshrl.u32 %v2207_v31, 16  ;;  %v2481_v17 = vshll.u32 %v2207_v31, 16 }
 0x225   : > { %v1777_v22 = vpop.permute.xlu0 %1776 }
 0x226   : > { %v2480_v0 = vrot.slane %v2478_v37, 3  ;;  %v2483_v62 = vrot.slane %v2481_v17, 4  ;;  %v1625_v21 = vpop.permute.xlu1 %1624 }
 0x227   : > { %v1994_v7 = vsel %vm1960_vm7, %v1947_v39, %v1625_v21 }
 0x228   : > { %v2484_v27 = vor.u32 %v2483_v62, %v2480_v0  ;;  %v2037_v52 = vsel %vm2003_vm8, %v1994_v7, %v1676_v40 }
 0x229   : > { %v1880_v63 = vpop.permute.xlu0 %1879 }
 0x22a   : > { %v1728_v53 = vpop.permute.xlu1 %1727  ;;  %v2485_v6 = vsel %vm2224_vm4, %v2467_v58, %v2484_v27 }
 0x22b   : > { %v2080_v29 = vsel %vm2046_vm9, %v2037_v52, %v1728_v53  ;;  %2859 = vmatmul.mubr.bf16.gmra.mxu0 %v2485_v6 }
 0x22c   : > { %6006 = vmatprep.mubr.msk.bf16.mxu0 %vm1896_vm5, %v2511_v14  ;;  %v2123_v42 = vsel %vm2089_vm10, %v2080_v29, %v1777_v22 }
 0x22d   : > { %v1627_v41 = vpop.permute.xlu0 %1626 }
 0x22e   : > { %v1828_v1 = vpop.permute.xlu1 %1827 }
 0x22f   : > { %v2166_v44 = vsel %vm2132_vm11, %v2123_v42, %v1828_v1 }
 0x230   : > { %v2209_v38 = vsel %vm2175_vm12, %v2166_v44, %v1880_v63 }
 0x231   : > { %v2495_v13 = vshrl.u32 %v2209_v38, 16  ;;  %v2498_v34 = vshll.u32 %v2209_v38, 16  ;;  %v1730_v59 = vpop.permute.xlu0 %1729 }
 0x232   : > { %v2748_v45 = vpop.f32.mrf.mxu0  ;;  %v1540_v51 = vpop.permute.xlu1 %1539 }
 0x233   : > { %v2497_v2 = vrot.slane %v2495_v13, 3  ;;  %v2500_v20 = vrot.slane %v2498_v34, 4  ;;  %v1950_v28 = vsel %vm1896_vm5, %v8202_v32, %v1540_v51  ;;  %v2749_v35 = vadd.f32 %v8590_v55, %v2748_v45 }
 0x234   : > { %v2750_v18 = vpop.f32.mrf.mxu0  ;;  %v1996_v19 = vsel %vm1960_vm7, %v1950_v28, %v1627_v41 }
 0x235   : > { %v1830_v8 = vpop.permute.xlu0 %1829  ;;  %v2501_v26 = vor.u32 %v2500_v20, %v2497_v2  ;;  %v2907_v48 = vmax.f32 %v2749_v35, 0.0 }
 0x236   : > { %v2751_v25 = vpop.f32.mrf.mxu0  ;;  %v1678_v58 = vpop.permute.xlu1 %1677 }
 0x237   : > { %v2752_v16 = vadd.f32 %v8590_v55, %v2751_v25  ;;  %v2039_v23 = vsel %vm2003_vm8, %v1996_v19, %v1678_v58  ;;  %v2502_v54 = vsel %vm2224_vm4, %v2484_v27, %v2501_v26 }
 0x238   : > { %v2753_v33 = vpop.f32.mrf.mxu0  ;;  %2867 = vmatmul.mubr.bf16.gmra.mxu0 %v2502_v54  ;;  %v2082_v40 = vsel %vm2046_vm9, %v2039_v23, %v1730_v59 }
 0x239   : > { %v2908_v43 = vmax.f32 %v2752_v16, 0.0  ;;  %6007 = vmatprep.mubr.msk.bf16.mxu0 %vm1896_vm5, %v8373_v4  ;;  %v1542_v32 = vpop.permute.xlu0 %1541 }
 0x23a   : > { %v2756_v50 = vpop.f32.mrf.mxu0  ;;  %v1779_v56 = vpop.permute.xlu1 %1778  ;;  %v1953_v6 = vsel %vm1896_vm5, %v8313_v11, %v1542_v32 }
 0x23b   : > { %v2125_v47 = vsel %vm2089_vm10, %v2082_v40, %v1779_v56  ;;  %v2947_v61 = vpack.c.bf16 %v2908_v43, %v2907_v48  ;;  %v2757_v37 = vadd.f32 %v8590_v55, %v2756_v50 }
 0x23c   : > { %v2758_v31 = vpop.f32.mrf.mxu0  ;;  %v2168_v0 = vsel %vm2132_vm11, %v2125_v47, %v1830_v8 }
 0x23d   : > { %6303 = vmatprep.mubr.msk.bf16.mxu1 %vm1960_vm7, %v2947_v61  ;;  %v1680_v17 = vpop.permute.xlu0 %1679  ;;  %v2909_v63 = vmax.f32 %v2757_v37, 0.0 }
 0x23e   : > { %v2759_v22 = vpop.f32.mrf.mxu0  ;;  %v1882_v39 = vpop.permute.xlu1 %1881 }
 0x23f   : > { %v2760_v4 = vadd.f32 %v8590_v55, %v2759_v22  ;;  %v2211_v62 = vsel %vm2175_vm12, %v2168_v0, %v1882_v39 }
 0x240   : > { %v2512_v21 = vshrl.u32 %v2211_v62, 16  ;;  %v2515_v7 = vshll.u32 %v2211_v62, 16  ;;  %v2761_v27 = vpop.f32.mrf.mxu0 }
 0x241   : > { %v2910_v53 = vmax.f32 %v2760_v4, 0.0  ;;  %v1781_v52 = vpop.permute.xlu0 %1780 }
 0x242   : > { %v2514_v29 = vrot.slane %v2512_v21, 3  ;;  %v2517_v14 = vrot.slane %v2515_v7, 4  ;;  %v2764_v41 = vpop.f32.mrf.mxu0  ;;  %v1629_v1 = vpop.permute.xlu1 %1628 }
 0x243   : > { %v2948_v42 = vpack.c.bf16 %v2910_v53, %v2909_v63  ;;  %v1998_v44 = vsel %vm1960_vm7, %v1953_v6, %v1629_v1  ;;  %v2765_v34 = vadd.f32 %v8590_v55, %v2764_v41 }
 0x244   : > { %v2518_v38 = vor.u32 %v2517_v14, %v2514_v29  ;;  %v2766_v13 = vpop.f32.mrf.mxu0  ;;  %v2041_v2 = vsel %vm2003_vm8, %v1998_v44, %v1680_v17 }
 0x245   : > { %6304 = vmatmul.mubr.msk.bf16.vlgmr.msra.gmra.mxu1 %vm1960_vm7, %v2948_v42  ;;  %v1884_v59 = vpop.permute.xlu0 %1883  ;;  %v2911_v35 = vmax.f32 %v2765_v34, 0.0 }
 0x246   : > { %v2767_v45 = vpop.f32.mrf.mxu0  ;;  %v1732_v51 = vpop.permute.xlu1 %1731  ;;  %v2519_v11 = vsel %vm2224_vm4, %v2501_v26, %v2518_v38 }
 0x247   : > { %v2768_v20 = vadd.f32 %v8590_v55, %v2767_v45  ;;  %v2084_v28 = vsel %vm2046_vm9, %v2041_v2, %v1732_v51  ;;  %2875 = vmatmul.mubr.bf16.gmra.mxu0 %v2519_v11  ;;  %v5949_v51 = vcombine.low %v8300_v60, %v8300_v60 }
 0x248   : > { %v2769_v18 = vpop.f32.mrf.mxu0  ;;  %6008 = vmatprep.mubr.msk.bf16.mxu0 %vm1896_vm5, %v8455_v3  ;;  %v2127_v16 = vsel %vm2089_vm10, %v2084_v28, %v1781_v52 }
 0x249   : > { %v2912_v8 = vmax.f32 %v2768_v20, 0.0  ;;  %v1631_v25 = vpop.permute.xlu0 %1630 }
 0x24a   : > { %v2772_v58 = vpop.f32.mrf.mxu0  ;;  %v1832_v19 = vpop.permute.xlu1 %1831 }
 0x24b   : > { %v2949_v23 = vpack.c.bf16 %v2912_v8, %v2911_v35  ;;  %v2170_v54 = vsel %vm2132_vm11, %v2127_v16, %v1832_v19  ;;  %v2773_v48 = vadd.f32 %v8590_v55, %v2772_v58 }
 0x24c   : > { %v2213_v26 = vsel %vm2175_vm12, %v2170_v54, %v1884_v59  ;;  %v2774_v33 = vpop.f32.mrf.mxu0 }
 0x24d   : > { %v2529_v43 = vshrl.u32 %v2213_v26, 16  ;;  %v2532_v32 = vshll.u32 %v2213_v26, 16  ;;  %6307 = vmatprep.mubr.msk.bf16.mxu1 %vm1960_vm7, %v2949_v23  ;;  %v1734_v3 = vpop.permute.xlu0 %1733  ;;  %v2913_v17 = vmax.f32 %v2773_v48, 0.0 }
 0x24e   : > { %v2775_v50 = vpop.f32.mrf.mxu0  ;;  %v1544_v56 = vpop.permute.xlu1 %1543 }
 0x24f   : > { %v2531_v40 = vrot.slane %v2529_v43, 3  ;;  %v2534_v47 = vrot.slane %v2532_v32, 4  ;;  %v2776_v61 = vadd.f32 %v8590_v55, %v2775_v50  ;;  %v1956_v31 = vsel %vm1896_vm5, %v8356_v12, %v1544_v56 }
 0x250   : > { %v2777_v37 = vpop.f32.mrf.mxu0  ;;  %v2000_v21 = vsel %vm1960_vm7, %v1956_v31, %v1631_v25 }
 0x251   : > { %v2914_v22 = vmax.f32 %v2776_v61, 0.0  ;;  %v1834_v39 = vpop.permute.xlu0 %1833  ;;  %v2535_v0 = vor.u32 %v2534_v47, %v2531_v40 }
 0x252   : > { %v2780_v4 = vpop.f32.mrf.mxu0  ;;  %v1682_v62 = vpop.permute.xlu1 %1681 }
 0x253   : > { %v2950_v7 = vpack.c.bf16 %v2914_v22, %v2913_v17  ;;  %v2043_v27 = vsel %vm2003_vm8, %v2000_v21, %v1682_v62  ;;  %v2536_v63 = vsel %vm2224_vm4, %v2518_v38, %v2535_v0  ;;  %v2781_v52 = vadd.f32 %v8590_v55, %v2780_v4 }
 0x254   : > { %v2782_v53 = vpop.f32.mrf.mxu0  ;;  %2883 = vmatmul.mubr.bf16.gmra.mxu0 %v2536_v63  ;;  %v2086_v14 = vsel %vm2046_vm9, %v2043_v27, %v1734_v3 }
 0x255   : > { %6009 = vmatprep.mubr.msk.bf16.mxu0 %vm1896_vm5, %v8460_v49  ;;  %6308 = vmatmul.mubr.msk.bf16.gmra.mxu1 %vm1960_vm7, %v2950_v7  ;;  %v1546_v12 = vpop.permute.xlu0 %1545  ;;  %v2915_v44 = vmax.f32 %v2781_v52, 0.0 }
 0x256   : > { %v2783_v6 = vpop.f32.mrf.mxu0  ;;  %v1783_v29 = vpop.permute.xlu1 %1782  ;;  %v1959_v20 = vsel %vm1896_vm5, %v5949_v51, %v1546_v12 }
 0x257   : > { %v2784_v41 = vadd.f32 %v8590_v55, %v2783_v6  ;;  %v2129_v1 = vsel %vm2089_vm10, %v2086_v14, %v1783_v29 }
 0x258   : > { %v2785_v42 = vpop.f32.mrf.mxu0  ;;  %v2172_v34 = vsel %vm2132_vm11, %v2129_v1, %v1834_v39 }
 0x259   : > { %v2916_v38 = vmax.f32 %v2784_v41, 0.0  ;;  %v1684_v45 = vpop.permute.xlu0 %1683 }
 0x25a   : > { %v1886_v13 = vpop.permute.xlu1 %1885 }
 0x25b   : > { %v2951_v59 = vpack.c.bf16 %v2916_v38, %v2915_v44  ;;  %v2215_v49 = vsel %vm2175_vm12, %v2172_v34, %v1886_v13 }
 0x25c   : > { %v2546_v2 = vshrl.u32 %v2215_v49, 16  ;;  %v2549_v11 = vshll.u32 %v2215_v49, 16  ;;  %v3571_v49 = vld [vmem:[#allocation2 + $0xc] sm:$0xf] }
 0x25d   : > { %6311 = vmatprep.mubr.msk.bf16.mxu1 %vm1960_vm7, %v2951_v59  ;;  %v1785_v58 = vpop.permute.xlu0 %1784  ;;  %v3570_v59 = vld [vmem:[#allocation2 + $0x8] sm:$0xf] }
 0x25e   : > { %v2548_v28 = vrot.slane %v2546_v2, 3  ;;  %v2551_v18 = vrot.slane %v2549_v11, 4  ;;  %v1633_v35 = vpop.permute.xlu1 %1632 }
 0x25f   : > { %v2002_v8 = vsel %vm1960_vm7, %v1959_v20, %v1633_v35 }
 0x260   : > { %v2552_v25 = vor.u32 %v2551_v18, %v2548_v28  ;;  %v2045_v16 = vsel %vm2003_vm8, %v2002_v8, %v1684_v45  ;;  %v8662_v45 = vcombine.low %v3570_v59, %v3571_v49 }
 0x261   : > { %v1888_v26 = vpop.permute.xlu0 %1887 }
 0x262   : > { %v1736_v19 = vpop.permute.xlu1 %1735  ;;  %v2553_v23 = vsel %vm2224_vm4, %v2535_v0, %v2552_v25  ;;  %v3743_v2 = vshrl.u32 %v8662_v45, 16  ;;  %v3746_v11 = vshll.u32 %v8662_v45, 16 }
 0x263   : > { %v2088_v60 = vsel %vm2046_vm9, %v2045_v16, %v1736_v19  ;;  %2891 = vmatmul.mubr.bf16.gmra.mxu0 %v2553_v23 }
 0x264   : > { %v2788_v54 = vpop.f32.mrf.mxu0  ;;  %6010 = vmatprep.mubr.msk.bf16.mxu0 %vm1896_vm5, %v8463_v5  ;;  %v2131_v43 = vsel %vm2089_vm10, %v2088_v60, %v1785_v58  ;;  %v3745_v18 = vrot.slane %v3743_v2, 4  ;;  %v3748_v35 = vrot.slane %v3746_v11, 5  ;;  %v3966_v60 = vrot.slane %v8662_v45, 5 }
 0x265   : > { %v2789_v32 = vadd.f32 %v8590_v55, %v2788_v54 }
 0x266   : > { %v2790_v33 = vpop.f32.mrf.mxu0  ;;  %v1836_v48 = vpop.permute.xlu1 %1835  ;;  %v8668_v58 = vor.u32 %v3748_v35, %v3745_v18 }
 0x267   : > { %v2174_v3 = vsel %vm2132_vm11, %v2131_v43, %v1836_v48  ;;  %v2917_v37 = vmax.f32 %v2789_v32, 0.0 }
 0x268   : > { %v2217_v50 = vsel %vm2175_vm12, %v2174_v3, %v1888_v26  ;;  %v2791_v56 = vpop.f32.mrf.mxu0  ;;  %3921 = vrot.lane.b32.xlu1 %v8668_v58, %s6571_s22 }
 0x269   : > { %v2563_v40 = vshrl.u32 %v2217_v50, 16  ;;  %v2566_v47 = vshll.u32 %v2217_v50, 16  ;;  %v2792_v61 = vadd.f32 %v8590_v55, %v2791_v56 }
 0x26a   : > { %v2793_v31 = vpop.f32.mrf.mxu0 }
 0x26b   : > { %v2565_v17 = vrot.slane %v2563_v40, 3  ;;  %v2568_v5 = vrot.slane %v2566_v47, 4  ;;  %v2918_v22 = vmax.f32 %v2792_v61, 0.0 }
 0x26c   : > { %4007 = vrot.lane.b32.xlu1 %v3966_v60, %s6575_s12 }
 0x26d   : > { %v2569_v39 = vor.u32 %v2568_v5, %v2565_v17  ;;  %v2952_v0 = vpack.c.bf16 %v2918_v22, %v2917_v37 }
 0x26f   : > { %6312 = vmatmul.mubr.msk.bf16.gmra.mxu1 %vm1960_vm7, %v2952_v0  ;;  %v2570_v4 = vsel %vm2224_vm4, %v2552_v25, %v2569_v39 }
 0x270   : > { %2899 = vmatmul.mubr.bf16.gmra.mxu0 %v2570_v4  ;;  %v8689_v4 = vld [vmem:[%s8686_s28 + $0x88] sm:$0xff]  }
 0x271   : > { %6343 = vmatprep.subr.bf16.mxu0 %v8689_v4 }
 0x272   : > { %6344 = vmatpush3.bf16.msra.mxu0 %v8689_v4 }
 0x277   : > { %v2796_v62 = vpop.f32.mrf.mxu0 }
 0x278   : > { %v2797_v7 = vadd.f32 %v8590_v55, %v2796_v62  ;;  %v6486_v62 = vld [vmem:[%s8686_s28 + $0x80] sm:$0xff]  }
 0x279   : > { %v2798_v21 = vpop.f32.mrf.mxu0  ;;  %6345 = vmatprep.subr.bf16.mxu0 %v6486_v62 }
 0x27a   : > { %v2919_v52 = vmax.f32 %v2797_v7, 0.0  ;;  %6346 = vmatpush3.bf16.msra.mxu0 %v6486_v62  ;;  %v6493_v62 = vld [vmem:[%s8686_s28 + $0x38] sm:$0xff]  }
 0x27b   : > { %v2799_v27 = vpop.f32.mrf.mxu0  ;;  %5300 = vmatpush1.bf16.msra.mxu1 %v6493_v62 }
 0x27c   : > { %v2800_v63 = vadd.f32 %v8590_v55, %v2799_v27  ;;  %5301 = vmatprep.subr.bf16.mxu1 %v10424_v10 }
 0x27d   : > { %v2801_v53 = vpop.f32.mrf.mxu0 }
 0x27e   : > { %v2920_v12 = vmax.f32 %v2800_v63, 0.0 }
 0x280   : > { %v2953_v6 = vpack.c.bf16 %v2920_v12, %v2919_v52 }
 0x282   : > { %6315 = vmatprep.mubr.msk.bf16.mxu1 %vm1960_vm7, %v2953_v6 }
 0x288   : > { %v2804_v29 = vpop.f32.mrf.mxu0 }
 0x289   : > { %v2805_v41 = vadd.f32 %v8590_v55, %v2804_v29 }
 0x28a   : > { %v2806_v14 = vpop.f32.mrf.mxu0 }
 0x28b   : > { %v2921_v38 = vmax.f32 %v2805_v41, 0.0 }
 0x28c   : > { %v2807_v1 = vpop.f32.mrf.mxu0 }
 0x28d   : > { %v2808_v42 = vadd.f32 %v8590_v55, %v2807_v1 }
 0x28e   : > { %v2809_v44 = vpop.f32.mrf.mxu0 }
 0x28f   : > { %v2922_v13 = vmax.f32 %v2808_v42, 0.0 }
 0x291   : > { %v2954_v34 = vpack.c.bf16 %v2922_v13, %v2921_v38 }
 0x293   : > { %6316 = vmatmul.mubr.msk.bf16.gmra.mxu1 %vm1960_vm7, %v2954_v34 }
 0x297   : > { %v2812_v51 = vpop.f32.mrf.mxu0 }
 0x298   : > { %v2813_v28 = vadd.f32 %v8590_v55, %v2812_v51 }
 0x299   : > { %v2814_v20 = vpop.f32.mrf.mxu0 }
 0x29a   : > { %v2923_v16 = vmax.f32 %v2813_v28, 0.0 }
 0x29b   : > { %v2815_v8 = vpop.f32.mrf.mxu0 }
 0x29c   : > { %v2816_v25 = vadd.f32 %v8590_v55, %v2815_v8 }
 0x29d   : > { %v2817_v19 = vpop.f32.mrf.mxu0 }
 0x29e   : > { %v2924_v23 = vmax.f32 %v2816_v25, 0.0 }
 0x2a0   : > { %v2955_v54 = vpack.c.bf16 %v2924_v23, %v2923_v16 }
 0x2a2   : > { %6319 = vmatprep.mubr.msk.bf16.mxu1 %vm1960_vm7, %v2955_v54 }
 0x2a4   : > { %v2820_v26 = vpop.f32.mrf.mxu0 }
 0x2a5   : > { %v2821_v48 = vadd.f32 %v8590_v55, %v2820_v26 }
 0x2a6   : > { %v2822_v33 = vpop.f32.mrf.mxu0 }
 0x2a7   : > { %v2925_v50 = vmax.f32 %v2821_v48, 0.0 }
 0x2a8   : > { %v2823_v43 = vpop.f32.mrf.mxu0 }
 0x2a9   : > { %v2824_v32 = vadd.f32 %v8590_v55, %v2823_v43 }
 0x2aa   : > { %v2825_v3 = vpop.f32.mrf.mxu0 }
 0x2ab   : > { %v2926_v56 = vmax.f32 %v2824_v32, 0.0 }
 0x2ad   : > { %v2956_v40 = vpack.c.bf16 %v2926_v56, %v2925_v50 }
 0x2af   : > { %6320 = vmatmul.mubr.msk.bf16.gmra.mxu1 %vm1960_vm7, %v2956_v40 }
 0x2b3   : > { %v2828_v47 = vpop.f32.mrf.mxu0 }
 0x2b4   : > { %v2829_v31 = vadd.f32 %v8590_v55, %v2828_v47 }
 0x2b5   : > { %v2830_v61 = vpop.f32.mrf.mxu0 }
 0x2b6   : > { %v2927_v22 = vmax.f32 %v2829_v31, 0.0 }
 0x2b7   : > { %v2831_v37 = vpop.f32.mrf.mxu0 }
 0x2b8   : > { %v2832_v17 = vadd.f32 %v8590_v55, %v2831_v37 }
 0x2b9   : > { %v2833_v5 = vpop.f32.mrf.mxu0 }
 0x2ba   : > { %v2928_v39 = vmax.f32 %v2832_v17, 0.0  ;;  %v8717_v17 = vld [vmem:[%s8713_s18] ss:$0 sm:$0xff] }
 0x2bc   : > { %v2957_v0 = vpack.c.bf16 %v2928_v39, %v2927_v22 }
 0x2be   : > { %6323 = vmatprep.mubr.msk.bf16.mxu1 %vm1960_vm7, %v2957_v0 }
 0x2c0   : > { %v2836_v21 = vpop.f32.mrf.mxu0 }
 0x2c1   : > { %v2837_v27 = vadd.f32 %v8590_v55, %v2836_v21 }
 0x2c2   : > { %v2838_v7 = vpop.f32.mrf.mxu0 }
 0x2c3   : > { %v2929_v12 = vmax.f32 %v2837_v27, 0.0 }
 0x2c4   : > { %v2839_v63 = vpop.f32.mrf.mxu0 }
 0x2c5   : > { %v2840_v53 = vadd.f32 %v8590_v55, %v2839_v63 }
 0x2c6   : > { %v2841_v52 = vpop.f32.mrf.mxu0 }
 0x2c7   : > { %v2930_v6 = vmax.f32 %v2840_v53, 0.0  ;;  %v10471_v53 = vld [vmem:[#allocation7_spill] sm:$0xff] }
 0x2c9   : > { %v2958_v29 = vpack.c.bf16 %v2930_v6, %v2929_v12 }
 0x2cb   : > { %6324 = vmatmul.mubr.msk.bf16.gmra.mxu1 %vm1960_vm7, %v2958_v29 }
 0x2cf   : > { %v2844_v14 = vpop.f32.mrf.mxu0 }
 0x2d0   : > { %v2845_v1 = vadd.f32 %v8590_v55, %v2844_v14 }
 0x2d1   : > { %v2846_v41 = vpop.f32.mrf.mxu0 }
 0x2d2   : > { %v2931_v13 = vmax.f32 %v2845_v1, 0.0 }
 0x2d3   : > { %v2847_v42 = vpop.f32.mrf.mxu0 }
 0x2d4   : > { %v2848_v44 = vadd.f32 %v8590_v55, %v2847_v42  ;;  %v10472_v42 = vld [vmem:[#allocation8_spill] sm:$0xff] }
 0x2d5   : > { %v2849_v38 = vpop.f32.mrf.mxu0 }
 0x2d6   : > { %v2932_v34 = vmax.f32 %v2848_v44, 0.0 }
 0x2d8   : > { %v2959_v59 = vpack.c.bf16 %v2932_v34, %v2931_v13 }
 0x2da   : > { %6327 = vmatprep.mubr.msk.bf16.mxu1 %vm1960_vm7, %v2959_v59 }
 0x2dc   : > { %v2852_v49 = vpop.f32.mrf.mxu0 }
 0x2dd   : > { %v2853_v2 = vadd.f32 %v8590_v55, %v2852_v49 }
 0x2de   : > { %v2854_v51 = vpop.f32.mrf.mxu0 }
 0x2df   : > { %v2933_v18 = vmax.f32 %v2853_v2, 0.0  ;;  %v10473_v2 = vld [vmem:[#allocation11_spill] sm:$0xff] }
 0x2e0   : > { %v2855_v11 = vpop.f32.mrf.mxu0 }
 0x2e1   : > { %v2856_v20 = vadd.f32 %v8590_v55, %v2855_v11 }
 0x2e2   : > { %v2857_v28 = vpop.f32.mrf.mxu0 }
 0x2e3   : > { %v2934_v35 = vmax.f32 %v2856_v20, 0.0 }
 0x2e5   : > { %v2960_v8 = vpack.c.bf16 %v2934_v35, %v2933_v18 }
 0x2e7   : > { %6328 = vmatmul.mubr.msk.bf16.gmra.mxu1 %vm1960_vm7, %v2960_v8  ;;  %v10474_v8 = vld [vmem:[#allocation12_spill] sm:$0xff] }
 0x2eb   : > { %v2860_v25 = vpop.f32.mrf.mxu0 }
 0x2ec   : > { %v2861_v16 = vadd.f32 %v8590_v55, %v2860_v25 }
 0x2ed   : > { %v2862_v19 = vpop.f32.mrf.mxu0 }
 0x2ee   : > { %v2935_v33 = vmax.f32 %v2861_v16, 0.0 }
 0x2ef   : > { %v2863_v23 = vpop.f32.mrf.mxu0 }
 0x2f0   : > { %v2864_v54 = vadd.f32 %v8590_v55, %v2863_v23  ;;  %v6497_v23 = vld [vmem:[%s8686_s28 + $0x30] sm:$0xff]  }
 0x2f1   : > { %v2865_v26 = vpop.f32.mrf.mxu0  ;;  %5302 = vmatpush1.bf16.msra.mxu1 %v6497_v23 }
 0x2f2   : > { %v2936_v48 = vmax.f32 %v2864_v54, 0.0  ;;  %v3611_v26 = vld [vmem:[#allocation2 + $0xc] sm:$0x8]  ;;  %5303 = vmatprep.subr.bf16.mxu1 %v10424_v10 }
 0x2f4   : > { %v2961_v43 = vpack.c.bf16 %v2936_v48, %v2935_v33 }
 0x2f6   : > { %6331 = vmatprep.mubr.msk.bf16.mxu1 %vm1960_vm7, %v2961_v43 }
 0x2f8   : > { %v2868_v32 = vpop.f32.mrf.mxu0 }
 0x2f9   : > { %v2869_v50 = vadd.f32 %v8590_v55, %v2868_v32 }
 0x2fa   : > { %v2870_v3 = vpop.f32.mrf.mxu0 }
 0x2fb   : > { %v2937_v61 = vmax.f32 %v2869_v50, 0.0 }
 0x2fc   : > { %v2871_v56 = vpop.f32.mrf.mxu0 }
 0x2fd   : > { %v2872_v40 = vadd.f32 %v8590_v55, %v2871_v56 }
 0x2fe   : > { %v2873_v47 = vpop.f32.mrf.mxu0 }
 0x2ff   : > { %v2938_v31 = vmax.f32 %v2872_v40, 0.0 }
 0x301   : > { %v2962_v37 = vpack.c.bf16 %v2938_v31, %v2937_v61 }
 0x303   : > { %6332 = vmatmul.mubr.msk.bf16.gmra.mxu1 %vm1960_vm7, %v2962_v37 }
 0x305   : > { %v6305_v5 = vpop.f32.mrf.mxu1 }
 0x306   : > { %v3097_v22 = vadd.f32 %v6305_v5, %v8717_v17  ;;  %v6498_v5 = vld [vmem:[%s8686_s28 + $0x28] sm:$0xff]  }
 0x307   : > { %v2876_v39 = vpop.f32.mrf.mxu0  ;;  %v3088_v0 = vpop.f32.mrf.mxu1  ;;  %5304 = vmatpush1.bf16.msra.mxu1 %v6498_v5 }
 0x308   : > { %v3249_v21 = vmax.f32 %v3097_v22, 0.0  ;;  %v3089_v7 = vadd.f32 %v8717_v17, %v3088_v0  ;;  %v2877_v12 = vadd.f32 %v8590_v55, %v2876_v39  ;;  %v10475_v22 = vld [vmem:[#allocation22_spill] sm:$0xff]  ;;  %5305 = vmatprep.subr.bf16.mxu1 %v10424_v10 }
 0x309   : > { %v2878_v27 = vpop.f32.mrf.mxu0  ;;  %v6306_v63 = vpop.f32.mrf.mxu1 }
 0x30a   : > { %v3289_v52 = vmul.f32 %v3249_v21, %v10471_v53  ;;  %v3247_v6 = vmax.f32 %v3089_v7, 0.0  ;;  %v3100_v29 = vadd.f32 %v6306_v63, %v8717_v17  ;;  %v2939_v49 = vmax.f32 %v2877_v12, 0.0 }
 0x30b   : > { %v2879_v14 = vpop.f32.mrf.mxu0  ;;  %v3091_v41 = vpop.f32.mrf.mxu1 }
 0x30c   : > { %v6217_v1 = vpack.c.bf16 %v3289_v52, %v3289_v52  ;;  %v3287_v44 = vmul.f32 %v3247_v6, %v10472_v42  ;;  %v3250_v38 = vmax.f32 %v3100_v29, 0.0  ;;  %v2880_v13 = vadd.f32 %v8590_v55, %v2879_v14  ;;  %v10476_v29 = vld [vmem:[#allocation16_spill] sm:$0xff] }
 0x30d   : > { %v3092_v34 = vadd.f32 %v8717_v17, %v3091_v41  ;;  %v2881_v59 = vpop.f32.mrf.mxu0 }
 0x30e   : > { %3531 = vst.msk [vmem:[#allocation2 + $0x18] sm:$0xf] %vm3528_vm13, %v6217_v1  ;;  %v6215_v51 = vpack.c.bf16 %v3287_v44, %v3287_v44  ;;  %v3290_v11 = vmul.f32 %v3250_v38, %v10473_v2  ;;  %v2940_v20 = vmax.f32 %v2880_v13, 0.0 }
 0x30f   : > { %v3248_v28 = vmax.f32 %v3092_v34, 0.0 }
 0x310   : > { %3529 = vst.msk [vmem:[#allocation2 + $0x10] sm:$0xf] %vm3528_vm13, %v6215_v51  ;;  %v6218_v18 = vpack.c.bf16 %v3290_v11, %v3290_v11  ;;  %v2963_v35 = vpack.c.bf16 %v2940_v20, %v2939_v49  ;;  %v6499_v51 = vld [vmem:[%s8686_s28 + $0x20] sm:$0xff]   ;;  %v10477_v20 = vld [vmem:[#allocation21_spill] sm:$0xff] }
 0x311   : > { %v3288_v25 = vmul.f32 %v3248_v28, %v10474_v8  ;;  %5306 = vmatpush1.bf16.msra.mxu1 %v6499_v51 }
 0x312   : > { %3532 = vst.msk [vmem:[#allocation2 + $0x1c] sm:$0xf] %vm3528_vm13, %v6218_v18  ;;  %6335 = vmatprep.mubr.msk.bf16.mxu1 %vm1960_vm7, %v2963_v35  ;;  %5307 = vmatprep.subr.bf16.mxu1 %v10424_v10 }
 0x313   : > { %v6216_v19 = vpack.c.bf16 %v3288_v25, %v3288_v25 }
 0x314   : > { %v2884_v16 = vpop.f32.mrf.mxu0 }
 0x315   : > { %3530 = vst.msk [vmem:[#allocation2 + $0x14] sm:$0xf] %vm3528_vm13, %v6216_v19  ;;  %v6309_v54 = vpop.f32.mrf.mxu1  ;;  %v2885_v43 = vadd.f32 %v8590_v55, %v2884_v16  ;;  %v3574_v7 = vld [vmem:[#allocation2 + $0x18] sm:$0xf] }
 0x316   : > { %v3113_v33 = vadd.f32 %v6309_v54, %v8717_v17  ;;  %v2886_v48 = vpop.f32.mrf.mxu0  ;;  %v10478_v54 = vld [vmem:[#allocation15_spill] sm:$0xff] }
 0x317   : > { %v3104_v32 = vpop.f32.mrf.mxu1  ;;  %v8739_v3 = vld [vmem:[#allocation2 + $0x10] sm:$0xf]  ;;  %v2941_v27 = vmax.f32 %v2885_v43, 0.0 }
 0x318   : > { %v3253_v50 = vmax.f32 %v3113_v33, 0.0  ;;  %v3105_v56 = vadd.f32 %v8717_v17, %v3104_v32  ;;  %v2887_v40 = vpop.f32.mrf.mxu0  ;;  %v6119_v47 = vcombine.low %v3611_v26, %v8739_v3 }
 0x319   : > { %v2888_v61 = vadd.f32 %v8590_v55, %v2887_v40  ;;  %v6310_v31 = vpop.f32.mrf.mxu1  ;;  %v8745_v37 = vld [vmem:[#allocation2 + $0x1c] sm:$0xf] }
 0x31a   : > { %v3293_v39 = vmul.f32 %v3253_v50, %v10475_v22  ;;  %v3251_v0 = vmax.f32 %v3105_v56, 0.0  ;;  %v3116_v62 = vadd.f32 %v6310_v31, %v8717_v17  ;;  %4058 = vrot.lane.b32.xlu1 %v6119_v47, %s6573_s17  ;;  %v2889_v21 = vpop.f32.mrf.mxu0  ;;  %v6100_v12 = vcombine.low %v3574_v7, %v8745_v37  ;;  %v6500_v56 = vld [vmem:[%s8686_s28 + $0x18] sm:$0xff]  }
 0x31b   : > { %v2942_v63 = vmax.f32 %v2888_v61, 0.0  ;;  %v3107_v52 = vpop.f32.mrf.mxu1  ;;  %5308 = vmatpush1.bf16.msra.mxu1 %v6500_v56 }
 0x31c   : > { %v6221_v6 = vpack.c.bf16 %v3293_v39, %v3293_v39  ;;  %v3291_v14 = vmul.f32 %v3251_v0, %v10476_v29  ;;  %v3254_v41 = vmax.f32 %v3116_v62, 0.0  ;;  %v3108_v1 = vadd.f32 %v8717_v17, %v3107_v52  ;;  %v3573_v44 = vld [vmem:[#allocation2 + $0x14] sm:$0xf]  ;;  %5309 = vmatprep.subr.bf16.mxu1 %v10424_v10 }
 0x31d   : > { %v3615_v38 = vld [vmem:[#allocation2 + $0x14] sm:$0x8]  ;;  %v2964_v13 = vpack.c.bf16 %v2942_v63, %v2941_v27  ;;  %v8755_v34 = vcombine.low %v3573_v44, %v3574_v7  ;;  %v6099_v59 = vcombine.low %v8739_v3, %v3573_v44  ;;  %v8764_v25 = vrot.slane %v6100_v12, 5 }
 0x31e   : > { %v6124_v49 = vcombine.low %v3615_v38, %v3574_v7  ;;  %3535 = vst.msk [vmem:[#allocation2 + $0x28] sm:$0xf] %vm3528_vm13, %v6221_v6  ;;  %v6219_v11 = vpack.c.bf16 %v3291_v14, %v3291_v14  ;;  %v3294_v28 = vmul.f32 %v3254_v41, %v10477_v20  ;;  %v3252_v18 = vmax.f32 %v3108_v1, 0.0  ;;  %v6501_v0 = vld [vmem:[%s8686_s28 + $0x10] sm:$0xff]  }
 0x31f   : > { %4060 = vrot.lane.b32.xlu0 %v8755_v34, %s6573_s17  ;;  %v3967_v35 = vrot.slane %v6099_v59, 5  ;;  %v3760_v19 = vshrl.u32 %v6100_v12, 16  ;;  %v3763_v16 = vshll.u32 %v6100_v12, 16  ;;  %6336 = vmatmul.mubr.msk.bf16.gmra.mxu1 %vm1960_vm7, %v2964_v13  ;;  %v3751_v33 = vshrl.u32 %v6099_v59, 16 }
 0x320   : > { %4168 = vrot.lane.b32.xlu1 %v6124_v49, %s6575_s12  ;;  %3533 = vst.msk [vmem:[#allocation2 + $0x20] sm:$0xf] %vm3528_vm13, %v6219_v11  ;;  %v6222_v23 = vpack.c.bf16 %v3294_v28, %v3294_v28  ;;  %v3292_v26 = vmul.f32 %v3252_v18, %v10478_v54  ;;  %v3754_v50 = vshll.u32 %v6099_v59, 16  ;;  %v4600_v27 = vshrl.u32 %v8764_v25, 16  ;;  %5310 = vmatpush1.bf16.msra.mxu1 %v6501_v0  ;;  %v6540_v54 = vld [vmem:[#allocation2 + $0xc] sm:$0xf] }
 0x321   : > { %v3970_v48 = vsel %vm1550_vm3, %v3967_v35, %v8764_v25  ;;  %v3762_v43 = vrot.slane %v3760_v19, 4  ;;  %v3765_v32 = vrot.slane %v3763_v16, 5  ;;  %v3753_v5 = vrot.slane %v3751_v33, 4  ;;  %5311 = vmatprep.subr.bf16.mxu1 %v10424_v10  ;;  %v6503_v16 = vld [vmem:[%s8686_s28] sm:$0xff]  }
 0x322   : > { %3536 = vst.msk [vmem:[#allocation2 + $0x2c] sm:$0xf] %vm3528_vm13, %v6222_v23  ;;  %v6220_v40 = vpack.c.bf16 %v3292_v26, %v3292_v26  ;;  %v3756_v39 = vrot.slane %v3754_v50, 5  ;;  %v3968_v21 = vsel %vm1550_vm3, %v3966_v60, %v3967_v35  ;;  %v4603_v63 = vshll.u32 %v8764_v25, 16  ;;  %v6502_v60 = vld [vmem:[%s8686_s28 + $0x8] sm:$0xff]  }
 0x323   : > { %4119 = vrot.lane.b32.xlu0 %v3970_v48, %s6571_s22  ;;  %v2892_v47 = vpop.f32.mrf.mxu0  ;;  %v8777_v31 = vor.u32 %v3765_v32, %v3762_v43  ;;  %v8801_v59 = vrot.slane %v4600_v27, 3  ;;  %v6507_v27 = vld [vmem:[%s8686_s28 + $0x78] sm:$0xff]  }
 0x324   : > { %4117 = vrot.lane.b32.xlu1 %v3967_v35, %s6571_s22  ;;  %3534 = vst.msk [vmem:[#allocation2 + $0x24] sm:$0xf] %vm3528_vm13, %v6220_v40  ;;  %v2893_v62 = vadd.f32 %v8590_v55, %v2892_v47  ;;  %v8793_v45 = vor.u32 %v3756_v39, %v3753_v5  ;;  %v8803_v49 = vrot.slane %v4603_v63, 4  ;;  %5312 = vmatpush1.bf16.msra.mxu1 %v6502_v60 }
 0x325   : > { %v2894_v61 = vpop.f32.mrf.mxu0  ;;  %v3578_v6 = vld [vmem:[#allocation2 + $0x28] sm:$0xf]  ;;  %5313 = vmatprep.subr.bf16.mxu1 %v10424_v10 }
 0x326   : > { %v2943_v41 = vmax.f32 %v2893_v62, 0.0  ;;  %v3758_v18 = vsel %vm1325_vm6, %v8668_v58, %v8793_v45  ;;  %v8813_v35 = vsel %vm1325_vm6, %v8793_v45, %v8777_v31  ;;  %v4606_v32 = vor.u32 %v8803_v49, %v8801_v59  ;;  %v10479_v59 = vld [vmem:[#allocation30_spill] sm:$0xff] }
 0x327   : > { %4009 = vrot.lane.b32.xlu0 %v3968_v21, %s6575_s12  ;;  %v2895_v7 = vpop.f32.mrf.mxu0  ;;  %v3576_v38 = vld [vmem:[#allocation2 + $0x20] sm:$0xf] }
 0x328   : > { %4220 = vrot.lane.b32.xlu1 %v8777_v31, %s6573_s17  ;;  %v2896_v52 = vadd.f32 %v8590_v55, %v2895_v7  ;;  %v8823_v43 = vcombine.low %v8745_v37, %v3576_v38  ;;  %5314 = vmatpush1.bf16.msra.mxu1 %v6503_v16 }
 0x329   : > { %v2897_v12 = vpop.f32.mrf.mxu0  ;;  %v8791_v14 = vld [vmem:[#allocation2 + $0x2c] sm:$0xf]  ;;  %5315 = vmatprep.subr.bf16.mxu1 %v10424_v10 }
 0x32a   : > { %v2944_v1 = vmax.f32 %v2896_v52, 0.0  ;;  %v8797_v44 = vcombine.low %v3578_v6, %v8791_v14 }
 0x32b   : > { %4011 = vrot.lane.b32.xlu0 %v3970_v48, %s6575_s12  ;;  %v3577_v13 = vld [vmem:[#allocation2 + $0x24] sm:$0xf] }
 0x32c   : > { %v2965_v51 = vpack.c.bf16 %v2944_v1, %v2943_v41  ;;  %v8805_v11 = vcombine.low %v3577_v13, %v3578_v6  ;;  %v6101_v28 = vcombine.low %v3576_v38, %v3577_v13  ;;  %v3778_v19 = vshrl.u32 %v8797_v44, 16  ;;  %5316 = vmatpush2.bf16.msra.mxu1 %v6507_v27 }
 0x32d   : > { %v3973_v26 = vrot.slane %v8797_v44, 5  ;;  %v3781_v56 = vshll.u32 %v8797_v44, 16  ;;  %5317 = vmatprep.subr.bf16.mxu1 %v10424_v10 }
 0x32e   : > { %4172 = vrot.lane.b32.xlu1 %v8805_v11, %s6575_s12  ;;  %6339 = vmatprep.mubr.msk.bf16.mxu1 %vm1960_vm7, %v2965_v51  ;;  %v3971_v23 = vrot.slane %v6101_v28, 5  ;;  %v3769_v33 = vshrl.u32 %v6101_v28, 16  ;;  %v3772_v48 = vshll.u32 %v6101_v28, 16  ;;  %v3780_v50 = vrot.slane %v3778_v19, 4 }
 0x32f   : > { %3923 = vrot.lane.b32.xlu0 %v3758_v18, %s6571_s22  ;;  %v6313_v58 = vpop.f32.mrf.mxu1  ;;  %v3783_v13 = vrot.slane %v3781_v56, 5 }
 0x330   : > { %v3129_v40 = vadd.f32 %v6313_v58, %v8717_v17  ;;  %v2900_v47 = vpop.f32.mrf.mxu0  ;;  %v8832_v61 = vsel %vm1550_vm3, %v8764_v25, %v3971_v23  ;;  %v8837_v37 = vsel %vm1550_vm3, %v3971_v23, %v3973_v26  ;;  %v3771_v5 = vrot.slane %v3769_v33, 4 }
 0x331   : > { %v2901_v39 = vadd.f32 %v8590_v55, %v2900_v47  ;;  %v3120_v0 = vpop.f32.mrf.mxu1  ;;  %v4608_v62 = vshrl.u32 %v8832_v61, 16  ;;  %v4611_v21 = vshll.u32 %v8832_v61, 16  ;;  %v4633_v7 = vshrl.u32 %v8837_v37, 16 }
 0x332   : > { %v3257_v63 = vmax.f32 %v3129_v40, 0.0  ;;  %v3121_v25 = vadd.f32 %v8717_v17, %v3120_v0  ;;  %4121 = vrot.lane.b32.xlu1 %v8832_v61, %s6571_s22  ;;  %v2902_v52 = vpop.f32.mrf.mxu0  ;;  %v4636_v12 = vshll.u32 %v8837_v37, 16  ;;  %v3774_v6 = vrot.slane %v3772_v48, 5  ;;  %v6508_v40 = vld [vmem:[%s8686_s28 + $0x70] sm:$0xff]   ;;  %v10480_v0 = vld [vmem:[#allocation26_spill] sm:$0xff] }
 0x333   : > { %v4610_v60 = vrot.slane %v4608_v62, 3  ;;  %v4613_v41 = vrot.slane %v4611_v21, 4  ;;  %3925 = vrot.lane.b32.xlu0 %v8813_v35, %s6571_s22  ;;  %v6314_v1 = vpop.f32.mrf.mxu1  ;;  %v4635_v38 = vrot.slane %v4633_v7, 3  ;;  %v2945_v16 = vmax.f32 %v2901_v39, 0.0  ;;  %5318 = vmatpush2.bf16.msra.mxu1 %v6508_v40 }
 0x334   : > { %v3297_v49 = vmul.f32 %v3257_v63, %v10479_v59  ;;  %v3255_v51 = vmax.f32 %v3121_v25, 0.0  ;;  %v3132_v28 = vadd.f32 %v6314_v1, %v8717_v17  ;;  %v2903_v18 = vpop.f32.mrf.mxu0  ;;  %v4638_v19 = vrot.slane %v4636_v12, 4  ;;  %v10481_v25 = vld [vmem:[#allocation29_spill] sm:$0xff]  ;;  %5319 = vmatprep.subr.bf16.mxu1 %v10424_v10  ;;  %v10494_v59 = vld [vmem:[#allocation51_spill] sm:$0xff] }
 0x335   : > { %v2904_v23 = vadd.f32 %v8590_v55, %v2903_v18  ;;  %v3123_v33 = vpop.f32.mrf.mxu1  ;;  %v4614_v48 = vor.u32 %v4613_v41, %v4610_v60  ;;  %v8854_v58 = vor.u32 %v3774_v6, %v3771_v5  ;;  %v8867_v27 = vor.u32 %v3783_v13, %v3780_v50  ;;  %v10482_v1 = vld [vmem:[#allocation25_spill] sm:$0xff] }
 0x336   : > { %v6225_v47 = vpack.c.bf16 %v3297_v49, %v3297_v49  ;;  %v3295_v62 = vmul.f32 %v3255_v51, %v10480_v0  ;;  %v3258_v56 = vmax.f32 %v3132_v28, 0.0  ;;  %v3124_v21 = vadd.f32 %v8717_v17, %v3123_v33  ;;  %4123 = vrot.lane.b32.xlu1 %v8837_v37, %s6571_s22  ;;  %v2905_v7 = vpop.f32.mrf.mxu0  ;;  %v6510_v49 = vld [vmem:[%s8686_s28 + $0x60] sm:$0xff]   ;;  %v6511_v28 = vld [vmem:[%s8686_s28 + $0x58] sm:$0xff]  }
 0x337   : > { %v2946_v55 = vmax.f32 %v2904_v23, 0.0  ;;  %v8862_v39 = vor.u32 %v4638_v19, %v4635_v38  ;;  %4170 = vrot.lane.b32.xlu0 %v8823_v43, %s6575_s12  ;;  %v4615_v5 = vsel %vm2224_vm4, %v4606_v32, %v4614_v48  ;;  %v8877_v41 = vsel %vm1325_vm6, %v8854_v58, %v8867_v27  ;;  %v6509_v32 = vld [vmem:[%s8686_s28 + $0x68] sm:$0xff]  }
 0x338   : > { %3539 = vst.msk [vmem:[#allocation2 + $0x38] sm:$0xf] %vm3528_vm13, %v6225_v47  ;;  %v6223_v63 = vpack.c.bf16 %v3295_v62, %v3295_v62  ;;  %v3298_v52 = vmul.f32 %v3258_v56, %v10481_v25  ;;  %v3256_v12 = vmax.f32 %v3124_v21, 0.0  ;;  %6347 = vmatprep.mubr.msk.bf16.mxu0 %vm1960_vm7, %v4615_v5  ;;  %5320 = vmatpush2.bf16.msra.mxu1 %v6509_v32  ;;  %v6513_v7 = vld [vmem:[%s8686_s28 + $0x48] sm:$0xff]  }
 0x339   : > { %v2966_v6 = vpack.c.bf16 %v2946_v55, %v2945_v16  ;;  %v4640_v60 = vsel %vm2224_vm4, %v4614_v48, %v8862_v39  ;;  %5321 = vmatprep.subr.bf16.mxu1 %v10424_v10  ;;  %v6512_v48 = vld [vmem:[%s8686_s28 + $0x50] sm:$0xff]   ;;  %v8921_v21 = vsel %vm1325_vm6, %v8777_v31, %v8854_v58 }
 0x33a   : > { %3537 = vst.msk [vmem:[#allocation2 + $0x30] sm:$0xf] %vm3528_vm13, %v6223_v63  ;;  %v6226_v50 = vpack.c.bf16 %v3298_v52, %v3298_v52  ;;  %v3296_v38 = vmul.f32 %v3256_v12, %v10482_v1  ;;  %6348 = vmatmul.mubr.msk.bf16.vlgmr.msra.gmra.mxu0 %vm1960_vm7, %v4640_v60  ;;  %4224 = vrot.lane.b32.xlu1 %v8877_v41, %s6573_s17 }
 0x33b   : > { %4062 = vrot.lane.b32.xlu0 %v8823_v43, %s6573_s17  ;;  %6340 = vmatmul.mubr.msk.bf16.gmra.mxu1 %vm1960_vm7, %v2966_v6 }
 0x33c   : > { %3540 = vst.msk [vmem:[#allocation2 + $0x3c] sm:$0xf] %vm3528_vm13, %v6226_v50  ;;  %v6224_v13 = vpack.c.bf16 %v3296_v38, %v3296_v38  ;;  %5322 = vmatpush2.bf16.msra.mxu1 %v6510_v49  ;;  %v6517_v38 = vld [vmem:[%s8686_s28 + $0x40] sm:$0xff]  }
 0x33d   : > { %5323 = vmatprep.subr.bf16.mxu1 %v10424_v10 }
 0x33e   : > { %3538 = vst.msk [vmem:[#allocation2 + $0x34] sm:$0xf] %vm3528_vm13, %v6224_v13 }
 0x33f   : > { %4064 = vrot.lane.b32.xlu0 %v8805_v11, %s6573_s17  ;;  %v3582_v19 = vld [vmem:[#allocation2 + $0x38] sm:$0xf] }
 0x340   : > { %5324 = vmatpush2.bf16.msra.mxu1 %v6511_v28 }
 0x341   : > { %v3580_v51 = vld [vmem:[#allocation2 + $0x30] sm:$0xf]  ;;  %5325 = vmatprep.subr.bf16.mxu1 %v10424_v10 }
 0x342   : > { %v8897_v18 = vcombine.low %v8791_v14, %v3580_v51 }
 0x343   : > { %4013 = vrot.lane.b32.xlu0 %v8832_v61, %s6575_s12  ;;  %v8902_v16 = vld [vmem:[#allocation2 + $0x3c] sm:$0xf] }
 0x344   : > { %4174 = vrot.lane.b32.xlu1 %v8897_v18, %s6575_s12  ;;  %v8907_v23 = vcombine.low %v3582_v19, %v8902_v16  ;;  %5326 = vmatpush2.bf16.msra.mxu1 %v6512_v48 }
 0x345   : > { %v3581_v33 = vld [vmem:[#allocation2 + $0x34] sm:$0xf]  ;;  %5327 = vmatprep.subr.bf16.mxu1 %v10424_v10 }
 0x346   : > { %v8910_v14 = vcombine.low %v3581_v33, %v3582_v19  ;;  %v6103_v40 = vcombine.low %v3580_v51, %v3581_v33  ;;  %v3977_v47 = vrot.slane %v8907_v23, 5  ;;  %v3799_v12 = vshll.u32 %v8907_v23, 16 }
 0x347   : > { %4015 = vrot.lane.b32.xlu0 %v8837_v37, %s6575_s12 }
 0x348   : > { %4176 = vrot.lane.b32.xlu1 %v8910_v14, %s6575_s12  ;;  %v3975_v61 = vrot.slane %v6103_v40, 5  ;;  %v3787_v62 = vshrl.u32 %v6103_v40, 16  ;;  %v3790_v56 = vshll.u32 %v6103_v40, 16  ;;  %5328 = vmatpush2.bf16.msra.mxu1 %v6513_v7  ;;  %v3801_v48 = vrot.slane %v3799_v12, 5 }
 0x349   : > { %5329 = vmatprep.subr.bf16.mxu1 %v10424_v10 }
 0x34a   : > { %v3976_v55 = vsel %vm1550_vm3, %v3973_v26, %v3975_v61  ;;  %v8930_v37 = vsel %vm1550_vm3, %v3975_v61, %v3977_v47  ;;  %v3789_v5 = vrot.slane %v3787_v62, 4  ;;  %v3792_v63 = vrot.slane %v3790_v56, 5 }
 0x34b   : > { %4222 = vrot.lane.b32.xlu0 %v8921_v21, %s6573_s17  ;;  %v4658_v31 = vshrl.u32 %v3976_v55, 16  ;;  %v4661_v58 = vshll.u32 %v3976_v55, 16  ;;  %v4683_v52 = vshrl.u32 %v8930_v37, 16  ;;  %v4686_v44 = vshll.u32 %v8930_v37, 16 }
 0x34c   : > { %4125 = vrot.lane.b32.xlu1 %v3976_v55, %s6571_s22  ;;  %v3796_v26 = vshrl.u32 %v8907_v23, 16  ;;  %v3793_v51 = vor.u32 %v3792_v63, %v3789_v5  ;;  %5330 = vmatpush2.bf16.msra.mxu1 %v6517_v38 }
 0x34d   : > { %v4660_v6 = vrot.slane %v4658_v31, 3  ;;  %v4663_v60 = vrot.slane %v4661_v58, 4  ;;  %v4685_v32 = vrot.slane %v4683_v52, 3  ;;  %v4688_v50 = vrot.slane %v4686_v44, 4  ;;  %6387 = vmatprep.subr.bf16.mxu1 %v8689_v4 }
 0x34e   : > { %v3798_v33 = vrot.slane %v3796_v26, 4  ;;  %v8959_v40 = vsel %vm1325_vm6, %v8867_v27, %v3793_v51  ;;  %v10483_v27 = vld [vmem:[#allocation38_spill] sm:$0xff] }
 0x34f   : > { %3927 = vrot.lane.b32.xlu0 %v8921_v21, %s6571_s22  ;;  %v4664_v13 = vor.u32 %v4663_v60, %v4660_v6  ;;  %v8944_v49 = vor.u32 %v4688_v50, %v4685_v32  ;;  %v10484_v26 = vld [vmem:[#allocation34_spill] sm:$0xff]  ;;  %v10485_v50 = vld [vmem:[#allocation37_spill] sm:$0xff] }
 0x350   : > { %4127 = vrot.lane.b32.xlu1 %v8930_v37, %s6571_s22  ;;  %v8964_v62 = vor.u32 %v3801_v48, %v3798_v33 }
 0x351   : > { %v4665_v28 = vsel %vm2224_vm4, %v8862_v39, %v4664_v13  ;;  %v4690_v19 = vsel %vm2224_vm4, %v4664_v13, %v8944_v49 }
 0x352   : > { %6351 = vmatprep.mubr.msk.bf16.mxu0 %vm1960_vm7, %v4665_v28  ;;  %v8971_v5 = vsel %vm1325_vm6, %v3793_v51, %v8964_v62  ;;  %v10486_v28 = vld [vmem:[#allocation33_spill] sm:$0xff] }
 0x353   : > { %3929 = vrot.lane.b32.xlu0 %v8877_v41, %s6571_s22  ;;  %v6317_v10 = vpop.f32.mrf.mxu1  ;;  %6352 = vmatmul.mubr.msk.bf16.gmra.mxu0 %vm1960_vm7, %v4690_v19 }
 0x354   : > { %v3145_v39 = vadd.f32 %v6317_v10, %v8717_v17  ;;  %4226 = vrot.lane.b32.xlu1 %v8959_v40, %s6573_s17 }
 0x355   : > { %v3136_v61 = vpop.f32.mrf.mxu1 }
 0x356   : > { %v3261_v56 = vmax.f32 %v3145_v39, 0.0  ;;  %v3137_v4 = vadd.f32 %v8717_v17, %v3136_v61 }
 0x357   : > { %4066 = vrot.lane.b32.xlu0 %v8897_v18, %s6573_s17  ;;  %v6318_v7 = vpop.f32.mrf.mxu1 }
 0x358   : > { %v3301_v63 = vmul.f32 %v3261_v56, %v10483_v27  ;;  %v3259_v31 = vmax.f32 %v3137_v4, 0.0  ;;  %v3148_v58 = vadd.f32 %v6318_v7, %v8717_v17  ;;  %4228 = vrot.lane.b32.xlu1 %v8971_v5, %s6573_s17 }
 0x359   : > { %v3139_v52 = vpop.f32.mrf.mxu1 }
 0x35a   : > { %v6229_v44 = vpack.c.bf16 %v3301_v63, %v3301_v63  ;;  %v3299_v12 = vmul.f32 %v3259_v31, %v10484_v26  ;;  %v3262_v6 = vmax.f32 %v3148_v58, 0.0  ;;  %v3140_v60 = vadd.f32 %v8717_v17, %v3139_v52 }
 0x35b   : > { %4068 = vrot.lane.b32.xlu0 %v8910_v14, %s6573_s17 }
 0x35c   : > { %3543 = vst.msk [vmem:[#allocation2 + $0x48] sm:$0xf] %vm3528_vm13, %v6229_v44  ;;  %v6227_v32 = vpack.c.bf16 %v3299_v12, %v3299_v12  ;;  %v3302_v38 = vmul.f32 %v3262_v6, %v10485_v50  ;;  %v3260_v13 = vmax.f32 %v3140_v60, 0.0 }
 0x35e   : > { %3541 = vst.msk [vmem:[#allocation2 + $0x40] sm:$0xf] %vm3528_vm13, %v6227_v32  ;;  %v6230_v51 = vpack.c.bf16 %v3302_v38, %v3302_v38  ;;  %v3300_v19 = vmul.f32 %v3260_v13, %v10486_v28 }
 0x35f   : > { %4017 = vrot.lane.b32.xlu0 %v3976_v55, %s6575_s12 }
 0x360   : > { %3544 = vst.msk [vmem:[#allocation2 + $0x4c] sm:$0xf] %vm3528_vm13, %v6230_v51  ;;  %v6228_v33 = vpack.c.bf16 %v3300_v19, %v3300_v19 }
 0x362   : > { %3542 = vst.msk [vmem:[#allocation2 + $0x44] sm:$0xf] %vm3528_vm13, %v6228_v33 }
 0x363   : > { %4019 = vrot.lane.b32.xlu0 %v8930_v37, %s6575_s12  ;;  %v3586_v39 = vld [vmem:[#allocation2 + $0x48] sm:$0xf] }
 0x365   : > { %v3584_v48 = vld [vmem:[#allocation2 + $0x40] sm:$0xf] }
 0x366   : > { %v8991_v10 = vcombine.low %v8902_v16, %v3584_v48 }
 0x367   : > { %3931 = vrot.lane.b32.xlu0 %v8959_v40, %s6571_s22  ;;  %v8995_v61 = vld [vmem:[#allocation2 + $0x4c] sm:$0xf] }
 0x368   : > { %4178 = vrot.lane.b32.xlu1 %v8991_v10, %s6575_s12  ;;  %v9000_v55 = vcombine.low %v3586_v39, %v8995_v61 }
 0x369   : > { %v3585_v56 = vld [vmem:[#allocation2 + $0x44] sm:$0xf] }
 0x36a   : > { %v9002_v4 = vcombine.low %v3585_v56, %v3586_v39  ;;  %v6105_v37 = vcombine.low %v3584_v48, %v3585_v56  ;;  %v10359_v7 = vrot.slane %v9000_v55, 5  ;;  %v3814_v23 = vshrl.u32 %v9000_v55, 16 }
 0x36b   : > { %3933 = vrot.lane.b32.xlu0 %v8971_v5, %s6571_s22 }
 0x36c   : > { %4180 = vrot.lane.b32.xlu1 %v9002_v4, %s6575_s12  ;;  %v3979_v16 = vrot.slane %v6105_v37, 5  ;;  %v3805_v63 = vshrl.u32 %v6105_v37, 16  ;;  %v3808_v31 = vshll.u32 %v6105_v37, 16 }
 0x36e   : > { %v3980_v58 = vsel %vm1550_vm3, %v3977_v47, %v3979_v16  ;;  %v3982_v52 = vsel %vm1550_vm3, %v3979_v16, %v10359_v7  ;;  %v3807_v44 = vrot.slane %v3805_v63, 4  ;;  %v3810_v12 = vrot.slane %v3808_v31, 5 }
 0x36f   : > { %4070 = vrot.lane.b32.xlu0 %v8991_v10, %s6573_s17  ;;  %v6321_v6 = vpop.f32.mrf.mxu1  ;;  %v4708_v60 = vshrl.u32 %v3980_v58, 16  ;;  %v4711_v32 = vshll.u32 %v3980_v58, 16  ;;  %v4733_v38 = vshrl.u32 %v3982_v52, 16  ;;  %v4736_v13 = vshll.u32 %v3982_v52, 16 }
 0x370   : > { %v3161_v51 = vadd.f32 %v6321_v6, %v8717_v17  ;;  %4129 = vrot.lane.b32.xlu1 %v3980_v58, %s6571_s22  ;;  %v3817_v47 = vshll.u32 %v9000_v55, 16  ;;  %v3811_v7 = vor.u32 %v3810_v12, %v3807_v44 }
 0x371   : > { %v4710_v19 = vrot.slane %v4708_v60, 3  ;;  %v4713_v33 = vrot.slane %v4711_v32, 4  ;;  %v3152_v48 = vpop.f32.mrf.mxu1  ;;  %v4735_v39 = vrot.slane %v4733_v38, 3  ;;  %v4738_v56 = vrot.slane %v4736_v13, 4 }
 0x372   : > { %v3265_v37 = vmax.f32 %v3161_v51, 0.0  ;;  %v3153_v16 = vadd.f32 %v8717_v17, %v3152_v48  ;;  %v3816_v51 = vrot.slane %v3814_v23, 4  ;;  %v3819_v48 = vrot.slane %v3817_v47, 5  ;;  %v10489_v47 = vld [vmem:[#allocation43_spill] sm:$0xff] }
 0x373   : > { %4072 = vrot.lane.b32.xlu0 %v9002_v4, %s6573_s17  ;;  %v6322_v63 = vpop.f32.mrf.mxu1  ;;  %v4714_v31 = vor.u32 %v4713_v33, %v4710_v19  ;;  %v9024_v6 = vor.u32 %v4738_v56, %v4735_v39  ;;  %v10488_v33 = vld [vmem:[#allocation42_spill] sm:$0xff] }
 0x374   : > { %v3305_v50 = vmul.f32 %v3265_v37, %v10487_v30  ;;  %v3263_v27 = vmax.f32 %v3153_v16, 0.0  ;;  %v3164_v60 = vadd.f32 %v6322_v63, %v8717_v17  ;;  %4131 = vrot.lane.b32.xlu1 %v3982_v52, %s6571_s22  ;;  %v10490_v37 = vld [vmem:[#allocation41_spill] sm:$0xff] }
 0x375   : > { %v3155_v32 = vpop.f32.mrf.mxu1  ;;  %v4715_v38 = vsel %vm2224_vm4, %v8944_v49, %v4714_v31  ;;  %v4740_v13 = vsel %vm2224_vm4, %v4714_v31, %v9024_v6  ;;  %v9040_v49 = vsel %vm1325_vm6, %v8964_v62, %v3811_v7  ;;  %v9061_v31 = vpop.permute.xlu1 %3921 }
 0x376   : > { %v6233_v19 = vpack.c.bf16 %v3305_v50, %v3305_v50  ;;  %v3303_v39 = vmul.f32 %v3263_v27, %v10488_v33  ;;  %v3266_v44 = vmax.f32 %v3164_v60, 0.0  ;;  %v3156_v12 = vadd.f32 %v8717_v17, %v3155_v32  ;;  %6355 = vmatprep.mubr.msk.bf16.mxu0 %vm1960_vm7, %v4715_v38 }
 0x377   : > { %4021 = vrot.lane.b32.xlu0 %v3980_v58, %s6575_s12  ;;  %6356 = vmatmul.mubr.msk.bf16.gmra.mxu0 %vm1960_vm7, %v4740_v13  ;;  %v9046_v27 = vor.u32 %v3819_v48, %v3816_v51 }
 0x378   : > { %3547 = vst.msk [vmem:[#allocation2 + $0x58] sm:$0xf] %vm3528_vm13, %v6233_v19  ;;  %v6231_v23 = vpack.c.bf16 %v3303_v39, %v3303_v39  ;;  %v3306_v50 = vmul.f32 %v3266_v44, %v10489_v47  ;;  %v3264_v56 = vmax.f32 %v3156_v12, 0.0  ;;  %4230 = vrot.lane.b32.xlu1 %v9040_v49, %s6573_s17 }
 0x379   : > { %v9053_v62 = vsel %vm1325_vm6, %v3811_v7, %v9046_v27  ;;  %v9075_v51 = vpop.permute.xlu1 %4007 }
 0x37a   : > { %3545 = vst.msk [vmem:[#allocation2 + $0x50] sm:$0xf] %vm3528_vm13, %v6231_v23  ;;  %v6234_v58 = vpack.c.bf16 %v3306_v50, %v3306_v50  ;;  %v3304_v16 = vmul.f32 %v3264_v56, %v10490_v37  ;;  %v10493_v23 = vrot.slane %v9000_v55, 5 }
 0x37b   : > { %4023 = vrot.lane.b32.xlu0 %v3982_v52, %s6575_s12 }
 0x37c   : > { %3548 = vst.msk [vmem:[#allocation2 + $0x5c] sm:$0xf] %vm3528_vm13, %v6234_v58  ;;  %v6232_v63 = vpack.c.bf16 %v3304_v16, %v3304_v16  ;;  %4232 = vrot.lane.b32.xlu1 %v9053_v62, %s6573_s17 }
 0x37e   : > { %3546 = vst.msk [vmem:[#allocation2 + $0x54] sm:$0xf] %vm3528_vm13, %v6232_v63 }
 0x37f   : > { %3935 = vrot.lane.b32.xlu0 %v9040_v49, %s6571_s22  ;;  %v3590_v7 = vld [vmem:[#allocation2 + $0x58] sm:$0xf] }
 0x381   : > { %v3588_v60 = vld [vmem:[#allocation2 + $0x50] sm:$0xf] }
 0x382   : > { %v9064_v52 = vcombine.low %v8995_v61, %v3588_v60 }
 0x383   : > { %3937 = vrot.lane.b32.xlu0 %v9053_v62, %s6571_s22  ;;  %v9068_v32 = vld [vmem:[#allocation2 + $0x5c] sm:$0xf] }
 0x384   : > { %10491 = vst [vmem:[#allocation71_spill] sm:$0xff] %v9064_v52  ;;  %4182 = vrot.lane.b32.xlu1 %v9064_v52, %s6575_s12  ;;  %v9073_v38 = vcombine.low %v3590_v7, %v9068_v32 }
 0x385   : > { %v3589_v13 = vld [vmem:[#allocation2 + $0x54] sm:$0xf] }
 0x386   : > { %v9077_v48 = vcombine.low %v3589_v13, %v3590_v7  ;;  %v6107_v19 = vcombine.low %v3588_v60, %v3589_v13  ;;  %v10361_v39 = vrot.slane %v9073_v38, 5  ;;  %v3832_v55 = vshrl.u32 %v9073_v38, 16 }
 0x387   : > { %4074 = vrot.lane.b32.xlu0 %v9064_v52, %s6573_s17 }
 0x388   : > { %10492 = vst [vmem:[#allocation72_spill] sm:$0xff] %v9077_v48  ;;  %4184 = vrot.lane.b32.xlu1 %v9077_v48, %s6575_s12  ;;  %v3983_v61 = vrot.slane %v6107_v19, 5  ;;  %v3823_v44 = vshrl.u32 %v6107_v19, 16  ;;  %v3826_v12 = vshll.u32 %v6107_v19, 16 }
 0x38a   : > { %v3984_v50 = vsel %vm1550_vm3, %v10493_v23, %v3983_v61  ;;  %v3986_v56 = vsel %vm1550_vm3, %v3983_v61, %v10361_v39  ;;  %v3825_v58 = vrot.slane %v3823_v44, 4  ;;  %v3828_v16 = vrot.slane %v3826_v12, 5 }
 0x38b   : > { %4076 = vrot.lane.b32.xlu0 %v9077_v48, %s6573_s17  ;;  %v6325_v63 = vpop.f32.mrf.mxu1  ;;  %v4758_v60 = vshrl.u32 %v3984_v50, 16  ;;  %v4761_v7 = vshll.u32 %v3984_v50, 16  ;;  %v4783_v13 = vshrl.u32 %v3986_v56, 16  ;;  %v4786_v47 = vshll.u32 %v3986_v56, 16 }
 0x38c   : > { %v3177_v19 = vadd.f32 %v6325_v63, %v8717_v17  ;;  %v9093_v30 = vpop.permute.xlu1 %4058  ;;  %4133 = vrot.lane.b32.xlu1 %v3984_v50, %s6571_s22  ;;  %v3835_v39 = vshll.u32 %v9073_v38, 16  ;;  %v3829_v25 = vor.u32 %v3828_v16, %v3825_v58  ;;  %v10495_v58 = vld [vmem:[#allocation48_spill] sm:$0xff] }
 0x38d   : > { %v4760_v23 = vrot.slane %v4758_v60, 3  ;;  %v4763_v61 = vrot.slane %v4761_v7, 4  ;;  %v3168_v44 = vpop.f32.mrf.mxu1  ;;  %v4785_v12 = vrot.slane %v4783_v13, 3  ;;  %v4788_v26 = vrot.slane %v4786_v47, 4 }
 0x38e   : > { %v3269_v37 = vmax.f32 %v3177_v19, 0.0  ;;  %v3169_v33 = vadd.f32 %v8717_v17, %v3168_v44  ;;  %v3834_v60 = vrot.slane %v3832_v55, 4  ;;  %v3837_v47 = vrot.slane %v3835_v39, 5 }
 0x38f   : > { %4025 = vrot.lane.b32.xlu0 %v3984_v50, %s6575_s12  ;;  %v6326_v28 = vpop.f32.mrf.mxu1  ;;  %v4764_v63 = vor.u32 %v4763_v61, %v4760_v23  ;;  %v9109_v50 = vor.u32 %v4788_v26, %v4785_v12  ;;  %v10497_v12 = vld [vmem:[#allocation47_spill] sm:$0xff] }
 0x390   : > { %v3309_v1 = vmul.f32 %v3269_v37, %v10494_v59  ;;  %v3267_v0 = vmax.f32 %v3169_v33, 0.0  ;;  %4135 = vrot.lane.b32.xlu1 %v3986_v56, %s6571_s22  ;;  %v3180_v7 = vadd.f32 %v6326_v28, %v8717_v17 }
 0x391   : > { %v9105_v20 = vpop.permute.xlu0 %4060  ;;  %v4765_v19 = vsel %vm2224_vm4, %v9024_v6, %v4764_v63  ;;  %v3171_v37 = vpop.f32.mrf.mxu1  ;;  %v4790_v28 = vsel %vm2224_vm4, %v4764_v63, %v9109_v50  ;;  %v9119_v6 = vsel %vm1325_vm6, %v9046_v27, %v3829_v25 }
 0x392   : > { %v9103_v13 = vpop.permute.xlu1 %4168  ;;  %v6237_v23 = vpack.c.bf16 %v3309_v1, %v3309_v1  ;;  %v3307_v16 = vmul.f32 %v3267_v0, %v10495_v58  ;;  %6359 = vmatprep.mubr.msk.bf16.mxu0 %vm1960_vm7, %v4765_v19  ;;  %v3270_v33 = vmax.f32 %v3180_v7, 0.0  ;;  %v3172_v55 = vadd.f32 %v8717_v17, %v3171_v37  ;;  %v10496_v0 = vld [vmem:[#allocation50_spill] sm:$0xff]  ;;  %v3569_v37 = vld [vmem:[#allocation2 + $0x4] sm:$0x8] }
 0x393   : > { %4027 = vrot.lane.b32.xlu0 %v3986_v56, %s6575_s12  ;;  %6360 = vmatmul.mubr.msk.bf16.gmra.mxu0 %vm1960_vm7, %v4790_v28  ;;  %v9128_v56 = vor.u32 %v3837_v47, %v3834_v60 }
 0x394   : > { %3551 = vst.msk [vmem:[#allocation2 + $0x68] sm:$0xf] %vm3528_vm13, %v6237_v23  ;;  %v6235_v1 = vpack.c.bf16 %v3307_v16, %v3307_v16  ;;  %4234 = vrot.lane.b32.xlu1 %v9119_v6, %s6573_s17  ;;  %v3310_v26 = vmul.f32 %v3270_v33, %v10496_v0  ;;  %v3268_v39 = vmax.f32 %v3172_v55, 0.0 }
 0x395   : > { %v9126_v61 = vpop.permute.xlu0 %4119  ;;  %v9138_v7 = vsel %vm1325_vm6, %v3829_v25, %v9128_v56 }
 0x396   : > { %3549 = vst.msk [vmem:[#allocation2 + $0x60] sm:$0xf] %vm3528_vm13, %v6235_v1  ;;  %v9131_v44 = vpop.permute.xlu1 %4117  ;;  %v6238_v27 = vpack.c.bf16 %v3310_v26, %v3310_v26  ;;  %v3308_v63 = vmul.f32 %v3268_v39, %v10497_v12  ;;  %10498 = vst [vmem:[#allocation73_spill] sm:$0xff] %v9138_v7 }
 0x397   : > { %3939 = vrot.lane.b32.xlu0 %v9119_v6, %s6571_s22 }
 0x398   : > { %4236 = vrot.lane.b32.xlu1 %v9138_v7, %s6573_s17  ;;  %3552 = vst.msk [vmem:[#allocation2 + $0x6c] sm:$0xf] %vm3528_vm13, %v6238_v27  ;;  %v6236_v60 = vpack.c.bf16 %v3308_v63, %v3308_v63  ;;  %v6539_v27 = vld [vmem:[#allocation2 + $0x8] sm:$0xf] }
 0x399   : > { %v4010_v19 = vpop.permute.xlu0 %4009 }
 0x39a   : > { %3550 = vst.msk [vmem:[#allocation2 + $0x64] sm:$0xf] %vm3528_vm13, %v6236_v60  ;;  %v9146_v47 = vpop.permute.xlu1 %4220 }
 0x39b   : > { %3941 = vrot.lane.b32.xlu0 %v9138_v7, %s6571_s22  ;;  %v3594_v55 = vld [vmem:[#allocation2 + $0x68] sm:$0xf] }
 0x39c   : > { %v10502_v7 = vld [vmem:[#allocation64_spill] sm:$0xff] }
 0x39d   : > { %v9148_v23 = vpop.permute.xlu0 %4011  ;;  %v3592_v16 = vld [vmem:[#allocation2 + $0x60] sm:$0xf] }
 0x39e   : > { %v9151_v25 = vcombine.low %v9068_v32, %v3592_v16  ;;  %v6077_v32 = vcombine.low %v3569_v37, %v6539_v27  ;;  %v6078_v37 = vcombine.low %v6540_v54, %v8739_v3 }
 0x39f   : > { %v9159_v28 = vld [vmem:[#allocation2 + $0x6c] sm:$0xf] }
 0x3a0   : > { %10499 = vst [vmem:[#allocation86_spill] sm:$0xff] %v9151_v25  ;;  %v9153_v33 = vpop.permute.xlu1 %4172  ;;  %4186 = vrot.lane.b32.xlu1 %v9151_v25, %s6575_s12  ;;  %4078 = vrot.lane.b32.xlu0 %v9151_v25, %s6573_s17  ;;  %v9162_v26 = vcombine.low %v3594_v55, %v9159_v28  ;;  %v4271_v22 = vsel %vm1960_vm7, %v6077_v32, %v9061_v31 }
 0x3a1   : > { %v3924_v1 = vpop.permute.xlu0 %3923  ;;  %v3593_v39 = vld [vmem:[#allocation2 + $0x64] sm:$0xf] }
 0x3a2   : > { %v9164_v63 = vcombine.low %v3593_v39, %v3594_v55  ;;  %v6109_v60 = vcombine.low %v3592_v16, %v3593_v39  ;;  %v10362_v12 = vrot.slane %v9162_v26, 5  ;;  %v10501_v16 = vrot.slane %v9073_v38, 5 }
 0x3a3   : > { %v4274_v31 = vsel %vm1960_vm7, %v6078_v37, %v3924_v1 }
 0x3a4   : > { %10500 = vst [vmem:[#allocation87_spill] sm:$0xff] %v9164_v63  ;;  %4188 = vrot.lane.b32.xlu1 %v9164_v63, %s6575_s12  ;;  %4080 = vrot.lane.b32.xlu0 %v9164_v63, %s6573_s17  ;;  %v3987_v59 = vrot.slane %v6109_v60, 5  ;;  %v4122_v58 = vpop.permute.xlu1 %4121  ;;  %v3841_v32 = vshrl.u32 %v6109_v60, 16 }
 0x3a5   : > { %v3926_v0 = vpop.permute.xlu0 %3925 }
 0x3a6   : > { %v3988_v39 = vsel %vm1550_vm3, %v10501_v16, %v3987_v59  ;;  %v3990_v27 = vsel %vm1550_vm3, %v3987_v59, %v10362_v12  ;;  %v3844_v12 = vshll.u32 %v6109_v60, 16 }
 0x3a7   : > { %v6329_v55 = vpop.f32.mrf.mxu1  ;;  %v4808_v2 = vshrl.u32 %v3988_v39, 16  ;;  %v4811_v53 = vshll.u32 %v3988_v39, 16  ;;  %v4833_v8 = vshrl.u32 %v3990_v27, 16  ;;  %v4836_v38 = vshll.u32 %v3990_v27, 16 }
 0x3a8   : > { %v3193_v29 = vadd.f32 %v6329_v55, %v8717_v17  ;;  %4137 = vrot.lane.b32.xlu1 %v3988_v39, %s6571_s22  ;;  %4029 = vrot.lane.b32.xlu0 %v3988_v39, %s6575_s12  ;;  %v4333_v17 = vsel %vm2046_vm9, %v4271_v22, %v9075_v51  ;;  %v9189_v55 = vld [vmem:[%s8713_s18] ss:$0 sm:$0xff]  ;;  %v4335_v39 = vsel %vm2046_vm9, %v4274_v31, %v4010_v19  ;;  %v9194_v52 = vpop.permute.xlu1 %4123  ;;  %v3853_v19 = vshll.u32 %v9162_v26, 16 }
 0x3a9   : > { %v9184_v3 = vpop.permute.xlu0 %4170  ;;  %v3184_v54 = vpop.f32.mrf.mxu1  ;;  %v4810_v42 = vrot.slane %v4808_v2, 3  ;;  %v4813_v59 = vrot.slane %v4811_v53, 4  ;;  %v4835_v63 = vrot.slane %v4833_v8, 3  ;;  %v4838_v25 = vrot.slane %v4836_v38, 4 }
 0x3aa   : > { %v3273_v16 = vmax.f32 %v3193_v29, 0.0  ;;  %v3185_v1 = vadd.f32 %v9189_v55, %v3184_v54  ;;  %v3850_v8 = vshrl.u32 %v9162_v26, 16  ;;  %v3843_v38 = vrot.slane %v3841_v32, 4 }
 0x3ab   : > { %v6330_v37 = vpop.f32.mrf.mxu1  ;;  %v4814_v53 = vor.u32 %v4813_v59, %v4810_v42  ;;  %v9199_v60 = vor.u32 %v4838_v25, %v4835_v63  ;;  %v4277_v42 = vsel %vm1960_vm7, %v8755_v34, %v3926_v0  ;;  %v10503_v59 = vld [vmem:[#allocation61_spill] sm:$0xff]  ;;  %v4375_v25 = vsel %vm2132_vm11, %v4333_v17, %v9093_v30 }
 0x3ac   : > { %v3313_v48 = vmul.f32 %v3273_v16, %v10502_v7  ;;  %v3196_v2 = vadd.f32 %v9189_v55, %v6330_v37  ;;  %v3271_v29 = vmax.f32 %v3185_v1, 0.0  ;;  %4139 = vrot.lane.b32.xlu1 %v3990_v27, %s6571_s22  ;;  %4031 = vrot.lane.b32.xlu0 %v3990_v27, %s6575_s12  ;;  %v3846_v16 = vrot.slane %v3844_v12, 5  ;;  %v10504_v34 = vld [vmem:[#allocation57_spill] sm:$0xff] }
 0x3ad   : > { %v4063_v22 = vpop.permute.xlu0 %4062  ;;  %v3187_v51 = vpop.f32.mrf.mxu1  ;;  %v4815_v27 = vsel %vm2224_vm4, %v9109_v50, %v4814_v53  ;;  %v4377_v12 = vsel %vm2132_vm11, %v4335_v39, %v9105_v20  ;;  %v4424_v63 = vsel %vm1960_vm7, %v8921_v21, %v4122_v58  ;;  %v4840_v30 = vsel %vm2224_vm4, %v4814_v53, %v9199_v60  ;;  %v10505_v58 = vld [vmem:[#allocation54_spill] sm:$0xff] }
 0x3ae   : > { %v6241_v31 = vpack.c.bf16 %v3313_v48, %v3313_v48  ;;  %v3274_v54 = vmax.f32 %v3196_v2, 0.0  ;;  %v3311_v1 = vmul.f32 %v3271_v29, %v10503_v59  ;;  %v3188_v37 = vadd.f32 %v9189_v55, %v3187_v51  ;;  %6363 = vmatprep.mubr.msk.bf16.mxu0 %vm1960_vm7, %v4815_v27 }
 0x3af   : > { %v4418_v48 = vsel %vm1960_vm7, %v8793_v45, %v9131_v44  ;;  %v4225_v44 = vpop.permute.xlu1 %4224  ;;  %v4337_v20 = vsel %vm2046_vm9, %v4277_v42, %v9148_v23  ;;  %6364 = vmatmul.mubr.msk.bf16.gmra.mxu0 %vm1960_vm7, %v4840_v30  ;;  %v3847_v39 = vor.u32 %v3846_v16, %v3843_v38  ;;  %v3852_v2 = vrot.slane %v3850_v8, 4 }
 0x3b0   : > { %3555 = vst.msk [vmem:[#allocation2 + $0x78] sm:$0xf] %vm3528_vm13, %v6241_v31  ;;  %v3314_v0 = vmul.f32 %v3274_v54, %v10504_v34  ;;  %v6239_v50 = vpack.c.bf16 %v3311_v1, %v3311_v1  ;;  %v3272_v32 = vmax.f32 %v3188_v37, 0.0  ;;  %v4480_v29 = vsel %vm2046_vm9, %v4418_v48, %v9103_v13 }
 0x3b1   : > { %v9223_v17 = vpop.permute.xlu0 %4064  ;;  %v4379_v21 = vsel %vm2132_vm11, %v4337_v20, %v4063_v22  ;;  %v3855_v51 = vrot.slane %v3853_v19, 5  ;;  %v4569_v31 = vshrl.u32 %v4375_v25, 16  ;;  %v4522_v54 = vsel %vm2132_vm11, %v4480_v29, %v9146_v47 }
 0x3b2   : > { %v6242_v45 = vpack.c.bf16 %v3314_v0, %v3314_v0  ;;  %3553 = vst.msk [vmem:[#allocation2 + $0x70] sm:$0xf] %vm3528_vm13, %v6239_v50  ;;  %v3312_v53 = vmul.f32 %v3272_v32, %v10505_v58  ;;  %v4484_v23 = vsel %vm2046_vm9, %v4424_v63, %v9153_v33  ;;  %v9240_v8 = vsel %vm1325_vm6, %v9128_v56, %v3847_v39 }
 0x3b3   : > { %v4576_v13 = vshrl.u32 %v4377_v12, 16  ;;  %v4579_v38 = vshll.u32 %v4377_v12, 16  ;;  %v4526_v22 = vsel %vm2132_vm11, %v4484_v23, %v4225_v44  ;;  %4238 = vrot.lane.b32.xlu1 %v9240_v8, %s6573_s17  ;;  %3943 = vrot.lane.b32.xlu0 %v9240_v8, %s6571_s22  ;;  %v4572_v19 = vshll.u32 %v4375_v25, 16 }
 0x3b4   : > { %3556 = vst.msk [vmem:[#allocation2 + $0x7c] sm:$0xf] %vm3528_vm13, %v6242_v45  ;;  %v6240_v16 = vpack.c.bf16 %v3312_v53, %v3312_v53  ;;  %v4616_v42 = vshrl.u32 %v4379_v21, 16  ;;  %v4619_v33 = vshll.u32 %v4379_v21, 16  ;;  %v9249_v1 = vor.u32 %v3855_v51, %v3852_v2 }
 0x3b5   : > { %v9247_v47 = vpop.permute.xlu0 %4013  ;;  %v4584_v37 = vshrl.u32 %v4522_v54, 16  ;;  %v4587_v27 = vshll.u32 %v4522_v54, 16  ;;  %v4624_v48 = vshrl.u32 %v4526_v22, 16  ;;  %v4627_v12 = vshll.u32 %v4526_v22, 16 }
 0x3b6   : > { %v4175_v56 = vpop.permute.xlu1 %4174  ;;  %3554 = vst.msk [vmem:[#allocation2 + $0x74] sm:$0xf] %vm3528_vm13, %v6240_v16  ;;  %v9254_v0 = vsel %vm1325_vm6, %v3847_v39, %v9249_v1  ;;  %v4578_v63 = vrot.slane %v4576_v13, 3  ;;  %v4581_v50 = vrot.slane %v4579_v38, 4  ;;  %v4571_v32 = vrot.slane %v4569_v31, 3 }
 0x3b7   : > { %4240 = vrot.lane.b32.xlu1 %v9254_v0, %s6573_s17  ;;  %3945 = vrot.lane.b32.xlu0 %v9254_v0, %s6571_s22  ;;  %v4574_v30 = vrot.slane %v4572_v19, 4  ;;  %v4618_v45 = vrot.slane %v4616_v42, 3  ;;  %v4621_v44 = vrot.slane %v4619_v33, 4  ;;  %v4421_v39 = vsel %vm1960_vm7, %v8813_v35, %v9126_v61  ;;  %v3598_v19 = vld [vmem:[#allocation2 + $0x78] sm:$0xf] }
 0x3b8   : > { %v4586_v21 = vrot.slane %v4584_v37, 3  ;;  %v4589_v53 = vrot.slane %v4587_v27, 4  ;;  %v4626_v51 = vrot.slane %v4624_v48, 3  ;;  %v4629_v54 = vrot.slane %v4627_v12, 4 }
 0x3b9   : > { %v9260_v25 = vpop.permute.xlu0 %4015  ;;  %v3596_v2 = vld [vmem:[#allocation2 + $0x70] sm:$0xf]  ;;  %v4582_v13 = vor.u32 %v4581_v50, %v4578_v63  ;;  %v4482_v31 = vsel %vm2046_vm9, %v4421_v39, %v9184_v3  ;;  %v4575_v61 = vor.u32 %v4574_v30, %v4571_v32  ;;  %v4427_v48 = vsel %vm1960_vm7, %v8877_v41, %v9194_v52 }
 0x3ba   : > { %v4177_v20 = vpop.permute.xlu1 %4176  ;;  %v9266_v29 = vcombine.low %v9159_v28, %v3596_v2  ;;  %v9276_v28 = vor.u32 %v4621_v44, %v4618_v45  ;;  %v4590_v27 = vor.u32 %v4589_v53, %v4586_v21  ;;  %v9287_v12 = vor.u32 %v4629_v54, %v4626_v51 }
 0x3bb   : > { %v9268_v23 = vld [vmem:[#allocation2 + $0x7c] sm:$0xf]  ;;  %v4486_v50 = vsel %vm2046_vm9, %v4427_v48, %v4175_v56  ;;  %v4583_v44 = vsel %vm2224_vm4, %v4575_v61, %v4582_v13  ;;  %v6543_v61 = vld [vmem:[%s8686_s28 + $0x80] sm:$0xff]  }
 0x3bc   : > { %4190 = vrot.lane.b32.xlu1 %v9266_v29, %s6575_s12  ;;  %4082 = vrot.lane.b32.xlu0 %v9266_v29, %s6573_s17  ;;  %v9282_v3 = vcombine.low %v3598_v19, %v9268_v23  ;;  %v9306_v39 = vsel %vm2224_vm4, %v4582_v13, %v9276_v28 }
 0x3bd   : > { %v4223_v35 = vpop.permute.xlu0 %4222  ;;  %v3597_v16 = vld [vmem:[#allocation2 + $0x74] sm:$0xf] }
 0x3be   : > { %v4524_v38 = vsel %vm2132_vm11, %v4482_v31, %v4223_v35  ;;  %v4126_v22 = vpop.permute.xlu1 %4125  ;;  %v9279_v37 = vcombine.low %v3597_v16, %v3598_v19  ;;  %v9289_v63 = vcombine.low %v3596_v2, %v3597_v16  ;;  %v10368_v54 = vrot.slane %v9282_v3, 5 }
 0x3bf   : > { %v4591_v42 = vshrl.u32 %v4524_v38, 16  ;;  %v4594_v33 = vshll.u32 %v4524_v38, 16  ;;  %v4430_v41 = vsel %vm1960_vm7, %v8959_v40, %v4126_v22  ;;  %v10506_v35 = vrot.slane %v9162_v26, 5 }
 0x3c0   : > { %4192 = vrot.lane.b32.xlu1 %v9279_v37, %s6575_s12  ;;  %4084 = vrot.lane.b32.xlu0 %v9279_v37, %s6573_s17  ;;  %v3991_v56 = vrot.slane %v9289_v63, 5  ;;  %v4488_v19 = vsel %vm2046_vm9, %v4430_v41, %v4177_v20  ;;  %v10507_v41 = vld [vmem:[#allocation69_spill] sm:$0xff] }
 0x3c1   : > { %v4593_v32 = vrot.slane %v4591_v42, 3  ;;  %v4596_v30 = vrot.slane %v4594_v33, 4  ;;  %v3928_v45 = vpop.permute.xlu0 %3927 }
 0x3c2   : > { %v4280_v52 = vsel %vm1960_vm7, %v8823_v43, %v3928_v45  ;;  %v9301_v2 = vpop.permute.xlu1 %4127  ;;  %v3992_v13 = vsel %vm1550_vm3, %v10506_v35, %v3991_v56 }
 0x3c3   : > { %v4597_v21 = vor.u32 %v4596_v30, %v4593_v32  ;;  %v4339_v53 = vsel %vm2046_vm9, %v4280_v52, %v9247_v47  ;;  %v6333_v51 = vpop.f32.mrf.mxu1  ;;  %v4858_v38 = vshrl.u32 %v3992_v13, 16  ;;  %v4861_v22 = vshll.u32 %v3992_v13, 16 }
 0x3c4   : > { %v9314_v43 = vsel %vm2132_vm11, %v4339_v53, %v9223_v17  ;;  %v3209_v31 = vadd.f32 %v9189_v55, %v6333_v51  ;;  %4141 = vrot.lane.b32.xlu1 %v3992_v13, %s6571_s22  ;;  %4033 = vrot.lane.b32.xlu0 %v3992_v13, %s6575_s12  ;;  %v3994_v32 = vsel %vm1550_vm3, %v3991_v56, %v10368_v54 }
 0x3c5   : > { %v3930_v47 = vpop.permute.xlu0 %3929  ;;  %v3200_v16 = vpop.f32.mrf.mxu1  ;;  %v4598_v26 = vsel %vm2224_vm4, %v4590_v27, %v4597_v21  ;;  %v4641_v30 = vshrl.u32 %v9314_v43, 16  ;;  %v4860_v45 = vrot.slane %v4858_v38, 3  ;;  %v4863_v52 = vrot.slane %v4861_v22, 4 }
 0x3c6   : > { %v3277_v42 = vmax.f32 %v3209_v31, 0.0  ;;  %v3201_v33 = vadd.f32 %v9189_v55, %v3200_v16  ;;  %v4227_v48 = vpop.permute.xlu1 %4226  ;;  %v4283_v53 = vsel %vm1960_vm7, %v8805_v11, %v3930_v47  ;;  %5331 = vmatprep.mubr.bf16.mxu1 %v4598_v26  ;;  %v4631_v38 = vsel %vm2224_vm4, %v4597_v21, %v9287_v12  ;;  %v10508_v16 = vld [vmem:[#allocation60_spill] sm:$0xff] }
 0x3c7   : > { %v6334_v20 = vpop.f32.mrf.mxu1  ;;  %v4528_v35 = vsel %vm2132_vm11, %v4486_v50, %v4227_v48  ;;  %5332 = vmatmul.mubr.bf16.vlgmr.msra.gmra.mxu1 %v4583_v44  ;;  %v4883_v22 = vshrl.u32 %v3994_v32, 16  ;;  %v4886_v44 = vshll.u32 %v3994_v32, 16  ;;  %v6542_v26 = vld [vmem:[%s8686_s28 + $0x88] sm:$0xff]   ;;  %v4644_v48 = vshll.u32 %v9314_v43, 16 }
 0x3c8   : > { %v3317_v51 = vmul.f32 %v3277_v42, %v10507_v41  ;;  %v3275_v31 = vmax.f32 %v3201_v33, 0.0  ;;  %v3212_v27 = vadd.f32 %v9189_v55, %v6334_v20  ;;  %v4649_v13 = vshrl.u32 %v4528_v35, 16  ;;  %4143 = vrot.lane.b32.xlu1 %v3994_v32, %s6571_s22  ;;  %4035 = vrot.lane.b32.xlu0 %v3994_v32, %s6575_s12 }
 0x3c9   : > { %v4652_v56 = vshll.u32 %v4528_v35, 16  ;;  %v4067_v11 = vpop.permute.xlu0 %4066  ;;  %5339 = vmatprep.mubr.bf16.mxu1 %v4631_v38  ;;  %v3203_v33 = vpop.f32.mrf.mxu1  ;;  %6389 = vmatpush3.bf16.msra.mxu1 %v6542_v26  ;;  %v4885_v35 = vrot.slane %v4883_v22, 3  ;;  %v4643_v32 = vrot.slane %v4641_v30, 3  ;;  %v4341_v26 = vsel %vm2046_vm9, %v4283_v53, %v9260_v25 }
 0x3ca   : > { %v6245_v47 = vpack.c.bf16 %v3317_v51, %v3317_v51  ;;  %v3315_v42 = vmul.f32 %v3275_v31, %v10508_v16  ;;  %v3278_v50 = vmax.f32 %v3212_v27, 0.0  ;;  %v4651_v20 = vrot.slane %v4649_v13, 3  ;;  %v4229_v54 = vpop.permute.xlu1 %4228  ;;  %6388 = vmatprep.subr.bf16.mxu1 %v6543_v61  ;;  %v10509_v51 = vld [vmem:[#allocation63_spill] sm:$0xff] }
 0x3cb   : > { %v4654_v21 = vrot.slane %v4652_v56, 4  ;;  %v4888_v31 = vrot.slane %v4886_v44, 4  ;;  %v3862_v27 = vshll.u32 %v9289_v63, 16  ;;  %v3204_v43 = vadd.f32 %v9189_v55, %v3203_v33 }
 0x3cc   : > { %3559 = vst.msk [vmem:[#allocation2 + $0x88] sm:$0xf] %vm3528_vm13, %v6245_v47  ;;  %v6243_v40 = vpack.c.bf16 %v3315_v42, %v3315_v42  ;;  %v3318_v17 = vmul.f32 %v3278_v50, %v10509_v51  ;;  %v4530_v22 = vsel %vm2132_vm11, %v4488_v19, %v4229_v54  ;;  %v4864_v47 = vor.u32 %v4863_v52, %v4860_v45 }
 0x3cd   : > { %v4655_v38 = vor.u32 %v4654_v21, %v4651_v20  ;;  %v9350_v13 = vpop.permute.xlu0 %4068  ;;  %v9354_v42 = vor.u32 %v4888_v31, %v4885_v35  ;;  %6390 = vmatpush3.bf16.msra.mxu1 %v6543_v61  ;;  %v4646_v50 = vrot.slane %v4644_v48, 4  ;;  %v4383_v30 = vsel %vm2132_vm11, %v4341_v26, %v4067_v11  ;;  %v10511_v61 = vld [vmem:[#allocation67_spill] sm:$0xff] }
 0x3ce   : > { %3557 = vst.msk [vmem:[#allocation2 + $0x80] sm:$0xf] %vm3528_vm13, %v6243_v40  ;;  %v6246_v56 = vpack.c.bf16 %v3318_v17, %v3318_v17  ;;  %v3276_v44 = vmax.f32 %v3204_v43, 0.0  ;;  %v4674_v20 = vshrl.u32 %v4530_v22, 16  ;;  %v4677_v25 = vshll.u32 %v4530_v22, 16 }
 0x3cf   : > { %v4865_v53 = vsel %vm2224_vm4, %v9199_v60, %v4864_v47  ;;  %v4890_v40 = vsel %vm2224_vm4, %v4864_v47, %v9354_v42  ;;  %v10510_v54 = vshrl.u32 %v9289_v63, 16  ;;  %5340 = vmatmul.mubr.bf16.gmra.mxu1 %v9306_v39  ;;  %v3864_v52 = vrot.slane %v3862_v27, 5 }
 0x3d0   : > { %3560 = vst.msk [vmem:[#allocation2 + $0x8c] sm:$0xf] %vm3528_vm13, %v6246_v56  ;;  %v3316_v17 = vmul.f32 %v3276_v44, %v10511_v61  ;;  %v4676_v45 = vrot.slane %v4674_v20, 3  ;;  %6367 = vmatprep.mubr.msk.bf16.mxu0 %vm1960_vm7, %v4865_v53  ;;  %v10512_v11 = vshrl.u32 %v9282_v3, 16  ;;  %v4666_v21 = vshrl.u32 %v4383_v30, 16 }
 0x3d1   : > { %v3861_v19 = vrot.slane %v10510_v54, 4  ;;  %v4018_v48 = vpop.permute.xlu0 %4017  ;;  %v4679_v60 = vrot.slane %v4677_v25, 4  ;;  %6368 = vmatmul.mubr.msk.bf16.gmra.mxu0 %vm1960_vm7, %v4890_v40  ;;  %v4656_v63 = vsel %vm2224_vm4, %v9287_v12, %v4655_v38  ;;  %v10513_v35 = vshll.u32 %v9282_v3, 16 }
 0x3d2   : > { %v3870_v33 = vrot.slane %v10512_v11, 4  ;;  %v4669_v31 = vshll.u32 %v4383_v30, 16  ;;  %v6244_v26 = vpack.c.bf16 %v3316_v17, %v3316_v17  ;;  %5347 = vmatprep.mubr.bf16.mxu1 %v4656_v63  ;;  %v4647_v56 = vor.u32 %v4646_v50, %v4643_v32 }
 0x3d3   : > { %v3873_v39 = vrot.slane %v10513_v35, 5  ;;  %v3865_v43 = vor.u32 %v3864_v52, %v3861_v19  ;;  %v9374_v27 = vor.u32 %v4679_v60, %v4676_v45  ;;  %v4668_v12 = vrot.slane %v4666_v21, 3  ;;  %v3602_v40 = vld [vmem:[#allocation2 + $0x88] sm:$0xf] }
 0x3d4   : > { %3558 = vst.msk [vmem:[#allocation2 + $0x84] sm:$0xf] %vm3528_vm13, %v6244_v26  ;;  %v4671_v30 = vrot.slane %v4669_v31, 4  ;;  %v4648_v32 = vsel %vm2224_vm4, %v9276_v28, %v4647_v56 }
 0x3d5   : > { %v9379_v22 = vsel %vm1325_vm6, %v9249_v1, %v3865_v43  ;;  %v9381_v47 = vpop.permute.xlu0 %4019  ;;  %v9387_v44 = vor.u32 %v3873_v39, %v3870_v33  ;;  %v3600_v50 = vld [vmem:[#allocation2 + $0x80] sm:$0xf]  ;;  %v4681_v1 = vsel %vm2224_vm4, %v4655_v38, %v9374_v27  ;;  %v4433_v33 = vsel %vm1960_vm7, %v8971_v5, %v9301_v2 }
 0x3d6   : > { %4242 = vrot.lane.b32.xlu1 %v9379_v22, %s6573_s17  ;;  %3947 = vrot.lane.b32.xlu0 %v9379_v22, %s6571_s22  ;;  %v9404_v28 = vcombine.low %v9268_v23, %v3600_v50  ;;  %v9409_v38 = vor.u32 %v4671_v30, %v4668_v12 }
 0x3d7   : > { %v9391_v20 = vld [vmem:[#allocation2 + $0x8c] sm:$0xf]  ;;  %5348 = vmatmul.mubr.bf16.gmra.mxu1 %v4648_v32  ;;  %v9397_v25 = vsel %vm1325_vm6, %v3865_v43, %v9387_v44  ;;  %v10514_v43 = vrot.slane %v9282_v3, 5 }
 0x3d8   : > { %5355 = vmatprep.mubr.bf16.mxu1 %v4681_v1  ;;  %v9407_v19 = vcombine.low %v3602_v40, %v9391_v20  ;;  %v4673_v63 = vsel %vm2224_vm4, %v4647_v56, %v9409_v38 }
 0x3d9   : > { %v3932_v53 = vpop.permute.xlu0 %3931 }
 0x3da   : > { %4244 = vrot.lane.b32.xlu1 %v9397_v25, %s6573_s17  ;;  %3949 = vrot.lane.b32.xlu0 %v9397_v25, %s6571_s22  ;;  %v4179_v54 = vpop.permute.xlu1 %4178  ;;  %v4286_v17 = vsel %vm1960_vm7, %v8897_v18, %v3932_v53  ;;  %v3886_v18 = vshrl.u32 %v9407_v19, 16  ;;  %v10369_v5 = vrot.slane %v9407_v19, 5  ;;  %v3889_v2 = vshll.u32 %v9407_v19, 16 }
 0x3db   : > { %v3601_v45 = vld [vmem:[#allocation2 + $0x84] sm:$0xf]  ;;  %v4343_v23 = vsel %vm2046_vm9, %v4286_v17, %v4018_v48  ;;  %v9434_v39 = vsel %vm2046_vm9, %v4433_v33, %v4179_v54 }
 0x3dc   : > { %v9413_v52 = vcombine.low %v3600_v50, %v3601_v45  ;;  %v9423_v21 = vcombine.low %v3601_v45, %v3602_v40  ;;  %v4385_v31 = vsel %vm2132_vm11, %v4343_v23, %v9350_v13  ;;  %v9449_v40 = vrot.slane %v3886_v18, 4 }
 0x3dd   : > { %v3934_v11 = vpop.permute.xlu0 %3933  ;;  %v3891_v45 = vrot.slane %v3889_v2, 5  ;;  %v4691_v33 = vshrl.u32 %v4385_v31, 16  ;;  %v4694_v23 = vshll.u32 %v4385_v31, 16 }
 0x3de   : > { %4194 = vrot.lane.b32.xlu1 %v9404_v28, %s6575_s12  ;;  %4086 = vrot.lane.b32.xlu0 %v9404_v28, %s6573_s17  ;;  %v9425_v60 = vpop.permute.xlu1 %4180  ;;  %v3995_v35 = vrot.slane %v9413_v52, 5  ;;  %v3877_v17 = vshrl.u32 %v9413_v52, 16  ;;  %v3880_v18 = vshll.u32 %v9413_v52, 16 }
 0x3df   : > { %5356 = vmatmul.mubr.bf16.gmra.mxu1 %v4673_v63  ;;  %v6337_v48 = vpop.f32.mrf.mxu1  ;;  %v4693_v61 = vrot.slane %v4691_v33, 3 }
 0x3e0   : > { %v3225_v26 = vadd.f32 %v9189_v55, %v6337_v48  ;;  %v3996_v56 = vsel %vm1550_vm3, %v10514_v43, %v3995_v35  ;;  %v3998_v30 = vsel %vm1550_vm3, %v3995_v35, %v10369_v5  ;;  %v4289_v43 = vsel %vm1960_vm7, %v8910_v14, %v3934_v11  ;;  %v10515_v11 = vld [vmem:[#allocation66_spill] sm:$0xff] }
 0x3e1   : > { %v4071_v12 = vpop.permute.xlu0 %4070  ;;  %v4908_v32 = vshrl.u32 %v3996_v56, 16  ;;  %v4911_v50 = vshll.u32 %v3996_v56, 16  ;;  %v3216_v13 = vpop.f32.mrf.mxu1  ;;  %v4933_v53 = vshrl.u32 %v3998_v30, 16 }
 0x3e2   : > { %4196 = vrot.lane.b32.xlu1 %v9423_v21, %s6575_s12  ;;  %4088 = vrot.lane.b32.xlu0 %v9423_v21, %s6573_s17  ;;  %v4130_v1 = vpop.permute.xlu1 %4129  ;;  %v3281_v3 = vmax.f32 %v3225_v26, 0.0  ;;  %v3217_v54 = vadd.f32 %v9189_v55, %v3216_v13  ;;  %v4936_v26 = vshll.u32 %v3998_v30, 16 }
 0x3e3   : > { %v4910_v63 = vrot.slane %v4908_v32, 3  ;;  %v4913_v35 = vrot.slane %v4911_v50, 4  ;;  %v6338_v48 = vpop.f32.mrf.mxu1  ;;  %v4935_v31 = vrot.slane %v4933_v53, 3  ;;  %v4345_v53 = vsel %vm2046_vm9, %v4289_v43, %v9381_v47  ;;  %v10516_v43 = vld [vmem:[#allocation70_spill] sm:$0xff] }
 0x3e4   : > { %v3321_v5 = vmul.f32 %v3281_v3, %v8111_v24  ;;  %v3279_v51 = vmax.f32 %v3217_v54, 0.0  ;;  %v3228_v2 = vadd.f32 %v9189_v55, %v6338_v48  ;;  %v3879_v24 = vrot.slane %v3877_v17, 4 }
 0x3e5   : > { %v9456_v41 = vpop.permute.xlu0 %4072  ;;  %v3219_v32 = vpop.f32.mrf.mxu1  ;;  %v4914_v13 = vor.u32 %v4913_v35, %v4910_v63  ;;  %v4938_v16 = vrot.slane %v4936_v26, 4  ;;  %v4696_v63 = vrot.slane %v4694_v23, 4  ;;  %v4387_v17 = vsel %vm2132_vm11, %v4345_v53, %v4071_v12 }
 0x3e6   : > { %4145 = vrot.lane.b32.xlu1 %v3996_v56, %s6571_s22  ;;  %4037 = vrot.lane.b32.xlu0 %v3996_v56, %s6575_s12  ;;  %v9462_v50 = vpop.permute.xlu1 %4131  ;;  %v6249_v14 = vpack.c.bf16 %v3321_v5, %v3321_v5  ;;  %v3319_v3 = vmul.f32 %v3279_v51, %v10515_v11  ;;  %v3220_v54 = vadd.f32 %v9189_v55, %v3219_v32  ;;  %v3282_v52 = vmax.f32 %v3228_v2, 0.0 }
 0x3e7   : > { %v4915_v56 = vsel %vm2224_vm4, %v9354_v42, %v4914_v13  ;;  %v3882_v5 = vrot.slane %v3880_v18, 5  ;;  %v9476_v42 = vor.u32 %v4938_v16, %v4935_v31  ;;  %v4436_v47 = vsel %vm1960_vm7, %v9040_v49, %v4130_v1 }
 0x3e8   : > { %3563 = vst.msk [vmem:[#allocation2 + $0x98] sm:$0xf] %vm3528_vm13, %v6249_v14  ;;  %v6247_v48 = vpack.c.bf16 %v3319_v3, %v3319_v3  ;;  %v3280_v34 = vmax.f32 %v3220_v54, 0.0  ;;  %6371 = vmatprep.mubr.msk.bf16.mxu0 %vm1960_vm7, %v4915_v56  ;;  %v3322_v33 = vmul.f32 %v3282_v52, %v8151_v15  ;;  %v4492_v1 = vsel %vm2046_vm9, %v4436_v47, %v9425_v60 }
 0x3e9   : > { %v4022_v51 = vpop.permute.xlu0 %4021  ;;  %v3883_v2 = vor.u32 %v3882_v5, %v3879_v24  ;;  %v4940_v26 = vsel %vm2224_vm4, %v4914_v13, %v9476_v42  ;;  %v4716_v13 = vshrl.u32 %v4387_v17, 16  ;;  %v4719_v14 = vshll.u32 %v4387_v17, 16 }
 0x3ea   : > { %4147 = vrot.lane.b32.xlu1 %v3998_v30, %s6571_s22  ;;  %4039 = vrot.lane.b32.xlu0 %v3998_v30, %s6575_s12  ;;  %v4231_v35 = vpop.permute.xlu1 %4230  ;;  %3561 = vst.msk [vmem:[#allocation2 + $0x90] sm:$0xf] %vm3528_vm13, %v6247_v48  ;;  %v3320_v18 = vmul.f32 %v3280_v34, %v10516_v43  ;;  %v6250_v23 = vpack.c.bf16 %v3322_v33, %v3322_v33 }
 0x3eb   : > { %v4532_v12 = vsel %vm2132_vm11, %v9434_v39, %v4231_v35  ;;  %6372 = vmatmul.mubr.msk.bf16.gmra.mxu0 %vm1960_vm7, %v4940_v26  ;;  %v9489_v31 = vsel %vm1325_vm6, %v9387_v44, %v3883_v2  ;;  %v9499_v39 = vor.u32 %v3891_v45, %v9449_v40  ;;  %v4697_v54 = vor.u32 %v4696_v63, %v4693_v61 }
 0x3ec   : > { %v4699_v32 = vshrl.u32 %v4532_v12, 16  ;;  %v4702_v30 = vshll.u32 %v4532_v12, 16  ;;  %v6248_v16 = vpack.c.bf16 %v3320_v18, %v3320_v18  ;;  %3564 = vst.msk [vmem:[#allocation2 + $0x9c] sm:$0xf] %vm3528_vm13, %v6250_v23  ;;  %v4718_v17 = vrot.slane %v4716_v13, 3 }
 0x3ed   : > { %v9491_v49 = vpop.permute.xlu0 %4023  ;;  %v9507_v48 = vsel %vm1325_vm6, %v3883_v2, %v9499_v39  ;;  %v4721_v33 = vrot.slane %v4719_v14, 4  ;;  %v4698_v47 = vsel %vm2224_vm4, %v9409_v38, %v4697_v54 }
 0x3ee   : > { %4246 = vrot.lane.b32.xlu1 %v9489_v31, %s6573_s17  ;;  %3951 = vrot.lane.b32.xlu0 %v9489_v31, %s6571_s22  ;;  %v4701_v24 = vrot.slane %v4699_v32, 3  ;;  %v4704_v34 = vrot.slane %v4702_v30, 4  ;;  %v4233_v44 = vpop.permute.xlu1 %4232  ;;  %3562 = vst.msk [vmem:[#allocation2 + $0x94] sm:$0xf] %vm3528_vm13, %v6248_v16 }
 0x3ef   : > { %v4534_v3 = vsel %vm2132_vm11, %v4492_v1, %v4233_v44 }
 0x3f0   : > { %v4705_v52 = vor.u32 %v4704_v34, %v4701_v24  ;;  %v4724_v56 = vshrl.u32 %v4534_v3, 16  ;;  %v4727_v53 = vshll.u32 %v4534_v3, 16 }
 0x3f1   : > { %v3936_v40 = vpop.permute.xlu0 %3935  ;;  %v3604_v63 = vld [vmem:[#allocation2 + $0x90] sm:$0xf] }
 0x3f2   : > { %4248 = vrot.lane.b32.xlu1 %v9507_v48, %s6573_s17  ;;  %3953 = vrot.lane.b32.xlu0 %v9507_v48, %s6571_s22  ;;  %v4726_v60 = vrot.slane %v4724_v56, 3  ;;  %v4729_v45 = vrot.slane %v4727_v53, 4  ;;  %v4292_v5 = vsel %vm1960_vm7, %v8991_v10, %v3936_v40  ;;  %v4706_v61 = vsel %vm2224_vm4, %v9374_v27, %v4705_v52  ;;  %v3606_v10 = vld [vmem:[#allocation2 + $0x98] sm:$0xf] }
 0x3f3   : > { %5363 = vmatprep.mubr.bf16.mxu1 %v4706_v61  ;;  %v9518_v35 = vcombine.low %v9391_v20, %v3604_v63  ;;  %v4347_v2 = vsel %vm2046_vm9, %v4292_v5, %v4022_v51  ;;  %v9525_v23 = vld [vmem:[#allocation2 + $0x9c] sm:$0xf]  ;;  %v9538_v51 = vor.u32 %v4721_v33, %v4718_v17  ;;  %v10517_v40 = vrot.slane %v9407_v19, 5 }
 0x3f4   : > { %v9522_v18 = vor.u32 %v4729_v45, %v4726_v60  ;;  %5364 = vmatmul.mubr.bf16.gmra.mxu1 %v4698_v47  ;;  %v9536_v26 = vcombine.low %v3606_v10, %v9525_v23  ;;  %v9544_v30 = vsel %vm2132_vm11, %v4347_v2, %v9456_v41 }
 0x3f5   : > { %v3938_v12 = vpop.permute.xlu0 %3937  ;;  %v3605_v38 = vld [vmem:[#allocation2 + $0x94] sm:$0xf]  ;;  %v4741_v13 = vshrl.u32 %v9544_v30, 16  ;;  %v4723_v3 = vsel %vm2224_vm4, %v4697_v54, %v9538_v51 }
 0x3f6   : > { %4198 = vrot.lane.b32.xlu1 %v9518_v35, %s6575_s12  ;;  %4090 = vrot.lane.b32.xlu0 %v9518_v35, %s6573_s17  ;;  %v9531_v27 = vpop.permute.xlu1 %4182  ;;  %v4731_v20 = vsel %vm2224_vm4, %v4705_v52, %v9522_v18  ;;  %v9540_v32 = vcombine.low %v3605_v38, %v3606_v10  ;;  %v6115_v16 = vcombine.low %v3604_v63, %v3605_v38  ;;  %v10371_v44 = vrot.slane %v9536_v26, 5 }
 0x3f7   : > { %5371 = vmatprep.mubr.bf16.mxu1 %v4731_v20  ;;  %v4295_v56 = vsel %vm1960_vm7, %v9002_v4, %v3938_v12  ;;  %v3904_v33 = vshrl.u32 %v9536_v26, 16 }
 0x3f8   : > { %v3999_v1 = vrot.slane %v6115_v16, 5  ;;  %v3895_v52 = vshrl.u32 %v6115_v16, 16  ;;  %v3898_v17 = vshll.u32 %v6115_v16, 16 }
 0x3f9   : > { %v9546_v24 = vpop.permute.xlu0 %4074  ;;  %v3906_v43 = vrot.slane %v3904_v33, 4  ;;  %v4439_v33 = vsel %vm1960_vm7, %v9053_v62, %v9462_v50 }
 0x3fa   : > { %4200 = vrot.lane.b32.xlu1 %v9540_v32, %s6575_s12  ;;  %4092 = vrot.lane.b32.xlu0 %v9540_v32, %s6573_s17  ;;  %v9552_v34 = vpop.permute.xlu1 %4184  ;;  %v4000_v60 = vsel %vm1550_vm3, %v10517_v40, %v3999_v1  ;;  %v4002_v45 = vsel %vm1550_vm3, %v3999_v1, %v10371_v44  ;;  %v3897_v1 = vrot.slane %v3895_v52, 4  ;;  %v3900_v15 = vrot.slane %v3898_v17, 5 }
 0x3fb   : > { %v6341_v41 = vpop.f32.mrf.mxu1  ;;  %v4958_v5 = vshrl.u32 %v4000_v60, 16  ;;  %v4961_v61 = vshll.u32 %v4000_v60, 16  ;;  %v4983_v2 = vshrl.u32 %v4002_v45, 16  ;;  %v4986_v12 = vshll.u32 %v4002_v45, 16 }
 0x3fc   : > { %v3241_v53 = vadd.f32 %v9189_v55, %v6341_v41  ;;  %5372 = vmatmul.mubr.bf16.gmra.mxu1 %v4723_v3  ;;  %v3907_v41 = vshll.u32 %v9536_v26, 16 }
 0x3fd   : > { %v9568_v63 = vpop.permute.xlu0 %4076  ;;  %v3232_v54 = vpop.f32.mrf.mxu1  ;;  %v4960_v10 = vrot.slane %v4958_v5, 3  ;;  %v4963_v20 = vrot.slane %v4961_v61, 4  ;;  %v4985_v40 = vrot.slane %v4983_v2, 3  ;;  %v4988_v44 = vrot.slane %v4986_v12, 4 }
 0x3fe   : > { %v3285_v4 = vmax.f32 %v3241_v53, 0.0  ;;  %4149 = vrot.lane.b32.xlu1 %v4000_v60, %s6571_s22  ;;  %4041 = vrot.lane.b32.xlu0 %v4000_v60, %s6575_s12  ;;  %v3233_v19 = vadd.f32 %v9189_v55, %v3232_v54  ;;  %v4134_v47 = vpop.permute.xlu1 %4133  ;;  %v3901_v12 = vor.u32 %v3900_v15, %v3897_v1  ;;  %v3909_v17 = vrot.slane %v3907_v41, 5 }
 0x3ff   : > { %v6342_v38 = vpop.f32.mrf.mxu1  ;;  %v4964_v54 = vor.u32 %v4963_v20, %v4960_v10  ;;  %v9587_v2 = vor.u32 %v4988_v44, %v4985_v40 }
 0x400   : > { %v3325_v16 = vmul.f32 %v3285_v4, %v8290_v36  ;;  %v3283_v3 = vmax.f32 %v3233_v19, 0.0  ;;  %v3244_v53 = vadd.f32 %v9189_v55, %v6342_v38  ;;  %v9603_v62 = vsel %vm1325_vm6, %v9499_v39, %v3901_v12 }
 0x401   : > { %v9577_v14 = vpop.permute.xlu0 %4025  ;;  %v3235_v60 = vpop.f32.mrf.mxu1  ;;  %v4965_v19 = vsel %vm2224_vm4, %v9476_v42, %v4964_v54  ;;  %v4349_v42 = vsel %vm2046_vm9, %v4295_v56, %v9491_v49  ;;  %v4990_v15 = vsel %vm2224_vm4, %v4964_v54, %v9587_v2  ;;  %v10518_v39 = vshll.u32 %v9544_v30, 16 }
 0x402   : > { %v6253_v11 = vpack.c.bf16 %v3325_v16, %v3325_v16  ;;  %v3323_v5 = vmul.f32 %v3283_v3, %v8231_v57  ;;  %v3286_v61 = vmax.f32 %v3244_v53, 0.0  ;;  %4151 = vrot.lane.b32.xlu1 %v4002_v45, %s6571_s22  ;;  %4043 = vrot.lane.b32.xlu0 %v4002_v45, %s6575_s12  ;;  %v3236_v52 = vadd.f32 %v9189_v55, %v3235_v60  ;;  %v9583_v4 = vpop.permute.xlu1 %4135 }
 0x403   : > { %6375 = vmatprep.mubr.msk.bf16.mxu0 %vm1960_vm7, %v4965_v19  ;;  %v4494_v55 = vsel %vm2046_vm9, %v4439_v33, %v9531_v27  ;;  %v4391_v44 = vsel %vm2132_vm11, %v4349_v42, %v9546_v24  ;;  %v4746_v56 = vrot.slane %v10518_v39, 4  ;;  %v9621_v1 = vor.u32 %v3909_v17, %v3906_v43 }
 0x404   : > { %3567 = vst.msk [vmem:[#allocation2 + $0xa8] sm:$0xf] %vm3528_vm13, %v6253_v11  ;;  %v6251_v10 = vpack.c.bf16 %v3323_v5, %v3323_v5  ;;  %v3326_v45 = vmul.f32 %v3286_v61, %v8337_v46  ;;  %v3284_v20 = vmax.f32 %v3236_v52, 0.0  ;;  %v4743_v11 = vrot.slane %v4741_v13, 3  ;;  %6376 = vmatmul.mubr.msk.bf16.gmra.mxu0 %vm1960_vm7, %v4990_v15  ;;  %v9637_v61 = vld [vmem:[#allocation2 + $0xb4] sm:$0xf] }
 0x405   : > { %v9605_v50 = vpop.permute.xlu0 %4027  ;;  %v4442_v13 = vsel %vm1960_vm7, %v9119_v6, %v4134_v47  ;;  %v4766_v53 = vshrl.u32 %v4391_v44, 16  ;;  %v9626_v30 = vsel %vm1325_vm6, %v3901_v12, %v9621_v1  ;;  %v9630_v6 = vld [vmem:[#allocation2 + $0xb0] sm:$0xf]  ;;  %v4769_v47 = vshll.u32 %v4391_v44, 16 }
 0x406   : > { %3565 = vst.msk [vmem:[#allocation2 + $0xa0] sm:$0xf] %vm3528_vm13, %v6251_v10  ;;  %v6254_v38 = vpack.c.bf16 %v3326_v45, %v3326_v45  ;;  %v3324_v27 = vmul.f32 %v3284_v20, %v8204_v9  ;;  %4250 = vrot.lane.b32.xlu1 %v9603_v62, %s6573_s17  ;;  %v4235_v49 = vpop.permute.xlu1 %4234  ;;  %3955 = vrot.lane.b32.xlu0 %v9603_v62, %s6571_s22  ;;  %v10520_v9 = vld [vmem:[#allocation71_spill] sm:$0xff] }
 0x407   : > { %v4536_v24 = vsel %vm2132_vm11, %v4494_v55, %v4235_v49  ;;  %v4496_v54 = vsel %vm2046_vm9, %v4442_v13, %v9552_v34  ;;  %v4747_v19 = vor.u32 %v4746_v56, %v4743_v11  ;;  %v4768_v10 = vrot.slane %v4766_v53, 3  ;;  %v6529_v55 = vld [vmem:[#allocation2 + $0xb8] ss:$0 sps:$4 sm:$0x11]  }
 0x408   : > { %3568 = vst.msk [vmem:[#allocation2 + $0xac] sm:$0xf] %vm3528_vm13, %v6254_v38  ;;  %v6252_v41 = vpack.c.bf16 %v3324_v27, %v3324_v27  ;;  %v4749_v16 = vshrl.u32 %v4536_v24, 16  ;;  %v4752_v3 = vshll.u32 %v4536_v24, 16  ;;  %v9644_v20 = vcombine.low %v9630_v6, %v9637_v61 }
 0x409   : > { %v9628_v40 = vpop.permute.xlu0 %3939  ;;  %v4771_v34 = vrot.slane %v4769_v47, 4  ;;  %v4748_v27 = vsel %vm2224_vm4, %v9538_v51, %v4747_v19 }
 0x40a   : > { %3566 = vst.msk [vmem:[#allocation2 + $0xa4] sm:$0xf] %vm3528_vm13, %v6252_v41  ;;  %v4751_v60 = vrot.slane %v4749_v16, 3  ;;  %v4754_v43 = vrot.slane %v4752_v3, 4  ;;  %4252 = vrot.lane.b32.xlu1 %v9626_v30, %s6573_s17  ;;  %v4237_v5 = vpop.permute.xlu1 %4236  ;;  %3957 = vrot.lane.b32.xlu0 %v9626_v30, %s6571_s22  ;;  %v4298_v46 = vsel %vm1960_vm7, %v10520_v9, %v9628_v40 }
 0x40b   : > { %v4538_v52 = vsel %vm2132_vm11, %v4496_v54, %v4237_v5  ;;  %v3612_v49 = vld [vmem:[#allocation2 + $0xa8] sm:$0xf]  ;;  %v9669_v51 = vor.u32 %v4771_v34, %v4768_v10 }
 0x40c   : > { %v4755_v12 = vor.u32 %v4754_v43, %v4751_v60  ;;  %v4774_v17 = vshrl.u32 %v4538_v52, 16  ;;  %v4777_v33 = vshll.u32 %v4538_v52, 16 }
 0x40d   : > { %v3608_v45 = vld [vmem:[#allocation2 + $0xa0] sm:$0xf]  ;;  %v9646_v44 = vpop.permute.xlu0 %3941 }
 0x40e   : > { %v4776_v42 = vrot.slane %v4774_v17, 3  ;;  %v4779_v15 = vrot.slane %v4777_v33, 4  ;;  %v4756_v38 = vsel %vm2224_vm4, %v9522_v18, %v4755_v12  ;;  %v9651_v11 = vcombine.low %v9525_v23, %v3608_v45 }
 0x40f   : > { %5379 = vmatprep.mubr.bf16.mxu1 %v4756_v38  ;;  %v9655_v39 = vld [vmem:[#allocation2 + $0xac] sm:$0xf]  ;;  %v4265_v18 = vrot.slane %v9644_v20, 5  ;;  %v4267_v23 = vrot.slane %v6529_v55, 5  ;;  %v10519_v17 = vrot.slane %v9536_v26, 5 }
 0x410   : > { %v9657_v56 = vor.u32 %v4779_v15, %v4776_v42  ;;  %5380 = vmatmul.mubr.bf16.gmra.mxu1 %v4748_v27  ;;  %v9660_v13 = vcombine.low %v3612_v49, %v9655_v39  ;;  %4202 = vrot.lane.b32.xlu1 %v9651_v11, %s6575_s12 }
 0x411   : > { %v9662_v24 = vld [vmem:[#allocation2 + $0xa4] sm:$0xf]  ;;  %4094 = vrot.lane.b32.xlu0 %v9651_v11, %s6573_s17  ;;  %v4268_v52 = vsel %vm1550_vm3, %v4265_v18, %v4267_v23 }
 0x412   : > { %v6117_v41 = vcombine.low %v3608_v45, %v9662_v24  ;;  %v9672_v16 = vpop.permute.xlu1 %4186  ;;  %v9674_v3 = vpop.permute.xlu0 %4078  ;;  %v4781_v53 = vsel %vm2224_vm4, %v4755_v12, %v9657_v56  ;;  %v6120_v47 = vcombine.low %v9662_v24, %v3612_v49  ;;  %v9682_v43 = vrot.slane %v9660_v13, 5 }
 0x413   : > { %5387 = vmatprep.mubr.bf16.mxu1 %v4781_v53  ;;  %v4773_v12 = vsel %vm2224_vm4, %v4747_v19, %v9669_v51  ;;  %v5083_v49 = vshrl.u32 %v4268_v52, 16  ;;  %v5086_v23 = vshll.u32 %v4268_v52, 16 }
 0x414   : > { %v9679_v60 = vrot.slane %v6117_v41, 5  ;;  %v3913_v54 = vshrl.u32 %v6117_v41, 16  ;;  %4204 = vrot.lane.b32.xlu1 %v6120_v47, %s6575_s12  ;;  %v3916_v5 = vshll.u32 %v6117_v41, 16  ;;  %v4266_v52 = vsel %vm1550_vm3, %v9682_v43, %v4265_v18 }
 0x416   : > { %v4004_v33 = vsel %vm1550_vm3, %v10519_v17, %v9679_v60  ;;  %v4114_v10 = vsel %vm1550_vm3, %v9679_v60, %v9682_v43  ;;  %v9695_v45 = vpop.permute.xlu1 %4188  ;;  %v9697_v55 = vpop.permute.xlu0 %4080  ;;  %v3915_v26 = vrot.slane %v3913_v54, 4  ;;  %v3918_v27 = vrot.slane %v3916_v5, 5 }
 0x417   : > { %v5008_v34 = vshrl.u32 %v4004_v33, 16  ;;  %v5011_v42 = vshll.u32 %v4004_v33, 16  ;;  %4045 = vrot.lane.b32.xlu0 %v4004_v33, %s6575_s12  ;;  %v5033_v15 = vshrl.u32 %v4114_v10, 16  ;;  %v5036_v38 = vshll.u32 %v4114_v10, 16 }
 0x418   : > { %5388 = vmatmul.mubr.bf16.gmra.mxu1 %v4773_v12  ;;  %4153 = vrot.lane.b32.xlu1 %v4004_v33, %s6571_s22  ;;  %v3919_v57 = vor.u32 %v3918_v27, %v3915_v26  ;;  %v4212_v12 = vshrl.u32 %v9644_v20, 16  ;;  %v5085_v33 = vrot.slane %v5083_v49, 3  ;;  %v5061_v26 = vshll.u32 %v4266_v52, 16 }
 0x419   : > { %v5010_v19 = vrot.slane %v5008_v34, 3  ;;  %v5013_v41 = vrot.slane %v5011_v42, 4  ;;  %v5035_v53 = vrot.slane %v5033_v15, 3  ;;  %v5038_v17 = vrot.slane %v5036_v38, 4 }
 0x41a   : > { %v4138_v36 = vpop.permute.xlu1 %4137  ;;  %v9704_v7 = vpop.permute.xlu0 %4029  ;;  %v5088_v34 = vrot.slane %v5086_v23, 4  ;;  %v4351_v42 = vsel %vm2046_vm9, %v4298_v46, %v9577_v14  ;;  %v9719_v18 = vsel %vm1325_vm6, %v9621_v1, %v3919_v57  ;;  %v4102_v15 = vshrl.u32 %v9660_v13, 16 }
 0x41b   : > { %4096 = vrot.lane.b32.xlu0 %v6120_v47, %s6573_s17  ;;  %v5039_v54 = vor.u32 %v5038_v17, %v5035_v53  ;;  %v5014_v5 = vor.u32 %v5013_v41, %v5010_v19  ;;  %v5058_v47 = vshrl.u32 %v4266_v52, 16  ;;  %v4105_v38 = vshll.u32 %v9660_v13, 16 }
 0x41c   : > { %4155 = vrot.lane.b32.xlu1 %v4114_v10, %s6571_s22  ;;  %v4215_v46 = vshll.u32 %v9644_v20, 16  ;;  %v6530_v10 = vld [vmem:[#allocation2 + $0xa8] ss:$0 sps:$4 sm:$0x11]   ;;  %v5063_v27 = vrot.slane %v5061_v26, 4  ;;  %v5089_v1 = vor.u32 %v5088_v34, %v5085_v33  ;;  %v4104_v13 = vrot.slane %v4102_v15, 4 }
 0x41d   : > { %v5015_v9 = vsel %vm2224_vm4, %v9587_v2, %v5014_v5  ;;  %v5040_v40 = vsel %vm2224_vm4, %v5014_v5, %v5039_v54  ;;  %v5060_v14 = vrot.slane %v5058_v47, 3  ;;  %v4393_v2 = vsel %vm2132_vm11, %v4351_v42, %v9568_v63  ;;  %v10521_v42 = vld [vmem:[#allocation72_spill] sm:$0xff] }
 0x41e   : > { %6379 = vmatprep.mubr.msk.bf16.mxu0 %vm1960_vm7, %v5015_v9  ;;  %v9729_v49 = vpop.permute.xlu1 %4139  ;;  %v9731_v23 = vpop.permute.xlu0 %4031  ;;  %v4107_v19 = vrot.slane %v4105_v38, 5  ;;  %v4214_v41 = vrot.slane %v4212_v12, 4  ;;  %v4791_v17 = vshrl.u32 %v4393_v2, 16  ;;  %v4794_v20 = vshll.u32 %v4393_v2, 16  ;;  %v10522_v9 = vld [vmem:[#allocation73_spill] sm:$0xff] }
 0x41f   : > { %6380 = vmatmul.mubr.msk.bf16.gmra.mxu0 %vm1960_vm7, %v5040_v40  ;;  %3959 = vrot.lane.b32.xlu0 %v9719_v18, %s6571_s22  ;;  %v5064_v53 = vor.u32 %v5063_v27, %v5060_v14  ;;  %v6125_v63 = vcombine.low %v9655_v39, %v9630_v6  ;;  %v4217_v5 = vrot.slane %v4215_v46, 5  ;;  %v4005_v52 = vrot.slane %v6530_v10, 5 }
 0x420   : > { %4254 = vrot.lane.b32.xlu1 %v9719_v18, %s6573_s17  ;;  %v4301_v12 = vsel %vm1960_vm7, %v10521_v42, %v9646_v44  ;;  %v4445_v40 = vsel %vm1960_vm7, %v10522_v9, %v9583_v4  ;;  %v9753_v47 = vor.u32 %v4107_v19, %v4104_v13  ;;  %v4793_v15 = vrot.slane %v4791_v17, 3 }
 0x421   : > { %v9739_v33 = vsel %vm2224_vm4, %v5039_v54, %v5064_v53  ;;  %v9742_v34 = vsel %vm2224_vm4, %v5064_v53, %v5089_v1  ;;  %v4006_v6 = vsel %vm1550_vm3, %v9679_v60, %v4005_v52  ;;  %v6532_v54 = vld [vmem:[#allocation2 + $0xb0] ss:$0 sps:$4 sm:$0x11]   ;;  %v4796_v38 = vrot.slane %v4794_v20, 4 }
 0x422   : > { %v4498_v26 = vsel %vm2046_vm9, %v4445_v40, %v9672_v16  ;;  %v4218_v44 = vor.u32 %v4217_v5, %v4214_v41  ;;  %v4353_v2 = vsel %vm2046_vm9, %v4301_v12, %v9605_v50  ;;  %v4448_v4 = vsel %vm1960_vm7, %v9240_v8, %v4138_v36 }
 0x423   : > { %3961 = vrot.lane.b32.xlu0 %v3919_v57, %s6571_s22  ;;  %v9765_v10 = vsel %vm1325_vm6, %v3919_v57, %v9753_v47  ;;  %v4395_v16 = vsel %vm2132_vm11, %v4353_v2, %v9674_v3  ;;  %v6121_v50 = vcombine.low %v9655_v39, %v9655_v39  ;;  %v4115_v13 = vrot.slane %v6532_v54, 5 }
 0x424   : > { %4206 = vrot.lane.b32.xlu1 %v6125_v63, %s6575_s12  ;;  %v4500_v8 = vsel %vm2046_vm9, %v4448_v4, %v9695_v45  ;;  %v4797_v57 = vor.u32 %v4796_v38, %v4793_v15  ;;  %v4816_v53 = vshrl.u32 %v4395_v16, 16  ;;  %v4819_v3 = vshll.u32 %v4395_v16, 16 }
 0x425   : > { %v4239_v46 = vpop.permute.xlu1 %4238  ;;  %v3944_v14 = vpop.permute.xlu0 %3943  ;;  %v4219_v63 = vsel %vm1325_vm6, %v9753_v47, %v4218_v44  ;;  %v4116_v38 = vsel %vm1550_vm3, %v9682_v43, %v4115_v13  ;;  %v10523_v43 = vld [vmem:[#allocation86_spill] sm:$0xff] }
 0x426   : > { %v4540_v60 = vsel %vm2132_vm11, %v4498_v26, %v4239_v46  ;;  %v4798_v12 = vsel %vm2224_vm4, %v9669_v51, %v4797_v57  ;;  %v4818_v9 = vrot.slane %v4816_v53, 3  ;;  %v4821_v40 = vrot.slane %v4819_v3, 4 }
 0x427   : > { %4047 = vrot.lane.b32.xlu0 %v4006_v6, %s6575_s12  ;;  %v4799_v27 = vshrl.u32 %v4540_v60, 16  ;;  %v4802_v1 = vshll.u32 %v4540_v60, 16  ;;  %v6126_v26 = vcombine.low %v9637_v61, %v9637_v61  ;;  %v4304_v16 = vsel %vm1960_vm7, %v10523_v43, %v3944_v14 }
 0x428   : > { %4256 = vrot.lane.b32.xlu1 %v9765_v10, %s6573_s17  ;;  %v4355_v61 = vsel %vm2046_vm9, %v4304_v16, %v9704_v7  ;;  %v4451_v14 = vsel %vm1960_vm7, %v9254_v0, %v9729_v49 }
 0x429   : > { %v4801_v19 = vrot.slane %v4799_v27, 3  ;;  %v4804_v36 = vrot.slane %v4802_v1, 4  ;;  %v4241_v41 = vpop.permute.xlu1 %4240  ;;  %v3946_v20 = vpop.permute.xlu0 %3945 }
 0x42a   : > { %v4542_v17 = vsel %vm2132_vm11, %v4500_v8, %v4241_v41  ;;  %v10524_v41 = vld [vmem:[#allocation87_spill] sm:$0xff] }
 0x42b   : > { %4098 = vrot.lane.b32.xlu0 %v6121_v50, %s6573_s17  ;;  %v4805_v5 = vor.u32 %v4804_v36, %v4801_v19  ;;  %v4824_v39 = vshrl.u32 %v4542_v17, 16  ;;  %v4827_v52 = vshll.u32 %v4542_v17, 16  ;;  %v4397_v50 = vsel %vm2132_vm11, %v4355_v61, %v9697_v55 }
 0x42c   : > { %4258 = vrot.lane.b32.xlu1 %v4219_v63, %s6573_s17  ;;  %v4841_v36 = vshrl.u32 %v4397_v50, 16  ;;  %v4844_v8 = vshll.u32 %v4397_v50, 16 }
 0x42d   : > { %v4826_v42 = vrot.slane %v4824_v39, 3  ;;  %v4806_v45 = vsel %vm2224_vm4, %v9657_v56, %v4805_v5  ;;  %v4829_v6 = vrot.slane %v4827_v52, 4  ;;  %v4822_v56 = vor.u32 %v4821_v40, %v4818_v9 }
 0x42e   : > { %5395 = vmatprep.mubr.bf16.mxu1 %v4806_v45  ;;  %v4191_v54 = vpop.permute.xlu1 %4190  ;;  %v4083_v15 = vpop.permute.xlu0 %4082  ;;  %v4846_v17 = vrot.slane %v4844_v8, 4 }
 0x42f   : > { %5396 = vmatmul.mubr.bf16.gmra.mxu1 %v4798_v12  ;;  %v4830_v46 = vor.u32 %v4829_v6, %v4826_v42  ;;  %v4823_v60 = vsel %vm2224_vm4, %v4797_v57, %v4822_v56  ;;  %v4307_v57 = vsel %vm1960_vm7, %v10524_v41, %v3946_v20  ;;  %v4502_v53 = vsel %vm2046_vm9, %v4451_v14, %v4191_v54 }
 0x430   : > { %4157 = vrot.lane.b32.xlu1 %v4116_v38, %s6571_s22  ;;  %v4357_v55 = vsel %vm2046_vm9, %v4307_v57, %v9731_v23 }
 0x431   : > { %v4831_v2 = vsel %vm2224_vm4, %v4805_v5, %v4830_v46  ;;  %v4399_v20 = vsel %vm2132_vm11, %v4357_v55, %v4083_v15 }
 0x432   : > { %5403 = vmatprep.mubr.bf16.mxu1 %v4831_v2  ;;  %v4193_v51 = vpop.permute.xlu1 %4192  ;;  %v4085_v4 = vpop.permute.xlu0 %4084  ;;  %v4866_v9 = vshrl.u32 %v4399_v20, 16  ;;  %v4869_v40 = vshll.u32 %v4399_v20, 16 }
 0x434   : > { %4208 = vrot.lane.b32.xlu1 %v6126_v26, %s6575_s12  ;;  %v4868_v43 = vrot.slane %v4866_v9, 3  ;;  %v4871_v16 = vrot.slane %v4869_v40, 4  ;;  %s3366_s12 = scalar_lea.vmem %s10242_s9, %s6558_s13 }
 0x436   : > { %v4142_v27 = vpop.permute.xlu1 %4141  ;;  %v4034_v1 = vpop.permute.xlu0 %4033  ;;  %v4872_v41 = vor.u32 %v4871_v16, %v4868_v43 }
 0x437   : > { %5404 = vmatmul.mubr.bf16.gmra.mxu1 %v4823_v60  ;;  %v4454_v63 = vsel %vm1960_vm7, %v9379_v22, %v4142_v27 }
 0x438   : > { %4260 = vrot.lane.b32.xlu1 %v4218_v44, %s6573_s17  ;;  %v4843_v44 = vrot.slane %v4841_v36, 3  ;;  %v4504_v49 = vsel %vm2046_vm9, %v4454_v63, %v4193_v51 }
 0x43a   : > { %v4144_v13 = vpop.permute.xlu1 %4143  ;;  %v9799_v19 = vpop.permute.xlu0 %4035  ;;  %v4847_v23 = vor.u32 %v4846_v17, %v4843_v44 }
 0x43b   : > { %v4457_v63 = vsel %vm1960_vm7, %v9397_v25, %v4144_v13 }
 0x43c   : > { %v4848_v51 = vsel %vm2224_vm4, %v4822_v56, %v4847_v23 }
 0x448   : > { %v4243_v3 = vpop.permute.xlu1 %4242  ;;  %v3948_v7 = vpop.permute.xlu0 %3947 }
 0x449   : > { %v4544_v5 = vsel %vm2132_vm11, %v4502_v53, %v4243_v3  ;;  %v4310_v61 = vsel %vm1960_vm7, %v9266_v29, %v3948_v7  ;;  %v4873_v3 = vsel %vm2224_vm4, %v4847_v23, %v4872_v41 }
 0x44a   : > { %v4849_v39 = vshrl.u32 %v4544_v5, 16  ;;  %v4852_v52 = vshll.u32 %v4544_v5, 16 }
 0x44c   : > { %v4851_v42 = vrot.slane %v4849_v39, 3  ;;  %v4854_v0 = vrot.slane %v4852_v52, 4  ;;  %v4245_v45 = vpop.permute.xlu1 %4244  ;;  %v3950_v12 = vpop.permute.xlu0 %3949 }
 0x44d   : > { %v4546_v6 = vsel %vm2132_vm11, %v4504_v49, %v4245_v45  ;;  %v4313_v7 = vsel %vm1960_vm7, %v9279_v37, %v3950_v12 }
 0x44e   : > { %v4855_v54 = vor.u32 %v4854_v0, %v4851_v42  ;;  %v4874_v38 = vshrl.u32 %v4546_v6, 16  ;;  %v4877_v22 = vshll.u32 %v4546_v6, 16 }
 0x450   : > { %v4876_v26 = vrot.slane %v4874_v38, 3  ;;  %v4856_v2 = vsel %vm2224_vm4, %v4830_v46, %v4855_v54  ;;  %v4195_v15 = vpop.permute.xlu1 %4194  ;;  %v4087_v60 = vpop.permute.xlu0 %4086  ;;  %v4879_v27 = vrot.slane %v4877_v22, 4  ;;  %v4359_v46 = vsel %vm2046_vm9, %v4310_v61, %v4034_v1 }
 0x451   : > { %5411 = vmatprep.mubr.bf16.mxu1 %v4856_v2  ;;  %v4401_v53 = vsel %vm2132_vm11, %v4359_v46, %v4085_v4  ;;  %v4506_v1 = vsel %vm2046_vm9, %v4457_v63, %v4195_v15  ;;  %v4361_v4 = vsel %vm2046_vm9, %v4313_v7, %v9799_v19 }
 0x452   : > { %5412 = vmatmul.mubr.bf16.gmra.mxu1 %v4848_v51  ;;  %v4880_v50 = vor.u32 %v4879_v27, %v4876_v26  ;;  %v4891_v56 = vshrl.u32 %v4401_v53, 16  ;;  %v4894_v29 = vshll.u32 %v4401_v53, 16  ;;  %v4403_v49 = vsel %vm2132_vm11, %v4361_v4, %v4087_v60 }
 0x453   : > { %v4916_v6 = vshrl.u32 %v4403_v49, 16  ;;  %v4919_v23 = vshll.u32 %v4403_v49, 16 }
 0x454   : > { %v4197_v36 = vpop.permute.xlu1 %4196  ;;  %v4089_v8 = vpop.permute.xlu0 %4088  ;;  %v4881_v57 = vsel %vm2224_vm4, %v4855_v54, %v4880_v50  ;;  %v4893_v5 = vrot.slane %v4891_v56, 3  ;;  %v4896_v52 = vrot.slane %v4894_v29, 4 }
 0x455   : > { %5419 = vmatprep.mubr.bf16.mxu1 %v4881_v57  ;;  %v4918_v43 = vrot.slane %v4916_v6, 3  ;;  %v4921_v16 = vrot.slane %v4919_v23, 4 }
 0x456   : > { %v4897_v19 = vor.u32 %v4896_v52, %v4893_v5 }
 0x458   : > { %v4146_v14 = vpop.permute.xlu1 %4145  ;;  %v4038_v44 = vpop.permute.xlu0 %4037  ;;  %v4898_v51 = vsel %vm2224_vm4, %v4872_v41, %v4897_v19 }
 0x459   : > { %v4460_v42 = vsel %vm1960_vm7, %v9489_v31, %v4146_v14  ;;  %v4922_v14 = vor.u32 %v4921_v16, %v4918_v43 }
 0x45a   : > { %5420 = vmatmul.mubr.bf16.gmra.mxu1 %v4873_v3  ;;  %v4508_v13 = vsel %vm2046_vm9, %v4460_v42, %v4197_v36 }
 0x45b   : > { %v4923_v41 = vsel %vm2224_vm4, %v4897_v19, %v4922_v14 }
 0x45c   : > { %v4148_v17 = vpop.permute.xlu1 %4147  ;;  %v4040_v55 = vpop.permute.xlu0 %4039 }
 0x460   : > { %v4247_v20 = vpop.permute.xlu1 %4246  ;;  %v3952_v39 = vpop.permute.xlu0 %3951 }
 0x461   : > { %v4548_v0 = vsel %vm2132_vm11, %v4506_v1, %v4247_v20  ;;  %v4316_v61 = vsel %vm1960_vm7, %v9404_v28, %v3952_v39 }
 0x462   : > { %v4899_v37 = vshrl.u32 %v4548_v0, 16  ;;  %v4902_v45 = vshll.u32 %v4548_v0, 16 }
 0x464   : > { %v4901_v12 = vrot.slane %v4899_v37, 3  ;;  %v4904_v25 = vrot.slane %v4902_v45, 4  ;;  %v4249_v9 = vpop.permute.xlu1 %4248  ;;  %v3954_v40 = vpop.permute.xlu0 %3953 }
 0x465   : > { %v4550_v54 = vsel %vm2132_vm11, %v4508_v13, %v4249_v9  ;;  %v4319_v1 = vsel %vm1960_vm7, %v9423_v21, %v3954_v40 }
 0x466   : > { %v4905_v38 = vor.u32 %v4904_v25, %v4901_v12  ;;  %v4924_v22 = vshrl.u32 %v4550_v54, 16  ;;  %v4927_v31 = vshll.u32 %v4550_v54, 16  ;;  %v4365_v4 = vsel %vm2046_vm9, %v4319_v1, %v4040_v55 }
 0x468   : > { %v4926_v26 = vrot.slane %v4924_v22, 3  ;;  %v4906_v2 = vsel %vm2224_vm4, %v4880_v50, %v4905_v38  ;;  %v4199_v15 = vpop.permute.xlu1 %4198  ;;  %v4091_v60 = vpop.permute.xlu0 %4090  ;;  %v4929_v27 = vrot.slane %v4927_v31, 4  ;;  %v4363_v50 = vsel %vm2046_vm9, %v4316_v61, %v4038_v44 }
 0x469   : > { %5427 = vmatprep.mubr.bf16.mxu1 %v4906_v2  ;;  %v4405_v29 = vsel %vm2132_vm11, %v4363_v50, %v4089_v8  ;;  %v4463_v44 = vsel %vm1960_vm7, %v9507_v48, %v4148_v17  ;;  %v4407_v49 = vsel %vm2132_vm11, %v4365_v4, %v4091_v60 }
 0x46a   : > { %5428 = vmatmul.mubr.bf16.gmra.mxu1 %v4898_v51  ;;  %v4930_v36 = vor.u32 %v4929_v27, %v4926_v26  ;;  %v4941_v7 = vshrl.u32 %v4405_v29, 16  ;;  %v4944_v28 = vshll.u32 %v4405_v29, 16  ;;  %v4510_v39 = vsel %vm2046_vm9, %v4463_v44, %v4199_v15  ;;  %v6349_v15 = vpop.f32.mrf.mxu0 }
 0x46b   : > { %v4966_v13 = vshrl.u32 %v4407_v49, 16  ;;  %v4969_v9 = vshll.u32 %v4407_v49, 16 }
 0x46c   : > { %v4201_v57 = vpop.permute.xlu1 %4200  ;;  %v9840_v46 = vpop.permute.xlu0 %4092  ;;  %v4931_v53 = vsel %vm2224_vm4, %v4905_v38, %v4930_v36  ;;  %v4943_v20 = vrot.slane %v4941_v7, 3  ;;  %v4946_v8 = vrot.slane %v4944_v28, 4 }
 0x46d   : > { %5435 = vmatprep.mubr.bf16.mxu1 %v4931_v53  ;;  %v4968_v22 = vrot.slane %v4966_v13, 3  ;;  %v4971_v31 = vrot.slane %v4969_v9, 4  ;;  %v10527_v13 = vld [vmem:[#allocation6_spill] sm:$0xff] }
 0x46e   : > { %v4947_v55 = vor.u32 %v4946_v8, %v4943_v20 }
 0x46f   : > { %v9874_v51 = vor.u32 %v4971_v31, %v4968_v22 }
 0x470   : > { %v4150_v3 = vpop.permute.xlu1 %4149  ;;  %v4042_v56 = vpop.permute.xlu0 %4041  ;;  %v4948_v2 = vsel %vm2224_vm4, %v4922_v14, %v4947_v55 }
 0x471   : > { %v4466_v42 = vsel %vm1960_vm7, %v9603_v62, %v4150_v3 }
 0x472   : > { %5436 = vmatmul.mubr.bf16.gmra.mxu1 %v4923_v41  ;;  %v4512_v48 = vsel %vm2046_vm9, %v4466_v42, %v4201_v57  ;;  %v9876_v57 = vld [vmem:[%s3366_s12] ss:$0 sm:$0xff] }
 0x474   : > { %v9846_v63 = vpop.permute.xlu1 %4151  ;;  %v9848_v5 = vpop.permute.xlu0 %4043 }
 0x478   : > { %v4251_v52 = vpop.permute.xlu1 %4250  ;;  %v3956_v21 = vpop.permute.xlu0 %3955 }
 0x479   : > { %v4552_v0 = vsel %vm2132_vm11, %v4510_v39, %v4251_v52  ;;  %v4322_v16 = vsel %vm1960_vm7, %v9518_v35, %v3956_v21  ;;  %v4973_v35 = vsel %vm2224_vm4, %v4947_v55, %v9874_v51  ;;  %v10525_v52 = vld [vmem:[#allocation4_spill] sm:$0xff] }
 0x47a   : > { %v4949_v37 = vshrl.u32 %v4552_v0, 16  ;;  %v4952_v45 = vshll.u32 %v4552_v0, 16  ;;  %v4367_v14 = vsel %vm2046_vm9, %v4322_v16, %v4042_v56 }
 0x47b   : > { %v4409_v7 = vsel %vm2132_vm11, %v4367_v14, %v9840_v46 }
 0x47c   : > { %v4951_v12 = vrot.slane %v4949_v37, 3  ;;  %v4954_v25 = vrot.slane %v4952_v45, 4  ;;  %v4253_v17 = vpop.permute.xlu1 %4252  ;;  %v3958_v26 = vpop.permute.xlu0 %3957  ;;  %v4991_v39 = vshrl.u32 %v4409_v7, 16  ;;  %v4994_v56 = vshll.u32 %v4409_v7, 16  ;;  %v10526_v45 = vld [vmem:[#allocation8_spill] sm:$0xff] }
 0x47d   : > { %v4554_v40 = vsel %vm2132_vm11, %v4512_v48, %v4253_v17  ;;  %v4325_v37 = vsel %vm1960_vm7, %v9540_v32, %v3958_v26  ;;  %v4469_v32 = vsel %vm1960_vm7, %v9626_v30, %v9846_v63  ;;  %v10529_v30 = vld [vmem:[#allocation3_spill] sm:$0xff] }
 0x47e   : > { %v4955_v6 = vor.u32 %v4954_v25, %v4951_v12  ;;  %v4974_v62 = vshrl.u32 %v4554_v40, 16  ;;  %v4977_v23 = vshll.u32 %v4554_v40, 16  ;;  %v4993_v48 = vrot.slane %v4991_v39, 3 }
 0x47f   : > { %v4996_v17 = vrot.slane %v4994_v56, 4 }
 0x480   : > { %v4976_v54 = vrot.slane %v4974_v62, 3  ;;  %v4979_v19 = vrot.slane %v4977_v23, 4  ;;  %v4956_v38 = vsel %vm2224_vm4, %v4930_v36, %v4955_v6  ;;  %v5526_v36 = vpop.f32.mrf.mxu0  ;;  %v4369_v62 = vsel %vm2046_vm9, %v4325_v37, %v9848_v5 }
 0x481   : > { %5443 = vmatprep.mubr.bf16.mxu1 %v4956_v38  ;;  %v10528_v38 = vld [vmem:[#allocation12_spill] sm:$0xff] }
 0x482   : > { %v9864_v60 = vor.u32 %v4979_v19, %v4976_v54  ;;  %5444 = vmatmul.mubr.bf16.gmra.mxu1 %v4948_v2  ;;  %v4203_v43 = vpop.permute.xlu1 %4202  ;;  %v6350_v41 = vpop.f32.mrf.mxu0 }
 0x483   : > { %v4095_v61 = vpop.permute.xlu0 %4094  ;;  %v4514_v54 = vsel %vm2046_vm9, %v4469_v32, %v4203_v43 }
 0x484   : > { %v4981_v27 = vsel %vm2224_vm4, %v4955_v6, %v9864_v60  ;;  %v5529_v0 = vpop.f32.mrf.mxu0  ;;  %v4411_v19 = vsel %vm2132_vm11, %v4369_v62, %v4095_v61 }
 0x485   : > { %5451 = vmatprep.mubr.bf16.mxu1 %v4981_v27  ;;  %v9913_v27 = vor.u32 %v4996_v17, %v4993_v48 }
 0x486   : > { %v9879_v53 = vpop.permute.xlu1 %4204  ;;  %v9897_v6 = vpop.f32.mrf.mxu0 }
 0x487   : > { %v5333_v50 = vpop.f32.mrf.mxu1 }
 0x488   : > { %v5334_v3 = vadd.f32 %v9876_v57, %v5333_v50  ;;  %v5542_v43 = vpop.f32.mrf.mxu0 }
 0x489   : > { %v4046_v29 = vpop.permute.xlu0 %4045  ;;  %v5335_v28 = vpop.f32.mrf.mxu1 }
 0x48a   : > { %5452 = vmatmul.mubr.bf16.gmra.mxu1 %v4973_v35  ;;  %v5527_v1 = vadd.f32 %v5526_v36, %v5334_v3  ;;  %v4154_v44 = vpop.permute.xlu1 %4153  ;;  %v5016_v36 = vshrl.u32 %v4411_v19, 16  ;;  %v5019_v3 = vshll.u32 %v4411_v19, 16  ;;  %v10530_v35 = vld [vmem:[#allocation7_spill] sm:$0xff] }
 0x48b   : > { %v5336_v20 = vpop.f32.mrf.mxu1  ;;  %v4472_v39 = vsel %vm1960_vm7, %v9719_v18, %v4154_v44  ;;  %v4998_v18 = vsel %vm2224_vm4, %v9874_v51, %v9913_v27  ;;  %v10533_v51 = vld [vmem:[#allocation10_spill] sm:$0xff] }
 0x48c   : > { %v5685_v8 = vadd.f32 %v5527_v1, %v10525_v52  ;;  %v5337_v4 = vadd.f32 %v9876_v57, %v5336_v20 }
 0x48d   : > { %v4097_v42 = vpop.permute.xlu0 %4096  ;;  %v5338_v49 = vpop.f32.mrf.mxu1 }
 0x48e   : > { %v5725_v21 = vmul.f32 %v5685_v8, %v10526_v45  ;;  %v5530_v46 = vadd.f32 %v5529_v0, %v5337_v4  ;;  %v4156_v12 = vpop.permute.xlu1 %4155  ;;  %v9929_v0 = vpop.f32.mrf.mxu0  ;;  %v5018_v49 = vrot.slane %v5016_v36, 3  ;;  %v10531_v45 = vld [vmem:[#allocation5_spill] sm:$0xff] }
 0x48f   : > { %v5341_v25 = vpop.f32.mrf.mxu1  ;;  %v4475_v44 = vsel %vm1960_vm7, %v9765_v10, %v4156_v12 }
 0x490   : > { %5765 = vst.msk [vmem:[%s10243_s10] sm:$0xff] %vm1896_vm5, %v5725_v21  ;;  %v5686_v9 = vadd.f32 %v5530_v46, %v10527_v13  ;;  %v5342_v40 = vadd.f32 %v9876_v57, %v5341_v25  ;;  %v10532_v13 = vld [vmem:[#allocation11_spill] sm:$0xff] }
 0x491   : > { %v3960_v55 = vpop.permute.xlu0 %3959  ;;  %v5343_v23 = vpop.f32.mrf.mxu1 }
 0x492   : > { %v5726_v22 = vmul.f32 %v5686_v9, %v10528_v38  ;;  %v5535_v31 = vadd.f32 %v6349_v15, %v5342_v40  ;;  %v4255_v26 = vpop.permute.xlu1 %4254  ;;  %v4328_v61 = vsel %vm1960_vm7, %v9651_v11, %v3960_v55  ;;  %v10534_v38 = vld [vmem:[#allocation16_spill] sm:$0xff] }
 0x493   : > { %v4556_v2 = vsel %vm2132_vm11, %v4514_v54, %v4255_v26  ;;  %v5344_v16 = vpop.f32.mrf.mxu1  ;;  %v4371_v11 = vsel %vm2046_vm9, %v4328_v61, %v4046_v29  ;;  %v4516_v29 = vsel %vm2046_vm9, %v4472_v39, %v9879_v53  ;;  %v5545_v53 = vpop.f32.mrf.mxu0  ;;  %v10535_v61 = vld [vmem:[#allocation9_spill] sm:$0xff] }
 0x494   : > { %5766 = vst.msk [vmem:[%s10243_s10 + $0x8] sm:$0xff] %vm1896_vm5, %v5726_v22  ;;  %v5687_v63 = vadd.f32 %v5535_v31, %v10529_v30  ;;  %v4999_v5 = vshrl.u32 %v4556_v2, 16  ;;  %v5002_v15 = vshll.u32 %v4556_v2, 16  ;;  %v5345_v14 = vadd.f32 %v9876_v57, %v5344_v16 }
 0x495   : > { %v5346_v50 = vpop.f32.mrf.mxu1  ;;  %v9919_v1 = vpop.permute.xlu0 %3961  ;;  %v4413_v17 = vsel %vm2132_vm11, %v4371_v11, %v4097_v42 }
 0x496   : > { %v5727_v7 = vmul.f32 %v5687_v63, %v10530_v35  ;;  %v5001_v28 = vrot.slane %v4999_v5, 3  ;;  %v4207_v20 = vpop.permute.xlu1 %4206  ;;  %v5004_v56 = vrot.slane %v5002_v15, 4  ;;  %v5538_v52 = vadd.f32 %v6350_v41, %v5345_v14 }
 0x497   : > { %v5349_v8 = vpop.f32.mrf.mxu1  ;;  %v5021_v41 = vrot.slane %v5019_v3, 4  ;;  %v4518_v42 = vsel %vm2046_vm9, %v4475_v44, %v4207_v20  ;;  %v5041_v30 = vshrl.u32 %v4413_v17, 16  ;;  %v5044_v63 = vshll.u32 %v4413_v17, 16 }
 0x498   : > { %5767 = vst.msk [vmem:[%s10243_s10 + $0x10] sm:$0xff] %vm1896_vm5, %v5727_v7  ;;  %v5350_v4 = vadd.f32 %v9876_v57, %v5349_v8  ;;  %v5005_v37 = vor.u32 %v5004_v56, %v5001_v28  ;;  %v5688_v21 = vadd.f32 %v5538_v52, %v10531_v45  ;;  %v6097_v3 = vcombine.low %v9662_v24, %v9662_v24  ;;  %v10536_v28 = vld [vmem:[#allocation15_spill] sm:$0xff] }
 0x499   : > { %v5351_v46 = vpop.f32.mrf.mxu1  ;;  %v4048_v23 = vpop.permute.xlu0 %4047  ;;  %v5022_v16 = vor.u32 %v5021_v41, %v5018_v49  ;;  %v5046_v49 = vrot.slane %v5044_v63, 4 }
 0x49a   : > { %v5543_v25 = vadd.f32 %v5542_v43, %v5350_v4  ;;  %v4257_v48 = vpop.permute.xlu1 %4256  ;;  %v5728_v9 = vmul.f32 %v5688_v21, %v10532_v13  ;;  %v5006_v32 = vsel %vm2224_vm4, %v9864_v60, %v5005_v37  ;;  %v5043_v4 = vrot.slane %v5041_v30, 3  ;;  %v10538_v13 = vld [vmem:[#allocation22_spill] sm:$0xff] }
 0x49b   : > { %v4558_v40 = vsel %vm2132_vm11, %v4516_v29, %v4257_v48  ;;  %v5352_v55 = vpop.f32.mrf.mxu1  ;;  %5459 = vmatprep.mubr.bf16.mxu1 %v5006_v32  ;;  %v4331_v45 = vsel %vm1960_vm7, %v6097_v3, %v9919_v1  ;;  %v10537_v1 = vld [vmem:[#allocation14_spill] sm:$0xff] }
 0x49c   : > { %v5689_v62 = vadd.f32 %v5543_v25, %v10533_v51  ;;  %v5024_v54 = vshrl.u32 %v4558_v40, 16  ;;  %v5027_v10 = vshll.u32 %v4558_v40, 16  ;;  %v5353_v12 = vadd.f32 %v9876_v57, %v5352_v55  ;;  %5768 = vst.msk [vmem:[%s10243_s10 + $0x18] sm:$0xff] %vm1896_vm5, %v5728_v9  ;;  %5460 = vmatmul.mubr.bf16.gmra.mxu1 %v4998_v18  ;;  %v10539_v51 = vld [vmem:[#allocation13_spill] sm:$0xff] }
 0x49d   : > { %v5354_v19 = vpop.f32.mrf.mxu1  ;;  %v4099_v39 = vpop.permute.xlu0 %4098  ;;  %v4373_v24 = vsel %vm2046_vm9, %v4331_v45, %v4048_v23  ;;  %v5047_v40 = vor.u32 %v5046_v49, %v5043_v4  ;;  %v10544_v49 = vld [vmem:[#allocation25_spill] sm:$0xff] }
 0x49e   : > { %v5729_v60 = vmul.f32 %v5689_v62, %v10534_v38  ;;  %v5026_v22 = vrot.slane %v5024_v54, 3  ;;  %v5029_v31 = vrot.slane %v5027_v10, 4  ;;  %v5546_v26 = vadd.f32 %v5545_v53, %v5353_v12  ;;  %v4259_v2 = vpop.permute.xlu1 %4258 }
 0x49f   : > { %v4560_v5 = vsel %vm2132_vm11, %v4518_v42, %v4259_v2  ;;  %v5357_v43 = vpop.f32.mrf.mxu1  ;;  %v4415_v44 = vsel %vm2132_vm11, %v4373_v24, %v4099_v39  ;;  %v5048_v53 = vsel %vm2224_vm4, %v5022_v16, %v5047_v40  ;;  %v10545_v24 = vld [vmem:[#allocation20_spill] sm:$0xff] }
 0x4a0   : > { %5769 = vst.msk [vmem:[%s10243_s10 + $0x20] sm:$0xff] %vm1896_vm5, %v5729_v60  ;;  %v5030_v36 = vor.u32 %v5029_v31, %v5026_v22  ;;  %v5690_v15 = vadd.f32 %v5546_v26, %v10535_v61  ;;  %v5049_v14 = vshrl.u32 %v4560_v5, 16  ;;  %v5052_v50 = vshll.u32 %v4560_v5, 16  ;;  %v6357_v22 = vpop.f32.mrf.mxu0 }
 0x4a1   : > { %v5358_v35 = vadd.f32 %v9876_v57, %v5357_v43  ;;  %v5359_v7 = vpop.f32.mrf.mxu1  ;;  %v5066_v55 = vshrl.u32 %v4415_v44, 16  ;;  %v5069_v32 = vshll.u32 %v4415_v44, 16  ;;  %v10546_v44 = vld [vmem:[#allocation30_spill] sm:$0xff] }
 0x4a2   : > { %v5730_v20 = vmul.f32 %v5690_v15, %v10536_v28  ;;  %v5051_v56 = vrot.slane %v5049_v14, 3  ;;  %v5054_v52 = vrot.slane %v5052_v50, 4  ;;  %v4158_v8 = vpop.permute.xlu1 %4157  ;;  %v5031_v11 = vsel %vm2224_vm4, %v5005_v37, %v5030_v36  ;;  %v5558_v30 = vpop.f32.mrf.mxu0  ;;  %v10541_v50 = vld [vmem:[#allocation18_spill] sm:$0xff] }
 0x4a3   : > { %v5551_v21 = vadd.f32 %v9897_v6, %v5358_v35  ;;  %v5360_v46 = vpop.f32.mrf.mxu1  ;;  %5467 = vmatprep.mubr.bf16.mxu1 %v5031_v11  ;;  %v5023_v37 = vsel %vm2224_vm4, %v9913_v27, %v5022_v16  ;;  %v4478_v27 = vsel %vm1960_vm7, %v9753_v47, %v4158_v8  ;;  %v5068_v42 = vrot.slane %v5066_v55, 3  ;;  %v10543_v8 = vld [vmem:[#allocation17_spill] sm:$0xff] }
 0x4a4   : > { %5770 = vst.msk [vmem:[%s10243_s10 + $0x28] sm:$0xff] %vm1896_vm5, %v5730_v20  ;;  %v5055_v18 = vor.u32 %v5054_v52, %v5051_v56  ;;  %v5361_v41 = vadd.f32 %v9876_v57, %v5360_v46  ;;  %5468 = vmatmul.mubr.bf16.gmra.mxu1 %v5023_v37  ;;  %v5071_v19 = vrot.slane %v5069_v32, 4  ;;  %v10542_v20 = vld [vmem:[#allocation26_spill] sm:$0xff] }
 0x4a5   : > { %v5691_v25 = vadd.f32 %v5551_v21, %v10537_v1  ;;  %v5362_v6 = vpop.f32.mrf.mxu1 }
 0x4a6   : > { %v5554_v29 = vadd.f32 %v9929_v0, %v5361_v41  ;;  %v4209_v48 = vpop.permute.xlu1 %4208  ;;  %v5056_v17 = vsel %vm2224_vm4, %v5030_v36, %v5055_v18  ;;  %v10540_v0 = vld [vmem:[#allocation21_spill] sm:$0xff]  ;;  %v5072_v26 = vor.u32 %v5071_v19, %v5068_v42  ;;  %v6358_v36 = vpop.f32.mrf.mxu0 }
 0x4a7   : > { %v5731_v9 = vmul.f32 %v5691_v25, %v10538_v13  ;;  %5475 = vmatprep.mubr.bf16.mxu1 %v5056_v17  ;;  %v4520_v54 = vsel %vm2046_vm9, %v4478_v27, %v4209_v48  ;;  %v10549_v27 = vld [vmem:[#allocation24_spill] sm:$0xff] }
 0x4a8   : > { %v5692_v62 = vadd.f32 %v5554_v29, %v10539_v51  ;;  %v5073_v43 = vsel %vm2224_vm4, %v5047_v40, %v5072_v26  ;;  %v5561_v7 = vpop.f32.mrf.mxu0  ;;  %v10548_v29 = vld [vmem:[#allocation29_spill] sm:$0xff] }
 0x4a9   : > { %5771 = vst.msk [vmem:[%s10243_s10 + $0x30] sm:$0xff] %vm1896_vm5, %v5731_v9 }
 0x4aa   : > { %v5732_v23 = vmul.f32 %v5692_v62, %v10540_v0  ;;  %v4261_v10 = vpop.permute.xlu1 %4260  ;;  %v6361_v17 = vpop.f32.mrf.mxu0 }
 0x4ab   : > { %v4562_v12 = vsel %vm2132_vm11, %v4520_v54, %v4261_v10 }
 0x4ac   : > { %5772 = vst.msk [vmem:[%s10243_s10 + $0x38] sm:$0xff] %vm1896_vm5, %v5732_v23  ;;  %v5074_v38 = vshrl.u32 %v4562_v12, 16  ;;  %v5077_v60 = vshll.u32 %v4562_v12, 16  ;;  %5476 = vmatmul.mubr.bf16.gmra.mxu1 %v5048_v53  ;;  %v5574_v13 = vpop.f32.mrf.mxu0  ;;  %v10550_v12 = vld [vmem:[#allocation34_spill] sm:$0xff] }
 0x4ae   : > { %v5076_v47 = vrot.slane %v5074_v38, 3  ;;  %v5079_v31 = vrot.slane %v5077_v60, 4  ;;  %v6362_v55 = vpop.f32.mrf.mxu0  ;;  %v10551_v38 = vld [vmem:[#allocation23_spill] sm:$0xff] }
 0x4b0   : > { %v5080_v2 = vor.u32 %v5079_v31, %v5076_v47  ;;  %v5577_v54 = vpop.f32.mrf.mxu0  ;;  %v10552_v31 = vld [vmem:[#allocation33_spill] sm:$0xff] }
 0x4b2   : > { %v5081_v63 = vsel %vm2224_vm4, %v5055_v18, %v5080_v2 }
 0x4b3   : > { %5483 = vmatprep.mubr.bf16.mxu1 %v5081_v63  ;;  %v10553_v63 = vld [vmem:[#allocation28_spill] sm:$0xff] }
 0x4b4   : > { %v5365_v16 = vpop.f32.mrf.mxu1  ;;  %5484 = vmatmul.mubr.bf16.gmra.mxu1 %v5073_v43 }
 0x4b5   : > { %v5366_v5 = vadd.f32 %v9876_v57, %v5365_v16  ;;  %6383 = vmatprep.mubr.msk.bf16.mxu1 %vm1960_vm7, %v9739_v33 }
 0x4b6   : > { %v5367_v61 = vpop.f32.mrf.mxu1 }
 0x4b7   : > { %v5559_v15 = vadd.f32 %v5558_v30, %v5366_v5 }
 0x4b8   : > { %v5368_v14 = vpop.f32.mrf.mxu1 }
 0x4b9   : > { %v5693_v3 = vadd.f32 %v5559_v15, %v10541_v50  ;;  %v5369_v35 = vadd.f32 %v9876_v57, %v5368_v14  ;;  %v10555_v14 = vld [vmem:[#allocation27_spill] sm:$0xff] }
 0x4ba   : > { %v5370_v28 = vpop.f32.mrf.mxu1 }
 0x4bb   : > { %v5733_v39 = vmul.f32 %v5693_v3, %v10542_v20  ;;  %v5562_v56 = vadd.f32 %v5561_v7, %v5369_v35  ;;  %v10556_v3 = vld [vmem:[#allocation37_spill] sm:$0xff]  ;;  %v6365_v7 = vpop.f32.mrf.mxu0 }
 0x4bc   : > { %v5373_v52 = vpop.f32.mrf.mxu1  ;;  %6384 = vmatmul.mubr.msk.bf16.vlgmr.msra.gmra.mxu1 %vm1960_vm7, %v9742_v34  ;;  %v10547_v34 = vld [vmem:[#allocation19_spill] sm:$0xff] }
 0x4bd   : > { %5773 = vst.msk [vmem:[%s10243_s10 + $0x40] sm:$0xff] %vm1896_vm5, %v5733_v39  ;;  %v5694_v11 = vadd.f32 %v5562_v56, %v10543_v8  ;;  %v5374_v33 = vadd.f32 %v9876_v57, %v5373_v52  ;;  %v5590_v28 = vpop.f32.mrf.mxu0 }
 0x4be   : > { %v5375_v4 = vpop.f32.mrf.mxu1 }
 0x4bf   : > { %v5734_v45 = vmul.f32 %v5694_v11, %v10544_v49  ;;  %v5567_v21 = vadd.f32 %v6357_v22, %v5374_v33  ;;  %v6366_v56 = vpop.f32.mrf.mxu0  ;;  %v10557_v33 = vld [vmem:[#allocation32_spill] sm:$0xff] }
 0x4c0   : > { %v5376_v46 = vpop.f32.mrf.mxu1 }
 0x4c1   : > { %5774 = vst.msk [vmem:[%s10243_s10 + $0x48] sm:$0xff] %vm1896_vm5, %v5734_v45  ;;  %v5695_v18 = vadd.f32 %v5567_v21, %v10545_v24  ;;  %v5377_v41 = vadd.f32 %v9876_v57, %v5376_v46  ;;  %v5593_v45 = vpop.f32.mrf.mxu0  ;;  %v10558_v46 = vld [vmem:[#allocation42_spill] sm:$0xff] }
 0x4c2   : > { %v5378_v37 = vpop.f32.mrf.mxu1 }
 0x4c3   : > { %v5735_v1 = vmul.f32 %v5695_v18, %v10546_v44  ;;  %v5570_v25 = vadd.f32 %v6358_v36, %v5377_v41  ;;  %v10554_v36 = vld [vmem:[#allocation38_spill] sm:$0xff]  ;;  %v10559_v37 = vld [vmem:[#allocation31_spill] sm:$0xff] }
 0x4c5   : > { %5775 = vst.msk [vmem:[%s10243_s10 + $0x50] sm:$0xff] %vm1896_vm5, %v5735_v1  ;;  %v5696_v6 = vadd.f32 %v5570_v25, %v10547_v34  ;;  %v10560_v34 = vld [vmem:[#allocation41_spill] sm:$0xff] }
 0x4c7   : > { %v5736_v48 = vmul.f32 %v5696_v6, %v10548_v29 }
 0x4c9   : > { %5776 = vst.msk [vmem:[%s10243_s10 + $0x58] sm:$0xff] %vm1896_vm5, %v5736_v48 }
 0x4d0   : > { %v5381_v9 = vpop.f32.mrf.mxu1 }
 0x4d1   : > { %v5382_v40 = vadd.f32 %v9876_v57, %v5381_v9 }
 0x4d2   : > { %v5383_v32 = vpop.f32.mrf.mxu1 }
 0x4d3   : > { %v5575_v51 = vadd.f32 %v5574_v13, %v5382_v40 }
 0x4d4   : > { %v5384_v62 = vpop.f32.mrf.mxu1 }
 0x4d5   : > { %v5697_v0 = vadd.f32 %v5575_v51, %v10549_v27  ;;  %v5385_v23 = vadd.f32 %v9876_v57, %v5384_v62  ;;  %v10563_v62 = vld [vmem:[#allocation35_spill] sm:$0xff] }
 0x4d6   : > { %v5386_v10 = vpop.f32.mrf.mxu1 }
 0x4d7   : > { %v5737_v53 = vmul.f32 %v5697_v0, %v10550_v12  ;;  %v5578_v42 = vadd.f32 %v5577_v54, %v5385_v23  ;;  %v10564_v0 = vld [vmem:[#allocation43_spill] sm:$0xff]  ;;  %v6369_v54 = vpop.f32.mrf.mxu0 }
 0x4d8   : > { %v5389_v19 = vpop.f32.mrf.mxu1 }
 0x4d9   : > { %5777 = vst.msk [vmem:[%s10243_s10 + $0x60] sm:$0xff] %vm1896_vm5, %v5737_v53  ;;  %v5698_v60 = vadd.f32 %v5578_v42, %v10551_v38  ;;  %v5390_v22 = vadd.f32 %v9876_v57, %v5389_v19  ;;  %v5606_v10 = vpop.f32.mrf.mxu0 }
 0x4da   : > { %v5391_v47 = vpop.f32.mrf.mxu1 }
 0x4db   : > { %v5738_v26 = vmul.f32 %v5698_v60, %v10552_v31  ;;  %v5583_v2 = vadd.f32 %v6361_v17, %v5390_v22  ;;  %v10561_v17 = vld [vmem:[#allocation36_spill] sm:$0xff]  ;;  %v6370_v42 = vpop.f32.mrf.mxu0 }
 0x4dc   : > { %v5392_v30 = vpop.f32.mrf.mxu1  ;;  %v10565_v22 = vld [vmem:[#allocation40_spill] sm:$0xff] }
 0x4dd   : > { %5778 = vst.msk [vmem:[%s10243_s10 + $0x68] sm:$0xff] %vm1896_vm5, %v5738_v26  ;;  %v5699_v16 = vadd.f32 %v5583_v2, %v10553_v63  ;;  %v5393_v5 = vadd.f32 %v9876_v57, %v5392_v30  ;;  %v5609_v26 = vpop.f32.mrf.mxu0  ;;  %v10566_v30 = vld [vmem:[#allocation48_spill] sm:$0xff] }
 0x4de   : > { %v5394_v43 = vpop.f32.mrf.mxu1 }
 0x4df   : > { %v5739_v61 = vmul.f32 %v5699_v16, %v10554_v36  ;;  %v5586_v15 = vadd.f32 %v6362_v55, %v5393_v5  ;;  %v10562_v55 = vld [vmem:[#allocation44_spill] sm:$0xff]  ;;  %v10567_v43 = vld [vmem:[#allocation39_spill] sm:$0xff] }
 0x4e1   : > { %5779 = vst.msk [vmem:[%s10243_s10 + $0x70] sm:$0xff] %vm1896_vm5, %v5739_v61  ;;  %v5700_v50 = vadd.f32 %v5586_v15, %v10555_v14  ;;  %v10568_v14 = vld [vmem:[#allocation47_spill] sm:$0xff] }
 0x4e3   : > { %v5740_v35 = vmul.f32 %v5700_v50, %v10556_v3 }
 0x4e5   : > { %5780 = vst.msk [vmem:[%s10243_s10 + $0x78] sm:$0xff] %vm1896_vm5, %v5740_v35 }
 0x4ef   : > { %v5397_v20 = vpop.f32.mrf.mxu1 }
 0x4f0   : > { %v5398_v39 = vadd.f32 %v9876_v57, %v5397_v20 }
 0x4f1   : > { %v5399_v52 = vpop.f32.mrf.mxu1 }
 0x4f2   : > { %v5591_v8 = vadd.f32 %v5590_v28, %v5398_v39 }
 0x4f3   : > { %v5400_v11 = vpop.f32.mrf.mxu1 }
 0x4f4   : > { %v5701_v4 = vadd.f32 %v5591_v8, %v10557_v33  ;;  %v5401_v49 = vadd.f32 %v9876_v57, %v5400_v11  ;;  %v10571_v11 = vld [vmem:[#allocation45_spill] sm:$0xff] }
 0x4f5   : > { %v5402_v21 = vpop.f32.mrf.mxu1 }
 0x4f6   : > { %v5741_v24 = vmul.f32 %v5701_v4, %v10558_v46  ;;  %v5594_v18 = vadd.f32 %v5593_v45, %v5401_v49  ;;  %v6373_v4 = vpop.f32.mrf.mxu0  ;;  %v10572_v49 = vld [vmem:[#allocation50_spill] sm:$0xff] }
 0x4f7   : > { %v5405_v41 = vpop.f32.mrf.mxu1 }
 0x4f8   : > { %5781 = vst.msk [vmem:[%s10243_s10 + $0x80] sm:$0xff] %vm1896_vm5, %v5741_v24  ;;  %v5702_v44 = vadd.f32 %v5594_v18, %v10559_v37  ;;  %v5406_v1 = vadd.f32 %v9876_v57, %v5405_v41  ;;  %v5622_v21 = vpop.f32.mrf.mxu0 }
 0x4f9   : > { %v5407_v25 = vpop.f32.mrf.mxu1 }
 0x4fa   : > { %v5742_v6 = vmul.f32 %v5702_v44, %v10560_v34  ;;  %v5599_v29 = vadd.f32 %v6365_v7, %v5406_v1  ;;  %v10569_v7 = vld [vmem:[#allocation46_spill] sm:$0xff]  ;;  %v6374_v18 = vpop.f32.mrf.mxu0  ;;  %v10573_v1 = vld [vmem:[#allocation55_spill] sm:$0xff] }
 0x4fb   : > { %v5408_v48 = vpop.f32.mrf.mxu1 }
 0x4fc   : > { %5782 = vst.msk [vmem:[%s10243_s10 + $0x88] sm:$0xff] %vm1896_vm5, %v5742_v6  ;;  %v5703_v13 = vadd.f32 %v5599_v29, %v10561_v17  ;;  %v5409_v9 = vadd.f32 %v9876_v57, %v5408_v48  ;;  %v5625_v6 = vpop.f32.mrf.mxu0 }
 0x4fd   : > { %v5410_v40 = vpop.f32.mrf.mxu1 }
 0x4fe   : > { %v5743_v32 = vmul.f32 %v5703_v13, %v10562_v55  ;;  %v5602_v51 = vadd.f32 %v6366_v56, %v5409_v9  ;;  %v10570_v56 = vld [vmem:[#allocation51_spill] sm:$0xff]  ;;  %v10574_v9 = vld [vmem:[#allocation49_spill] sm:$0xff] }
 0x500   : > { %5783 = vst.msk [vmem:[%s10243_s10 + $0x90] sm:$0xff] %vm1896_vm5, %v5743_v32  ;;  %v5704_v27 = vadd.f32 %v5602_v51, %v10563_v62 }
 0x502   : > { %v5744_v23 = vmul.f32 %v5704_v27, %v10564_v0 }
 0x504   : > { %5784 = vst.msk [vmem:[%s10243_s10 + $0x98] sm:$0xff] %vm1896_vm5, %v5744_v23 }
 0x512   : > { %v5413_v12 = vpop.f32.mrf.mxu1 }
 0x513   : > { %v5414_v53 = vadd.f32 %v9876_v57, %v5413_v12 }
 0x514   : > { %v5415_v19 = vpop.f32.mrf.mxu1 }
 0x515   : > { %v5607_v38 = vadd.f32 %v5606_v10, %v5414_v53  ;;  %v10576_v10 = vld [vmem:[#allocation64_spill] sm:$0xff]  ;;  %v6377_v19 = vpop.f32.mrf.mxu0 }
 0x516   : > { %v5416_v60 = vpop.f32.mrf.mxu1 }
 0x517   : > { %v5705_v47 = vadd.f32 %v5607_v38, %v10565_v22  ;;  %v5417_v31 = vadd.f32 %v9876_v57, %v5416_v60  ;;  %v10578_v38 = vld [vmem:[#allocation57_spill] sm:$0xff]  ;;  %v5638_v22 = vpop.f32.mrf.mxu0 }
 0x518   : > { %v5418_v2 = vpop.f32.mrf.mxu1 }
 0x519   : > { %v5745_v63 = vmul.f32 %v5705_v47, %v10566_v30  ;;  %v5610_v16 = vadd.f32 %v5609_v26, %v5417_v31  ;;  %v6378_v26 = vpop.f32.mrf.mxu0 }
 0x51a   : > { %v5421_v5 = vpop.f32.mrf.mxu1 }
 0x51b   : > { %5785 = vst.msk [vmem:[%s10243_s10 + $0xa0] sm:$0xff] %vm1896_vm5, %v5745_v63  ;;  %v5706_v36 = vadd.f32 %v5610_v16, %v10567_v43  ;;  %v5422_v61 = vadd.f32 %v9876_v57, %v5421_v5  ;;  %v10579_v16 = vld [vmem:[#allocation53_spill] sm:$0xff] }
 0x51c   : > { %v5423_v15 = vpop.f32.mrf.mxu1 }
 0x51d   : > { %v5746_v50 = vmul.f32 %v5706_v36, %v10568_v14  ;;  %v5615_v3 = vadd.f32 %v6369_v54, %v5422_v61  ;;  %v5641_v36 = vpop.f32.mrf.mxu0  ;;  %v10580_v15 = vld [vmem:[#allocation60_spill] sm:$0xff] }
 0x51e   : > { %v5424_v35 = vpop.f32.mrf.mxu1 }
 0x51f   : > { %5786 = vst.msk [vmem:[%s10243_s10 + $0xa8] sm:$0xff] %vm1896_vm5, %v5746_v50  ;;  %v5707_v28 = vadd.f32 %v5615_v3, %v10569_v7  ;;  %v5425_v20 = vadd.f32 %v9876_v57, %v5424_v35  ;;  %v10581_v35 = vld [vmem:[#allocation62_spill] sm:$0xff] }
 0x520   : > { %v5426_v39 = vpop.f32.mrf.mxu1 }
 0x521   : > { %v5747_v52 = vmul.f32 %v5707_v28, %v10570_v56  ;;  %v5618_v8 = vadd.f32 %v6370_v42, %v5425_v20  ;;  %v10582_v39 = vld [vmem:[#allocation67_spill] sm:$0xff] }
 0x523   : > { %5787 = vst.msk [vmem:[%s10243_s10 + $0xb0] sm:$0xff] %vm1896_vm5, %v5747_v52  ;;  %v5708_v33 = vadd.f32 %v5618_v8, %v10571_v11  ;;  %v10583_v11 = vld [vmem:[#allocation65_spill] sm:$0xff] }
 0x525   : > { %v5748_v45 = vmul.f32 %v5708_v33, %v10572_v49 }
 0x527   : > { %5788 = vst.msk [vmem:[%s10243_s10 + $0xb8] sm:$0xff] %vm1896_vm5, %v5748_v45  ;;  %v10584_v45 = vld [vmem:[#allocation69_spill] sm:$0xff] }
 0x52a   : > { %v5429_v46 = vpop.f32.mrf.mxu1 }
 0x52b   : > { %v5430_v24 = vadd.f32 %v9876_v57, %v5429_v46 }
 0x52c   : > { %v5431_v41 = vpop.f32.mrf.mxu1 }
 0x52d   : > { %v5623_v37 = vadd.f32 %v5622_v21, %v5430_v24  ;;  %v10585_v24 = vld [vmem:[#allocation56_spill] sm:$0xff]  ;;  %v10586_v41 = vld [vmem:[#allocation63_spill] sm:$0xff] }
 0x52e   : > { %v5432_v44 = vpop.f32.mrf.mxu1 }
 0x52f   : > { %v5709_v25 = vadd.f32 %v5623_v37, %v10573_v1  ;;  %v5433_v34 = vadd.f32 %v9876_v57, %v5432_v44  ;;  %v6381_v44 = vpop.f32.mrf.mxu0 }
 0x530   : > { %v5434_v29 = vpop.f32.mrf.mxu1 }
 0x531   : > { %v5749_v48 = vmul.f32 %v5709_v25, %v10503_v59  ;;  %v5626_v17 = vadd.f32 %v5625_v6, %v5433_v34  ;;  %v10575_v59 = vld [vmem:[#allocation58_spill] sm:$0xff]  ;;  %v5654_v1 = vpop.f32.mrf.mxu0 }
 0x532   : > { %v5437_v13 = vpop.f32.mrf.mxu1 }
 0x533   : > { %5789 = vst.msk [vmem:[%s10243_s10 + $0xc0] sm:$0xff] %vm1896_vm5, %v5749_v48  ;;  %v5710_v40 = vadd.f32 %v5626_v17, %v10574_v9  ;;  %v5438_v55 = vadd.f32 %v9876_v57, %v5437_v13  ;;  %v6382_v6 = vpop.f32.mrf.mxu0  ;;  %v10587_v13 = vld [vmem:[#allocation59_spill] sm:$0xff] }
 0x534   : > { %v5439_v32 = vpop.f32.mrf.mxu1 }
 0x535   : > { %v5750_v51 = vmul.f32 %v5710_v40, %v10505_v58  ;;  %v5631_v62 = vadd.f32 %v6373_v4, %v5438_v55  ;;  %v10577_v58 = vld [vmem:[#allocation52_spill] sm:$0xff]  ;;  %v5657_v55 = vpop.f32.mrf.mxu0 }
 0x536   : > { %v5440_v27 = vpop.f32.mrf.mxu1 }
 0x537   : > { %5790 = vst.msk [vmem:[%s10243_s10 + $0xc8] sm:$0xff] %vm1896_vm5, %v5750_v51  ;;  %v5711_v0 = vadd.f32 %v5631_v62, %v10575_v59  ;;  %v5441_v23 = vadd.f32 %v9876_v57, %v5440_v27  ;;  %v10588_v51 = vld [vmem:[#allocation66_spill] sm:$0xff] }
 0x538   : > { %v5442_v54 = vpop.f32.mrf.mxu1 }
 0x539   : > { %v5751_v12 = vmul.f32 %v5711_v0, %v10576_v10  ;;  %v5634_v53 = vadd.f32 %v6374_v18, %v5441_v23  ;;  %v10589_v0 = vld [vmem:[#allocation68_spill] sm:$0xff] }
 0x53b   : > { %5791 = vst.msk [vmem:[%s10243_s10 + $0xd0] sm:$0xff] %vm1896_vm5, %v5751_v12  ;;  %v5712_v42 = vadd.f32 %v5634_v53, %v10577_v58  ;;  %v10590_v12 = vld [vmem:[#allocation70_spill] sm:$0xff] }
 0x53d   : > { %v5752_v60 = vmul.f32 %v5712_v42, %v10578_v38 }
 0x53f   : > { %5792 = vst.msk [vmem:[%s10243_s10 + $0xd8] sm:$0xff] %vm1896_vm5, %v5752_v60 }
 0x542   : > { %v5445_v47 = vpop.f32.mrf.mxu1 }
 0x543   : > { %v5446_v31 = vadd.f32 %v9876_v57, %v5445_v47  ;;  %v10592_v47 = vld [vmem:[#allocation75_spill] sm:$0xff] }
 0x544   : > { %v5447_v2 = vpop.f32.mrf.mxu1 }
 0x545   : > { %v5639_v30 = vadd.f32 %v5638_v22, %v5446_v31 }
 0x546   : > { %v5448_v63 = vpop.f32.mrf.mxu1 }
 0x547   : > { %v5713_v5 = vadd.f32 %v5639_v30, %v10579_v16  ;;  %v5449_v43 = vadd.f32 %v9876_v57, %v5448_v63  ;;  %v10593_v30 = vld [vmem:[#allocation76_spill] sm:$0xff] }
 0x548   : > { %v5450_v61 = vpop.f32.mrf.mxu1 }
 0x549   : > { %v5753_v14 = vmul.f32 %v5713_v5, %v10580_v15  ;;  %v5642_v50 = vadd.f32 %v5641_v36, %v5449_v43  ;;  %v10594_v5 = vld [vmem:[#allocation77_spill] sm:$0xff] }
 0x54a   : > { %v5453_v3 = vpop.f32.mrf.mxu1 }
 0x54b   : > { %5793 = vst.msk [vmem:[%s10243_s10 + $0xe0] sm:$0xff] %vm1896_vm5, %v5753_v14  ;;  %v5714_v7 = vadd.f32 %v5642_v50, %v10581_v35  ;;  %v5454_v28 = vadd.f32 %v9876_v57, %v5453_v3 }
 0x54c   : > { %v5455_v20 = vpop.f32.mrf.mxu1 }
 0x54d   : > { %v5754_v56 = vmul.f32 %v5714_v7, %v10582_v39  ;;  %v5647_v52 = vadd.f32 %v6377_v19, %v5454_v28  ;;  %v10591_v19 = vld [vmem:[#allocation74_spill] sm:$0xff] }
 0x54e   : > { %v5456_v8 = vpop.f32.mrf.mxu1 }
 0x54f   : > { %5794 = vst.msk [vmem:[%s10243_s10 + $0xe8] sm:$0xff] %vm1896_vm5, %v5754_v56  ;;  %v5715_v33 = vadd.f32 %v5647_v52, %v10583_v11  ;;  %v5457_v4 = vadd.f32 %v9876_v57, %v5456_v8  ;;  %v10595_v52 = vld [vmem:[#allocation82_spill] sm:$0xff] }
 0x550   : > { %v5458_v49 = vpop.f32.mrf.mxu1 }
 0x551   : > { %v5755_v21 = vmul.f32 %v5715_v33, %v10584_v45  ;;  %v5650_v46 = vadd.f32 %v6378_v26, %v5457_v4  ;;  %v10596_v49 = vld [vmem:[#allocation83_spill] sm:$0xff] }
 0x553   : > { %5795 = vst.msk [vmem:[%s10243_s10 + $0xf0] sm:$0xff] %vm1896_vm5, %v5755_v21  ;;  %v5716_v18 = vadd.f32 %v5650_v46, %v10585_v24  ;;  %v10597_v21 = vld [vmem:[#allocation79_spill] sm:$0xff] }
 0x555   : > { %v5756_v37 = vmul.f32 %v5716_v18, %v10586_v41  ;;  %v10598_v41 = vld [vmem:[#allocation81_spill] sm:$0xff] }
 0x557   : > { %5796 = vst.msk [vmem:[%s10243_s10 + $0xf8] sm:$0xff] %vm1896_vm5, %v5756_v37 }
 0x55c   : > { %v5461_v25 = vpop.f32.mrf.mxu1 }
 0x55d   : > { %v5462_v34 = vadd.f32 %v9876_v57, %v5461_v25 }
 0x55e   : > { %v5463_v29 = vpop.f32.mrf.mxu1 }
 0x55f   : > { %v5655_v48 = vadd.f32 %v5654_v1, %v5462_v34 }
 0x560   : > { %v5464_v17 = vpop.f32.mrf.mxu1 }
 0x561   : > { %v5717_v9 = vadd.f32 %v5655_v48, %v10587_v13  ;;  %v5465_v40 = vadd.f32 %v9876_v57, %v5464_v17  ;;  %v10602_v48 = vld [vmem:[#allocation80_spill] sm:$0xff] }
 0x562   : > { %v5466_v32 = vpop.f32.mrf.mxu1 }
 0x563   : > { %v5757_v62 = vmul.f32 %v5717_v9, %v10588_v51  ;;  %v5658_v27 = vadd.f32 %v5657_v55, %v5465_v40 }
 0x564   : > { %v5469_v59 = vpop.f32.mrf.mxu1 }
 0x565   : > { %5797 = vst.msk [vmem:[%s10243_s10 + $0x100] sm:$0xff] %vm1896_vm5, %v5757_v62  ;;  %v5718_v23 = vadd.f32 %v5658_v27, %v10589_v0  ;;  %v5470_v54 = vadd.f32 %v9876_v57, %v5469_v59 }
 0x566   : > { %v5471_v10 = vpop.f32.mrf.mxu1 }
 0x567   : > { %v5758_v53 = vmul.f32 %v5718_v23, %v10590_v12  ;;  %v5663_v58 = vadd.f32 %v6381_v44, %v5470_v54  ;;  %v10599_v44 = vld [vmem:[#allocation84_spill] sm:$0xff] }
 0x568   : > { %v5472_v42 = vpop.f32.mrf.mxu1 }
 0x569   : > { %5798 = vst.msk [vmem:[%s10243_s10 + $0x108] sm:$0xff] %vm1896_vm5, %v5758_v53  ;;  %v5719_v38 = vadd.f32 %v5663_v58, %v10591_v19  ;;  %v5473_v60 = vadd.f32 %v9876_v57, %v5472_v42 }
 0x56a   : > { %v5474_v22 = vpop.f32.mrf.mxu1 }
 0x56b   : > { %v5759_v31 = vmul.f32 %v5719_v38, %v10592_v47  ;;  %v5666_v26 = vadd.f32 %v6382_v6, %v5473_v60  ;;  %v10601_v6 = vld [vmem:[#allocation78_spill] sm:$0xff] }
 0x56c   : > { %v5477_v2 = vpop.f32.mrf.mxu1 }
 0x56d   : > { %5799 = vst.msk [vmem:[%s10243_s10 + $0x110] sm:$0xff] %vm1896_vm5, %v5759_v31  ;;  %v5720_v63 = vadd.f32 %v5666_v26, %v10593_v30  ;;  %v5478_v28 = vadd.f32 %v9876_v57, %v5477_v2 }
 0x56e   : > { %v5479_v16 = vpop.f32.mrf.mxu1 }
 0x56f   : > { %v5760_v43 = vmul.f32 %v5720_v63, %v10594_v5 }
 0x570   : > { %v5480_v36 = vpop.f32.mrf.mxu1 }
 0x571   : > { %5800 = vst.msk [vmem:[%s10243_s10 + $0x118] sm:$0xff] %vm1896_vm5, %v5760_v43  ;;  %v5481_v4 = vadd.f32 %v9876_v57, %v5480_v36 }
 0x572   : > { %v5482_v61 = vpop.f32.mrf.mxu1 }
 0x574   : > { %v5485_v15 = vpop.f32.mrf.mxu1 }
 0x575   : > { %v5486_v35 = vadd.f32 %v9876_v57, %v5485_v15 }
 0x576   : > { %v5487_v14 = vpop.f32.mrf.mxu1 }
 0x578   : > { %v5488_v50 = vpop.f32.mrf.mxu1 }
 0x579   : > { %v5489_v56 = vadd.f32 %v9876_v57, %v5488_v50  ;;  %v10600_v57 = vld [vmem:[#allocation85_spill] sm:$0xff] }
 0x57a   : > { %v5490_v3 = vpop.f32.mrf.mxu1 }
 0x57c   : > { %v6385_v7 = vpop.f32.mrf.mxu1 }
 0x57d   : > { %v5679_v20 = vadd.f32 %v6385_v7, %v5486_v35 }
 0x57e   : > { %v5670_v39 = vpop.f32.mrf.mxu1 }
 0x57f   : > { %v5723_v8 = vadd.f32 %v5679_v20, %v10595_v52  ;;  %v5671_v11 = vadd.f32 %v5670_v39, %v5478_v28 }
 0x580   : > { %v6386_v33 = vpop.f32.mrf.mxu1 }
 0x581   : > { %v5763_v45 = vmul.f32 %v5723_v8, %v10596_v49  ;;  %v5721_v46 = vadd.f32 %v5671_v11, %v10597_v21  ;;  %v5682_v24 = vadd.f32 %v6386_v33, %v5489_v56 }
 0x582   : > { %v5673_v18 = vpop.f32.mrf.mxu1 }
 0x583   : > { %5803 = vst.msk [vmem:[%s10243_s10 + $0x130] sm:$0xff] %vm1896_vm5, %v5763_v45  ;;  %v5761_v37 = vmul.f32 %v5721_v46, %v10598_v41  ;;  %v5724_v1 = vadd.f32 %v5682_v24, %v10599_v44  ;;  %v5674_v25 = vadd.f32 %v5673_v18, %v5481_v4 }
 0x585   : > { %5801 = vst.msk [vmem:[%s10243_s10 + $0x120] sm:$0xff] %vm1896_vm5, %v5761_v37  ;;  %v5764_v34 = vmul.f32 %v5724_v1, %v10600_v57  ;;  %v5722_v29 = vadd.f32 %v5674_v25, %v10601_v6 }
 0x587   : > { %5804 = vst.msk [vmem:[%s10243_s10 + $0x138] sm:$0xff] %vm1896_vm5, %v5764_v34  ;;  %v5762_v17 = vmul.f32 %v5722_v29, %v10602_v48 }
 0x589   : > { %5802 = vst.msk [vmem:[%s10243_s10 + $0x128] sm:$0xff] %vm1896_vm5, %v5762_v17 }
 0x58a PF: > { %s20_s15 = sadd.s32 1, %s6566_s15   ;;  %s10603_s13 = smov %s6562_s14 }
 0x58b   : > { %p17_p6 = scmp.ge.s32.totalorder %s20_s15, 4   ;;  %s10604_s14 = smov %s10606_s16 }
 0x58d   :  { %19 = sbr.rel (!%p17_p6) target bundleno = 2 (0x2), region = 106 }

</bundles_post_ra>
